<compile_context>
chip_gen: v7x
topology: tpu7x:2x2x1
jax: 0.10.0
libtpu: 0.0.40
codegen_flags: <defaults>
</compile_context>

<pallas_src>
import math

import jax
import jax.numpy as jnp
import numpy as np
from jax.experimental import pallas as pl
from jax.experimental.pallas import tpu as pltpu

LATENT_DIM = 16
STYLE_DIM = 64
NUM_DOMAINS = 2
HIDDEN = 512
N_SHARED_HIDDEN = 3    # 3 extra (512->512) layers in `shared`
N_UNSHARED_HIDDEN = 3  # 3 (512->512) layers per unshared branch


def mapping_kernel(z_ref, w0_ref, b0_ref, wsh_ref, bsh_ref,
                   wu_ref, bu_ref, wuo_ref, buo_ref, out_ref):
    """One grid step == one batch tile.  All domain branches are unrolled
    statically (num_domains is tiny); weights arrive as bf16, biases f32.
    Weight blocks have constant index_maps so they are DMA'd only once."""
    num_domains = wu_ref.shape[0]
    style_dim = wuo_ref.shape[-1]

    # ---- shared trunk: Linear(latent,512)+ReLU, then 3x (Linear(512,512)+ReLU)
    h = jnp.dot(z_ref[...].astype(jnp.bfloat16), w0_ref[...],
                preferred_element_type=jnp.float32)
    h = jnp.maximum(h + b0_ref[...], 0.0)
    for i in range(N_SHARED_HIDDEN):
        h = jnp.dot(h.astype(jnp.bfloat16), wsh_ref[i],
                    preferred_element_type=jnp.float32)
        h = jnp.maximum(h + bsh_ref[i], 0.0)

    # ---- unshared branches (static unroll over domains) ----
    outs = []
    for d in range(num_domains):
        hd = h
        for i in range(N_UNSHARED_HIDDEN):
            hd = jnp.dot(hd.astype(jnp.bfloat16), wu_ref[d, i],
                         preferred_element_type=jnp.float32)
            hd = jnp.maximum(hd + bu_ref[d, i], 0.0)
        s = jnp.dot(hd.astype(jnp.bfloat16), wuo_ref[d],
                    preferred_element_type=jnp.float32) + buo_ref[d]
        outs.append(s)

    # Lane-dense store: (TB, num_domains*style_dim) -> full 128-lane rows.
    out_ref[...] = jnp.concatenate(outs, axis=-1)
    del style_dim  # (only used implicitly via shapes)


def mapping_forward(z, y, params, *, batch_tile=256):
    """Computes s[b] = unshared[y[b]](shared(z[b])) for every sample b."""
    B, latent_dim = z.shape
    num_domains = params["wu"].shape[0]
    hidden = params["w0"].shape[-1]
    style_dim = params["wuo"].shape[-1]

    # Choose a batch tile that is a multiple of 8 (sublane) and pad B up to it.
    tb = min(batch_tile, max(B, 8))
    tb = ((tb + 7) // 8) * 8
    b_pad = ((B + tb - 1) // tb) * tb
    if b_pad != B:
        z = jnp.pad(z, ((0, b_pad - B), (0, 0)))
    n_tiles = b_pad // tb

    out_all = pl.pallas_call(
        mapping_kernel,
        out_shape=jax.ShapeDtypeStruct((b_pad, num_domains * style_dim),
                                       jnp.float32),
        grid=(n_tiles,),
        in_specs=[
            pl.BlockSpec((tb, latent_dim), lambda i: (i, 0)),                      # z
            pl.BlockSpec((latent_dim, hidden), lambda i: (0, 0)),                  # w0  (bf16)
            pl.BlockSpec((1, hidden), lambda i: (0, 0)),                           # b0
            pl.BlockSpec((N_SHARED_HIDDEN, hidden, hidden), lambda i: (0, 0, 0)),  # wsh (bf16)
            pl.BlockSpec((N_SHARED_HIDDEN, 1, hidden), lambda i: (0, 0, 0)),       # bsh
            pl.BlockSpec((num_domains, N_UNSHARED_HIDDEN, hidden, hidden),
                         lambda i: (0, 0, 0, 0)),                                  # wu  (bf16)
            pl.BlockSpec((num_domains, N_UNSHARED_HIDDEN, 1, hidden),
                         lambda i: (0, 0, 0, 0)),                                  # bu
            pl.BlockSpec((num_domains, hidden, style_dim), lambda i: (0, 0, 0)),   # wuo (bf16)
            pl.BlockSpec((num_domains, 1, style_dim), lambda i: (0, 0, 0)),        # buo
        ],
        out_specs=pl.BlockSpec((tb, num_domains * style_dim), lambda i: (i, 0)),
        compiler_params=pltpu.CompilerParams(
            dimension_semantics=("parallel",),   # batch tiles are independent
            vmem_limit_bytes=32 << 20,           # ~10 MiB actual footprint
        ),
    )(z, params["w0"], params["b0"], params["wsh"], params["bsh"],
      params["wu"], params["bu"], params["wuo"], params["buo"])

    # Per-sample domain selection: s[b] = out[b, y[b]]  (== out[arange(B), y]
    # in the PyTorch module).  Tiny gather kept outside the kernel.
    out_all = out_all[:B].reshape(B, num_domains, style_dim)
    return out_all[jnp.arange(B), y.astype(jnp.int32)]


def init_params(key, latent_dim=LATENT_DIM, style_dim=STYLE_DIM,
                num_domains=NUM_DOMAINS, hidden=HIDDEN):
    """Deterministic init mimicking nn.Linear default
    (U[-1/sqrt(fan_in), 1/sqrt(fan_in)]).  Weights stored in bfloat16
    (halves the dominant HBM weight stream); biases stay float32."""
    def lin(k, fan_in, fan_out):
        kw, kb = jax.random.split(k)
        bound = 1.0 / math.sqrt(fan_in)
        w = jax.random.uniform(kw, (fan_in, fan_out), jnp.float32, -bound, bound)
        b = jax.random.uniform(kb, (fan_out,), jnp.float32, -bound, bound)
        return w.astype(jnp.bfloat16), b

    n_keys = 1 + N_SHARED_HIDDEN + num_domains * (N_UNSHARED_HIDDEN + 1)
    keys = list(jax.random.split(key, n_keys))
    ki = iter(keys)

    w0, b0 = lin(next(ki), latent_dim, hidden)

    wsh, bsh = [], []
    for _ in range(N_SHARED_HIDDEN):
        w, b = lin(next(ki), hidden, hidden)
        wsh.append(w); bsh.append(b)

    wu, bu, wuo, buo = [], [], [], []
    for _ in range(num_domains):
        ws, bs = [], []
        for _ in range(N_UNSHARED_HIDDEN):
            w, b = lin(next(ki), hidden, hidden)
            ws.append(w); bs.append(b)
        wo, bo = lin(next(ki), hidden, style_dim)
        wu.append(jnp.stack(ws)); bu.append(jnp.stack(bs))
        wuo.append(wo); buo.append(bo)

    return {
        "w0": w0,                                                        # (latent, 512)    bf16
        "b0": b0.reshape(1, hidden),                                     # (1, 512)         f32
        "wsh": jnp.stack(wsh),                                           # (3, 512, 512)    bf16
        "bsh": jnp.stack(bsh).reshape(N_SHARED_HIDDEN, 1, hidden),       # (3, 1, 512)      f32
        "wu": jnp.stack(wu),                                             # (D, 3, 512, 512) bf16
        "bu": jnp.stack(bu).reshape(num_domains, N_UNSHARED_HIDDEN, 1, hidden),  # (D,3,1,512) f32
        "wuo": jnp.stack(wuo),                                           # (D, 512, style)  bf16
        "buo": jnp.stack(buo).reshape(num_domains, 1, style_dim),        # (D, 1, style)    f32
    }


def reference_forward(z, y, p):
    """Pure-JAX reference with identical numerics (bf16 weights, f32 accumulate),
    matching the PyTorch forward structure: shared -> per-domain unshared ->
    stack -> out[arange(B), y]."""
    def dot_bf16(x, w):
        return jnp.dot(x.astype(jnp.bfloat16), w, preferred_element_type=jnp.float32)

    h = jnp.maximum(dot_bf16(z, p["w0"]) + p["b0"], 0.0)
    for i in range(N_SHARED_HIDDEN):
        h = jnp.maximum(dot_bf16(h, p["wsh"][i]) + p["bsh"][i], 0.0)
    outs = []
    for d in range(p["wu"].shape[0]):
        hd = h
        for i in range(N_UNSHARED_HIDDEN):
            hd = jnp.maximum(dot_bf16(hd, p["wu"][d, i]) + p["bu"][d, i], 0.0)
        outs.append(dot_bf16(hd, p["wuo"][d]) + p["buo"][d])
    out = jnp.stack(outs, axis=1)                   # (B, num_domains, style_dim)
    return out[jnp.arange(z.shape[0]), y]           # (B, style_dim)


if __name__ == "__main__":
    key = jax.random.PRNGKey(0)
    kp, kz, ky = jax.random.split(key, 3)

    params = init_params(kp)

    B = 8
    z = jax.random.normal(kz, (B, LATENT_DIM), dtype=jnp.float32)
    y = jax.random.randint(ky, (B,), 0, NUM_DOMAINS, dtype=jnp.int32)

    s = jax.block_until_ready(mapping_forward(z, y, params))
    s_ref = jax.block_until_ready(reference_forward(z, y, params))

    np.testing.assert_allclose(np.asarray(s), np.asarray(s_ref),
                               atol=2e-3, rtol=2e-3)

    print("KERNEL_OK")
</pallas_src>

<mosaic_0001>
module attributes {stable_mosaic.version = 11 : i64} {
  func.func @mapping_kernel(%arg0: i32, %arg1: memref<8x16xf32, #tpu.memory_space<vmem>>, %arg2: memref<16x512xbf16, #tpu.memory_space<vmem>>, %arg3: memref<1x512xf32, #tpu.memory_space<vmem>>, %arg4: memref<3x512x512xbf16, #tpu.memory_space<vmem>>, %arg5: memref<3x1x512xf32, #tpu.memory_space<vmem>>, %arg6: memref<2x3x512x512xbf16, #tpu.memory_space<vmem>>, %arg7: memref<2x3x1x512xf32, #tpu.memory_space<vmem>>, %arg8: memref<2x512x64xbf16, #tpu.memory_space<vmem>>, %arg9: memref<2x1x64xf32, #tpu.memory_space<vmem>>, %arg10: memref<8x128xf32, #tpu.memory_space<vmem>>) attributes {dimension_semantics = [#tpu.dimension_semantics<parallel>], iteration_bounds = array<i64: 1>, scalar_prefetch = 0 : i64, scratch_operands = 0 : i64, tpu.core_type = #tpu.core_type<tc>, window_params = [{transform_indices = @transform_0, window_bounds = array<i64: 8, 16>}, {pipeline_mode = #tpu.pipeline_mode<synchronous>, transform_indices = @transform_1, window_bounds = array<i64: 16, 512>}, {pipeline_mode = #tpu.pipeline_mode<synchronous>, transform_indices = @transform_2, window_bounds = array<i64: 1, 512>}, {pipeline_mode = #tpu.pipeline_mode<synchronous>, transform_indices = @transform_3, window_bounds = array<i64: 3, 512, 512>}, {pipeline_mode = #tpu.pipeline_mode<synchronous>, transform_indices = @transform_4, window_bounds = array<i64: 3, 1, 512>}, {pipeline_mode = #tpu.pipeline_mode<synchronous>, transform_indices = @transform_5, window_bounds = array<i64: 2, 3, 512, 512>}, {pipeline_mode = #tpu.pipeline_mode<synchronous>, transform_indices = @transform_6, window_bounds = array<i64: 2, 3, 1, 512>}, {pipeline_mode = #tpu.pipeline_mode<synchronous>, transform_indices = @transform_7, window_bounds = array<i64: 2, 512, 64>}, {pipeline_mode = #tpu.pipeline_mode<synchronous>, transform_indices = @transform_8, window_bounds = array<i64: 2, 1, 64>}, {transform_indices = @transform_9, window_bounds = array<i64: 8, 128>}]} {
    %c0 = arith.constant 0 : index
    %c0_0 = arith.constant 0 : index
    %0 = vector.load %arg1[%c0, %c0_0] : memref<8x16xf32, #tpu.memory_space<vmem>>, vector<8x16xf32>
    %1 = arith.truncf %0 : vector<8x16xf32> to vector<8x16xbf16>
    %c0_1 = arith.constant 0 : index
    %c0_2 = arith.constant 0 : index
    %2 = vector.load %arg2[%c0_1, %c0_2] : memref<16x512xbf16, #tpu.memory_space<vmem>>, vector<16x512xbf16>
    %cst = arith.constant dense<0.000000e+00> : vector<8x512xf32>
    %3 = tpu.matmul %1, %2, %cst {dimension_numbers = #tpu.dot_dimension_numbers<[1], [0], [0], [1], [0, 0, 1, 1], [], []>} : vector<8x16xbf16>, vector<16x512xbf16>, vector<8x512xf32> -> vector<8x512xf32>
    %c0_3 = arith.constant 0 : index
    %c0_4 = arith.constant 0 : index
    %4 = vector.load %arg3[%c0_3, %c0_4] : memref<1x512xf32, #tpu.memory_space<vmem>>, vector<1x512xf32>
    %5 = vector.broadcast %4 : vector<1x512xf32> to vector<8x512xf32>
    %6 = arith.addf %3, %5 : vector<8x512xf32>
    %cst_5 = arith.constant 0.000000e+00 : f32
    %7 = vector.broadcast %cst_5 : f32 to vector<8x512xf32>
    %8 = arith.maximumf %6, %7 : vector<8x512xf32>
    %9 = arith.truncf %8 : vector<8x512xf32> to vector<8x512xbf16>
    %c0_6 = arith.constant 0 : index
    %c0_7 = arith.constant 0 : index
    %c0_8 = arith.constant 0 : index
    %10 = vector.load %arg4[%c0_6, %c0_7, %c0_8] : memref<3x512x512xbf16, #tpu.memory_space<vmem>>, vector<1x512x512xbf16>
    %11 = vector.shape_cast %10 : vector<1x512x512xbf16> to vector<512x512xbf16>
    %cst_9 = arith.constant dense<0.000000e+00> : vector<8x512xf32>
    %12 = tpu.matmul %9, %11, %cst_9 {dimension_numbers = #tpu.dot_dimension_numbers<[1], [0], [0], [1], [0, 0, 1, 1], [], []>} : vector<8x512xbf16>, vector<512x512xbf16>, vector<8x512xf32> -> vector<8x512xf32>
    %c0_10 = arith.constant 0 : index
    %c0_11 = arith.constant 0 : index
    %c0_12 = arith.constant 0 : index
    %13 = vector.load %arg5[%c0_10, %c0_11, %c0_12] : memref<3x1x512xf32, #tpu.memory_space<vmem>>, vector<1x1x512xf32>
    %14 = vector.shape_cast %13 : vector<1x1x512xf32> to vector<1x512xf32>
    %15 = vector.broadcast %14 : vector<1x512xf32> to vector<8x512xf32>
    %16 = arith.addf %12, %15 : vector<8x512xf32>
    %cst_13 = arith.constant 0.000000e+00 : f32
    %17 = vector.broadcast %cst_13 : f32 to vector<8x512xf32>
    %18 = arith.maximumf %16, %17 : vector<8x512xf32>
    %19 = arith.truncf %18 : vector<8x512xf32> to vector<8x512xbf16>
    %c1 = arith.constant 1 : index
    %c0_14 = arith.constant 0 : index
    %c0_15 = arith.constant 0 : index
    %20 = vector.load %arg4[%c1, %c0_14, %c0_15] : memref<3x512x512xbf16, #tpu.memory_space<vmem>>, vector<1x512x512xbf16>
    %21 = vector.shape_cast %20 : vector<1x512x512xbf16> to vector<512x512xbf16>
    %cst_16 = arith.constant dense<0.000000e+00> : vector<8x512xf32>
    %22 = tpu.matmul %19, %21, %cst_16 {dimension_numbers = #tpu.dot_dimension_numbers<[1], [0], [0], [1], [0, 0, 1, 1], [], []>} : vector<8x512xbf16>, vector<512x512xbf16>, vector<8x512xf32> -> vector<8x512xf32>
    %c1_17 = arith.constant 1 : index
    %c0_18 = arith.constant 0 : index
    %c0_19 = arith.constant 0 : index
    %23 = vector.load %arg5[%c1_17, %c0_18, %c0_19] : memref<3x1x512xf32, #tpu.memory_space<vmem>>, vector<1x1x512xf32>
    %24 = vector.shape_cast %23 : vector<1x1x512xf32> to vector<1x512xf32>
    %25 = vector.broadcast %24 : vector<1x512xf32> to vector<8x512xf32>
    %26 = arith.addf %22, %25 : vector<8x512xf32>
    %cst_20 = arith.constant 0.000000e+00 : f32
    %27 = vector.broadcast %cst_20 : f32 to vector<8x512xf32>
    %28 = arith.maximumf %26, %27 : vector<8x512xf32>
    %29 = arith.truncf %28 : vector<8x512xf32> to vector<8x512xbf16>
    %c2 = arith.constant 2 : index
    %c0_21 = arith.constant 0 : index
    %c0_22 = arith.constant 0 : index
    %30 = vector.load %arg4[%c2, %c0_21, %c0_22] : memref<3x512x512xbf16, #tpu.memory_space<vmem>>, vector<1x512x512xbf16>
    %31 = vector.shape_cast %30 : vector<1x512x512xbf16> to vector<512x512xbf16>
    %cst_23 = arith.constant dense<0.000000e+00> : vector<8x512xf32>
    %32 = tpu.matmul %29, %31, %cst_23 {dimension_numbers = #tpu.dot_dimension_numbers<[1], [0], [0], [1], [0, 0, 1, 1], [], []>} : vector<8x512xbf16>, vector<512x512xbf16>, vector<8x512xf32> -> vector<8x512xf32>
    %c2_24 = arith.constant 2 : index
    %c0_25 = arith.constant 0 : index
    %c0_26 = arith.constant 0 : index
    %33 = vector.load %arg5[%c2_24, %c0_25, %c0_26] : memref<3x1x512xf32, #tpu.memory_space<vmem>>, vector<1x1x512xf32>
    %34 = vector.shape_cast %33 : vector<1x1x512xf32> to vector<1x512xf32>
    %35 = vector.broadcast %34 : vector<1x512xf32> to vector<8x512xf32>
    %36 = arith.addf %32, %35 : vector<8x512xf32>
    %cst_27 = arith.constant 0.000000e+00 : f32
    %37 = vector.broadcast %cst_27 : f32 to vector<8x512xf32>
    %38 = arith.maximumf %36, %37 : vector<8x512xf32>
    %39 = arith.truncf %38 : vector<8x512xf32> to vector<8x512xbf16>
    %c0_28 = arith.constant 0 : index
    %c0_29 = arith.constant 0 : index
    %c0_30 = arith.constant 0 : index
    %c0_31 = arith.constant 0 : index
    %40 = vector.load %arg6[%c0_28, %c0_29, %c0_30, %c0_31] : memref<2x3x512x512xbf16, #tpu.memory_space<vmem>>, vector<1x1x512x512xbf16>
    %41 = vector.shape_cast %40 : vector<1x1x512x512xbf16> to vector<512x512xbf16>
    %cst_32 = arith.constant dense<0.000000e+00> : vector<8x512xf32>
    %42 = tpu.matmul %39, %41, %cst_32 {dimension_numbers = #tpu.dot_dimension_numbers<[1], [0], [0], [1], [0, 0, 1, 1], [], []>} : vector<8x512xbf16>, vector<512x512xbf16>, vector<8x512xf32> -> vector<8x512xf32>
    %c0_33 = arith.constant 0 : index
    %c0_34 = arith.constant 0 : index
    %c0_35 = arith.constant 0 : index
    %c0_36 = arith.constant 0 : index
    %43 = vector.load %arg7[%c0_33, %c0_34, %c0_35, %c0_36] : memref<2x3x1x512xf32, #tpu.memory_space<vmem>>, vector<1x1x1x512xf32>
    %44 = vector.shape_cast %43 : vector<1x1x1x512xf32> to vector<1x512xf32>
    %45 = vector.broadcast %44 : vector<1x512xf32> to vector<8x512xf32>
    %46 = arith.addf %42, %45 : vector<8x512xf32>
    %cst_37 = arith.constant 0.000000e+00 : f32
    %47 = vector.broadcast %cst_37 : f32 to vector<8x512xf32>
    %48 = arith.maximumf %46, %47 : vector<8x512xf32>
    %49 = arith.truncf %48 : vector<8x512xf32> to vector<8x512xbf16>
    %c0_38 = arith.constant 0 : index
    %c1_39 = arith.constant 1 : index
    %c0_40 = arith.constant 0 : index
    %c0_41 = arith.constant 0 : index
    %50 = vector.load %arg6[%c0_38, %c1_39, %c0_40, %c0_41] : memref<2x3x512x512xbf16, #tpu.memory_space<vmem>>, vector<1x1x512x512xbf16>
    %51 = vector.shape_cast %50 : vector<1x1x512x512xbf16> to vector<512x512xbf16>
    %cst_42 = arith.constant dense<0.000000e+00> : vector<8x512xf32>
    %52 = tpu.matmul %49, %51, %cst_42 {dimension_numbers = #tpu.dot_dimension_numbers<[1], [0], [0], [1], [0, 0, 1, 1], [], []>} : vector<8x512xbf16>, vector<512x512xbf16>, vector<8x512xf32> -> vector<8x512xf32>
    %c0_43 = arith.constant 0 : index
    %c1_44 = arith.constant 1 : index
    %c0_45 = arith.constant 0 : index
    %c0_46 = arith.constant 0 : index
    %53 = vector.load %arg7[%c0_43, %c1_44, %c0_45, %c0_46] : memref<2x3x1x512xf32, #tpu.memory_space<vmem>>, vector<1x1x1x512xf32>
    %54 = vector.shape_cast %53 : vector<1x1x1x512xf32> to vector<1x512xf32>
    %55 = vector.broadcast %54 : vector<1x512xf32> to vector<8x512xf32>
    %56 = arith.addf %52, %55 : vector<8x512xf32>
    %cst_47 = arith.constant 0.000000e+00 : f32
    %57 = vector.broadcast %cst_47 : f32 to vector<8x512xf32>
    %58 = arith.maximumf %56, %57 : vector<8x512xf32>
    %59 = arith.truncf %58 : vector<8x512xf32> to vector<8x512xbf16>
    %c0_48 = arith.constant 0 : index
    %c2_49 = arith.constant 2 : index
    %c0_50 = arith.constant 0 : index
    %c0_51 = arith.constant 0 : index
    %60 = vector.load %arg6[%c0_48, %c2_49, %c0_50, %c0_51] : memref<2x3x512x512xbf16, #tpu.memory_space<vmem>>, vector<1x1x512x512xbf16>
    %61 = vector.shape_cast %60 : vector<1x1x512x512xbf16> to vector<512x512xbf16>
    %cst_52 = arith.constant dense<0.000000e+00> : vector<8x512xf32>
    %62 = tpu.matmul %59, %61, %cst_52 {dimension_numbers = #tpu.dot_dimension_numbers<[1], [0], [0], [1], [0, 0, 1, 1], [], []>} : vector<8x512xbf16>, vector<512x512xbf16>, vector<8x512xf32> -> vector<8x512xf32>
    %c0_53 = arith.constant 0 : index
    %c2_54 = arith.constant 2 : index
    %c0_55 = arith.constant 0 : index
    %c0_56 = arith.constant 0 : index
    %63 = vector.load %arg7[%c0_53, %c2_54, %c0_55, %c0_56] : memref<2x3x1x512xf32, #tpu.memory_space<vmem>>, vector<1x1x1x512xf32>
    %64 = vector.shape_cast %63 : vector<1x1x1x512xf32> to vector<1x512xf32>
    %65 = vector.broadcast %64 : vector<1x512xf32> to vector<8x512xf32>
    %66 = arith.addf %62, %65 : vector<8x512xf32>
    %cst_57 = arith.constant 0.000000e+00 : f32
    %67 = vector.broadcast %cst_57 : f32 to vector<8x512xf32>
    %68 = arith.maximumf %66, %67 : vector<8x512xf32>
    %69 = arith.truncf %68 : vector<8x512xf32> to vector<8x512xbf16>
    %c0_58 = arith.constant 0 : index
    %c0_59 = arith.constant 0 : index
    %c0_60 = arith.constant 0 : index
    %70 = vector.load %arg8[%c0_58, %c0_59, %c0_60] : memref<2x512x64xbf16, #tpu.memory_space<vmem>>, vector<1x512x64xbf16>
    %71 = vector.shape_cast %70 : vector<1x512x64xbf16> to vector<512x64xbf16>
    %cst_61 = arith.constant dense<0.000000e+00> : vector<8x64xf32>
    %72 = tpu.matmul %69, %71, %cst_61 {dimension_numbers = #tpu.dot_dimension_numbers<[1], [0], [0], [1], [0, 0, 1, 1], [], []>} : vector<8x512xbf16>, vector<512x64xbf16>, vector<8x64xf32> -> vector<8x64xf32>
    %c0_62 = arith.constant 0 : index
    %c0_63 = arith.constant 0 : index
    %c0_64 = arith.constant 0 : index
    %73 = vector.load %arg9[%c0_62, %c0_63, %c0_64] : memref<2x1x64xf32, #tpu.memory_space<vmem>>, vector<1x1x64xf32>
    %74 = vector.shape_cast %73 : vector<1x1x64xf32> to vector<1x64xf32>
    %75 = vector.broadcast %74 : vector<1x64xf32> to vector<8x64xf32>
    %76 = arith.addf %72, %75 : vector<8x64xf32>
    %77 = arith.truncf %38 : vector<8x512xf32> to vector<8x512xbf16>
    %c1_65 = arith.constant 1 : index
    %c0_66 = arith.constant 0 : index
    %c0_67 = arith.constant 0 : index
    %c0_68 = arith.constant 0 : index
    %78 = vector.load %arg6[%c1_65, %c0_66, %c0_67, %c0_68] : memref<2x3x512x512xbf16, #tpu.memory_space<vmem>>, vector<1x1x512x512xbf16>
    %79 = vector.shape_cast %78 : vector<1x1x512x512xbf16> to vector<512x512xbf16>
    %cst_69 = arith.constant dense<0.000000e+00> : vector<8x512xf32>
    %80 = tpu.matmul %77, %79, %cst_69 {dimension_numbers = #tpu.dot_dimension_numbers<[1], [0], [0], [1], [0, 0, 1, 1], [], []>} : vector<8x512xbf16>, vector<512x512xbf16>, vector<8x512xf32> -> vector<8x512xf32>
    %c1_70 = arith.constant 1 : index
    %c0_71 = arith.constant 0 : index
    %c0_72 = arith.constant 0 : index
    %c0_73 = arith.constant 0 : index
    %81 = vector.load %arg7[%c1_70, %c0_71, %c0_72, %c0_73] : memref<2x3x1x512xf32, #tpu.memory_space<vmem>>, vector<1x1x1x512xf32>
    %82 = vector.shape_cast %81 : vector<1x1x1x512xf32> to vector<1x512xf32>
    %83 = vector.broadcast %82 : vector<1x512xf32> to vector<8x512xf32>
    %84 = arith.addf %80, %83 : vector<8x512xf32>
    %cst_74 = arith.constant 0.000000e+00 : f32
    %85 = vector.broadcast %cst_74 : f32 to vector<8x512xf32>
    %86 = arith.maximumf %84, %85 : vector<8x512xf32>
    %87 = arith.truncf %86 : vector<8x512xf32> to vector<8x512xbf16>
    %c1_75 = arith.constant 1 : index
    %c1_76 = arith.constant 1 : index
    %c0_77 = arith.constant 0 : index
    %c0_78 = arith.constant 0 : index
    %88 = vector.load %arg6[%c1_75, %c1_76, %c0_77, %c0_78] : memref<2x3x512x512xbf16, #tpu.memory_space<vmem>>, vector<1x1x512x512xbf16>
    %89 = vector.shape_cast %88 : vector<1x1x512x512xbf16> to vector<512x512xbf16>
    %cst_79 = arith.constant dense<0.000000e+00> : vector<8x512xf32>
    %90 = tpu.matmul %87, %89, %cst_79 {dimension_numbers = #tpu.dot_dimension_numbers<[1], [0], [0], [1], [0, 0, 1, 1], [], []>} : vector<8x512xbf16>, vector<512x512xbf16>, vector<8x512xf32> -> vector<8x512xf32>
    %c1_80 = arith.constant 1 : index
    %c1_81 = arith.constant 1 : index
    %c0_82 = arith.constant 0 : index
    %c0_83 = arith.constant 0 : index
    %91 = vector.load %arg7[%c1_80, %c1_81, %c0_82, %c0_83] : memref<2x3x1x512xf32, #tpu.memory_space<vmem>>, vector<1x1x1x512xf32>
    %92 = vector.shape_cast %91 : vector<1x1x1x512xf32> to vector<1x512xf32>
    %93 = vector.broadcast %92 : vector<1x512xf32> to vector<8x512xf32>
    %94 = arith.addf %90, %93 : vector<8x512xf32>
    %cst_84 = arith.constant 0.000000e+00 : f32
    %95 = vector.broadcast %cst_84 : f32 to vector<8x512xf32>
    %96 = arith.maximumf %94, %95 : vector<8x512xf32>
    %97 = arith.truncf %96 : vector<8x512xf32> to vector<8x512xbf16>
    %c1_85 = arith.constant 1 : index
    %c2_86 = arith.constant 2 : index
    %c0_87 = arith.constant 0 : index
    %c0_88 = arith.constant 0 : index
    %98 = vector.load %arg6[%c1_85, %c2_86, %c0_87, %c0_88] : memref<2x3x512x512xbf16, #tpu.memory_space<vmem>>, vector<1x1x512x512xbf16>
    %99 = vector.shape_cast %98 : vector<1x1x512x512xbf16> to vector<512x512xbf16>
    %cst_89 = arith.constant dense<0.000000e+00> : vector<8x512xf32>
    %100 = tpu.matmul %97, %99, %cst_89 {dimension_numbers = #tpu.dot_dimension_numbers<[1], [0], [0], [1], [0, 0, 1, 1], [], []>} : vector<8x512xbf16>, vector<512x512xbf16>, vector<8x512xf32> -> vector<8x512xf32>
    %c1_90 = arith.constant 1 : index
    %c2_91 = arith.constant 2 : index
    %c0_92 = arith.constant 0 : index
    %c0_93 = arith.constant 0 : index
    %101 = vector.load %arg7[%c1_90, %c2_91, %c0_92, %c0_93] : memref<2x3x1x512xf32, #tpu.memory_space<vmem>>, vector<1x1x1x512xf32>
    %102 = vector.shape_cast %101 : vector<1x1x1x512xf32> to vector<1x512xf32>
    %103 = vector.broadcast %102 : vector<1x512xf32> to vector<8x512xf32>
    %104 = arith.addf %100, %103 : vector<8x512xf32>
    %cst_94 = arith.constant 0.000000e+00 : f32
    %105 = vector.broadcast %cst_94 : f32 to vector<8x512xf32>
    %106 = arith.maximumf %104, %105 : vector<8x512xf32>
    %107 = arith.truncf %106 : vector<8x512xf32> to vector<8x512xbf16>
    %c1_95 = arith.constant 1 : index
    %c0_96 = arith.constant 0 : index
    %c0_97 = arith.constant 0 : index
    %108 = vector.load %arg8[%c1_95, %c0_96, %c0_97] : memref<2x512x64xbf16, #tpu.memory_space<vmem>>, vector<1x512x64xbf16>
    %109 = vector.shape_cast %108 : vector<1x512x64xbf16> to vector<512x64xbf16>
    %cst_98 = arith.constant dense<0.000000e+00> : vector<8x64xf32>
    %110 = tpu.matmul %107, %109, %cst_98 {dimension_numbers = #tpu.dot_dimension_numbers<[1], [0], [0], [1], [0, 0, 1, 1], [], []>} : vector<8x512xbf16>, vector<512x64xbf16>, vector<8x64xf32> -> vector<8x64xf32>
    %c1_99 = arith.constant 1 : index
    %c0_100 = arith.constant 0 : index
    %c0_101 = arith.constant 0 : index
    %111 = vector.load %arg9[%c1_99, %c0_100, %c0_101] : memref<2x1x64xf32, #tpu.memory_space<vmem>>, vector<1x1x64xf32>
    %112 = vector.shape_cast %111 : vector<1x1x64xf32> to vector<1x64xf32>
    %113 = vector.broadcast %112 : vector<1x64xf32> to vector<8x64xf32>
    %114 = arith.addf %110, %113 : vector<8x64xf32>
    %115 = tpu.concatenate %76, %114 in 1 : vector<8x64xf32>, vector<8x64xf32> -> vector<8x128xf32>
    %c0_102 = arith.constant 0 : index
    %c0_103 = arith.constant 0 : index
    %116 = vector.load %arg10[%c0_102, %c0_103] : memref<8x128xf32, #tpu.memory_space<vmem>>, vector<8x128xf32>
    tpu.vector_store %arg10[%c0_102, %c0_103], %115 {strides = array<i32>} : memref<8x128xf32, #tpu.memory_space<vmem>>, vector<8x128xf32>,
    return
  }
  func.func @transform_0(%arg0: i32) -> (i32, i32) {
    %c0_i32 = arith.constant 0 : i32
    %c0_i32_0 = arith.constant 0 : i32
    return %arg0, %c0_i32 : i32, i32
  }
  func.func @transform_1(%arg0: i32) -> (i32, i32) {
    %c0_i32 = arith.constant 0 : i32
    %c0_i32_0 = arith.constant 0 : i32
    %c0_i32_1 = arith.constant 0 : i32
    return %c0_i32, %c0_i32_0 : i32, i32
  }
  func.func @transform_2(%arg0: i32) -> (i32, i32) {
    %c0_i32 = arith.constant 0 : i32
    %c0_i32_0 = arith.constant 0 : i32
    %c0_i32_1 = arith.constant 0 : i32
    return %c0_i32, %c0_i32_0 : i32, i32
  }
  func.func @transform_3(%arg0: i32) -> (i32, i32, i32) {
    %c0_i32 = arith.constant 0 : i32
    %c0_i32_0 = arith.constant 0 : i32
    %c0_i32_1 = arith.constant 0 : i32
    %c0_i32_2 = arith.constant 0 : i32
    return %c0_i32, %c0_i32_0, %c0_i32_1 : i32, i32, i32
  }
  func.func @transform_4(%arg0: i32) -> (i32, i32, i32) {
    %c0_i32 = arith.constant 0 : i32
    %c0_i32_0 = arith.constant 0 : i32
    %c0_i32_1 = arith.constant 0 : i32
    %c0_i32_2 = arith.constant 0 : i32
    return %c0_i32, %c0_i32_0, %c0_i32_1 : i32, i32, i32
  }
  func.func @transform_5(%arg0: i32) -> (i32, i32, i32, i32) {
    %c0_i32 = arith.constant 0 : i32
    %c0_i32_0 = arith.constant 0 : i32
    %c0_i32_1 = arith.constant 0 : i32
    %c0_i32_2 = arith.constant 0 : i32
    %c0_i32_3 = arith.constant 0 : i32
    return %c0_i32, %c0_i32_0, %c0_i32_1, %c0_i32_2 : i32, i32, i32, i32
  }
  func.func @transform_6(%arg0: i32) -> (i32, i32, i32, i32) {
    %c0_i32 = arith.constant 0 : i32
    %c0_i32_0 = arith.constant 0 : i32
    %c0_i32_1 = arith.constant 0 : i32
    %c0_i32_2 = arith.constant 0 : i32
    %c0_i32_3 = arith.constant 0 : i32
    return %c0_i32, %c0_i32_0, %c0_i32_1, %c0_i32_2 : i32, i32, i32, i32
  }
  func.func @transform_7(%arg0: i32) -> (i32, i32, i32) {
    %c0_i32 = arith.constant 0 : i32
    %c0_i32_0 = arith.constant 0 : i32
    %c0_i32_1 = arith.constant 0 : i32
    %c0_i32_2 = arith.constant 0 : i32
    return %c0_i32, %c0_i32_0, %c0_i32_1 : i32, i32, i32
  }
  func.func @transform_8(%arg0: i32) -> (i32, i32, i32) {
    %c0_i32 = arith.constant 0 : i32
    %c0_i32_0 = arith.constant 0 : i32
    %c0_i32_1 = arith.constant 0 : i32
    %c0_i32_2 = arith.constant 0 : i32
    return %c0_i32, %c0_i32_0, %c0_i32_1 : i32, i32, i32
  }
  func.func @transform_9(%arg0: i32) -> (i32, i32) {
    %c0_i32 = arith.constant 0 : i32
    %c0_i32_0 = arith.constant 0 : i32
    return %arg0, %c0_i32 : i32, i32
  }
}

</mosaic_0001>

<bundles_post_ra>
// kernel: tpu_custom_call.1
= control target key start
LH: loop header
LB: loop body
LE: loop exit
PB: predicated region body
PF: predicated region fallthrough
CT: control target
= control target key end

     0   :  { %14 = vsyncpa [#allocation3], 0  ;;  %s13715_s0 = inlined_call_operand.hbm [shape: f32[8,16], index: 0, kind: input, shape index: {}]   ;;  %s13716_s1 = inlined_call_operand.hbm [shape: bf16[16,512], index: 1, kind: input, shape index: {}]   ;;  %s13717_s2 = inlined_call_operand.hbm [shape: f32[1,512], index: 2, kind: input, shape index: {}]   ;;  %s13718_s3 = inlined_call_operand.hbm [shape: bf16[3,512,512], index: 3, kind: input, shape index: {}]   ;;  %s13719_s4 = inlined_call_operand.hbm [shape: f32[3,1,512], index: 4, kind: input, shape index: {}]   ;;  %s13720_s5 = inlined_call_operand.hbm [shape: bf16[2,3,512,512], index: 5, kind: input, shape index: {}]   ;;  %s13721_s6 = inlined_call_operand.hbm [shape: f32[2,3,1,512], index: 6, kind: input, shape index: {}]   ;;  %s13722_s7 = inlined_call_operand.vmem [shape: bf16[2,512,64], index: 7, kind: input, shape index: {}]   ;;  %s13723_s8 = inlined_call_operand.hbm [shape: f32[2,1,64], index: 8, kind: input, shape index: {}]   ;;  %s13724_s9 = inlined_call_operand.hbm [shape: f32[8,128], index: 9, kind: output, shape index: {}]  }
   0x1   :  { %15 = vsyncpa [#allocation6], 0 }
   0x2   :  { %16 = vsyncpa [#allocation9], 0 }
   0x3   :  { %17 = vsyncpa [#allocation12], 0 }
   0x4   :  { %18 = vsyncpa [#allocation15], 0 }
   0x5   :  { %19 = vsyncpa [#allocation4], 0  ;;  %s13174_s30 = smov [#allocation5]   ;;  %s12964_s13 = scalar_lea.hbm %s13716_s1, 512 }
   0x6   :  { %s35_s10 = sshll.u32 %s13174_s30, 4  ;;  %p12965_p0 = scmp.ne.s32.totalorder %s13716_s1, %s12964_s13  ;;  %s36_s10 = int_to_ptr.vmem [resolvable:$true] %s35_s10 }
   0x7   :  { %p12968_p1 = scmp.lt.u32.totalorder %s12964_s13, %s13716_s1 }
   0x9   :  { %p12970_p2 = pnand %p12968_p1, %p12965_p0 }
   0xb   :  { %12973 = shalt.err (!%p12970_p2)
}
   0xc   :  { %s12974_s18 = scalar_lea.vmem %s36_s10, 512  ;;  %p12979_p4 = scmp.lt.s32.totalorder %s36_s10, %s36_s10 }
   0xd   :  { %p12975_p3 = scmp.ne.s32.totalorder %s36_s10, %s12974_s18  ;;  %p12980_p5 = scmp.lt.s32.totalorder %s12974_s18, %s12974_s18 }
   0xf   :  { %p12981_p6 = por %p12980_p5, %p12979_p4 }
  0x11   :  { %p12982_p7 = pnand %p12981_p6, %p12975_p3 }
  0x13   :  { %12985 = shalt.err (!%p12982_p7)
}
  0x14   :  { %s13175_s19 = smov 256   ;;  %s13176_s20 = smov 16  }
  0x15   :  { %41 = dma.hbm_to_vmem [thread:$0]  %s13716_s1, 512, %s36_s10, [#allocation6], %s13175_s19, %s13175_s19, %s13176_s20  }
  0x16   :  { %s13177_s23 = smov [#allocation8]   ;;  %s13178_s25 = smov [#allocation11]  }
  0x17   :  { %s57_s24 = sshll.u32 %s13177_s23, 4  ;;  %s81_s26 = sshll.u32 %s13178_s25, 4  ;;  %s58_s24 = int_to_ptr.vmem [resolvable:$true] %s57_s24  ;;  %s82_s26 = int_to_ptr.vmem [resolvable:$true] %s81_s26 }
  0x18   :  { %s12986_s29 = scalar_lea.hbm %s13718_s3, 49152 }
  0x19   :  { %p12987_p8 = scmp.ne.s32.totalorder %s13718_s3, %s12986_s29  ;;  %p12990_p9 = scmp.lt.u32.totalorder %s12986_s29, %s13718_s3 }
  0x1b   :  { %p12992_p10 = pnand %p12990_p9, %p12987_p8 }
  0x1d   :  { %12995 = shalt.err (!%p12992_p10)
}
  0x1e   :  { %s12996_s1 = scalar_lea.vmem %s58_s24, 49152  ;;  %p13001_p12 = scmp.lt.s32.totalorder %s58_s24, %s58_s24 }
  0x1f   :  { %p12997_p11 = scmp.ne.s32.totalorder %s58_s24, %s12996_s1  ;;  %p13002_p13 = scmp.lt.s32.totalorder %s12996_s1, %s12996_s1 }
  0x21   :  { %p13003_p0 = por %p13002_p13, %p13001_p12 }
  0x23   :  { %p13004_p1 = pnand %p13003_p0, %p12997_p11 }
  0x25   :  { %13007 = shalt.err (!%p13004_p1)
}
  0x26   :  { %63 = dma.hbm_to_vmem [thread:$0]  %s13718_s3, 49152, %s58_s24, [#allocation9], %s13175_s19, %s13175_s19, %s13176_s20  }
  0x27   :  { %s13008_s17 = scalar_lea.hbm %s13720_s5, 98304 }
  0x28   :  { %p13009_p2 = scmp.ne.s32.totalorder %s13720_s5, %s13008_s17  ;;  %p13012_p3 = scmp.lt.u32.totalorder %s13008_s17, %s13720_s5 }
  0x2a   :  { %p13014_p4 = pnand %p13012_p3, %p13009_p2 }
  0x2c   :  { %13017 = shalt.err (!%p13014_p4)
}
  0x2d   :  { %s13018_s25 = scalar_lea.vmem %s82_s26, 98304  ;;  %p13023_p6 = scmp.lt.s32.totalorder %s82_s26, %s82_s26 }
  0x2e   :  { %p13019_p5 = scmp.ne.s32.totalorder %s82_s26, %s13018_s25  ;;  %p13024_p7 = scmp.lt.s32.totalorder %s13018_s25, %s13018_s25 }
  0x30   :  { %p13025_p8 = por %p13024_p7, %p13023_p6 }
  0x32   :  { %p13026_p9 = pnand %p13025_p8, %p13019_p5 }
  0x34   :  { %13029 = shalt.err (!%p13026_p9)
}
  0x35   :  { %87 = dma.hbm_to_vmem [thread:$0]  %s13720_s5, 98304, %s82_s26, [#allocation12], %s13175_s19, %s13175_s19, %s13176_s20  }
  0x36   :  { %s13179_s27 = smov [#allocation2]   ;;  %s13180_s29 = smov [#allocation7]  }
  0x37   :  { %s26_s28 = sshll.u32 %s13179_s27, 4  ;;  %s48_s30 = sshll.u32 %s13180_s29, 4  ;;  %s27_s28 = int_to_ptr.vmem [resolvable:$true] %s26_s28  ;;  %s49_s30 = int_to_ptr.vmem [resolvable:$true] %s48_s30 }
  0x38   :  { %s13030_s13 = scalar_lea.hbm %s13715_s0, 128 }
  0x39   :  { %p13031_p10 = scmp.ne.s32.totalorder %s13715_s0, %s13030_s13  ;;  %p13034_p11 = scmp.lt.u32.totalorder %s13030_s13, %s13715_s0 }
  0x3b   :  { %p13036_p12 = pnand %p13034_p11, %p13031_p10 }
  0x3d   :  { %13039 = shalt.err (!%p13036_p12)
}
  0x3e   :  { %s13040_s5 = scalar_lea.vmem %s27_s28, 128  ;;  %p13045_p0 = scmp.lt.s32.totalorder %s27_s28, %s27_s28 }
  0x3f   :  { %p13041_p13 = scmp.ne.s32.totalorder %s27_s28, %s13040_s5  ;;  %p13046_p1 = scmp.lt.s32.totalorder %s13040_s5, %s13040_s5 }
  0x41   :  { %p13047_p2 = por %p13046_p1, %p13045_p0 }
  0x43   :  { %p13048_p3 = pnand %p13047_p2, %p13041_p13 }
  0x45   :  { %13051 = shalt.err (!%p13048_p3)
}
  0x46   :  { %29 = dma.hbm_to_vmem [thread:$0]  %s13715_s0, 128, %s27_s28, [#allocation3]  }
  0x47   :  { %s13052_s18 = scalar_lea.hbm %s13717_s2, 64 }
  0x48   :  { %p13053_p4 = scmp.ne.s32.totalorder %s13717_s2, %s13052_s18  ;;  %p13056_p5 = scmp.lt.u32.totalorder %s13052_s18, %s13717_s2 }
  0x4a   :  { %p13058_p6 = pnand %p13056_p5, %p13053_p4 }
  0x4c   :  { %13061 = shalt.err (!%p13058_p6)
}
  0x4d   :  { %s13062_s3 = scalar_lea.vmem %s49_s30, 64  ;;  %p13067_p8 = scmp.lt.s32.totalorder %s49_s30, %s49_s30 }
  0x4e   :  { %p13063_p7 = scmp.ne.s32.totalorder %s49_s30, %s13062_s3  ;;  %p13068_p9 = scmp.lt.s32.totalorder %s13062_s3, %s13062_s3 }
  0x50   :  { %p13069_p10 = por %p13068_p9, %p13067_p8 }
  0x52   :  { %p13070_p11 = pnand %p13069_p10, %p13063_p7 }
  0x54   :  { %13073 = shalt.err (!%p13070_p11)
}
  0x55   :  { %51 = dma.hbm_to_vmem [thread:$0]  %s13717_s2, 64, %s49_s30, [#allocation6]  }
  0x56   :  { %s13181_s27 = smov [#allocation10]   ;;  %s13074_s12 = scalar_lea.hbm %s13719_s4, 192 }
  0x57   :  { %s69_s28 = sshll.u32 %s13181_s27, 4  ;;  %p13075_p12 = scmp.ne.s32.totalorder %s13719_s4, %s13074_s12  ;;  %s70_s28 = int_to_ptr.vmem [resolvable:$true] %s69_s28 }
  0x58   :  { %p13078_p13 = scmp.lt.u32.totalorder %s13074_s12, %s13719_s4 }
  0x5a   :  { %p13080_p0 = pnand %p13078_p13, %p13075_p12 }
  0x5c   :  { %13083 = shalt.err (!%p13080_p0)
}
  0x5d   :  { %s13084_s15 = scalar_lea.vmem %s70_s28, 192  ;;  %p13089_p2 = scmp.lt.s32.totalorder %s70_s28, %s70_s28 }
  0x5e   :  { %p13085_p1 = scmp.ne.s32.totalorder %s70_s28, %s13084_s15  ;;  %p13090_p3 = scmp.lt.s32.totalorder %s13084_s15, %s13084_s15 }
  0x60   :  { %p13091_p4 = por %p13090_p3, %p13089_p2 }
  0x62   :  { %p13092_p5 = pnand %p13091_p4, %p13085_p1 }
  0x64   :  { %13095 = shalt.err (!%p13092_p5)
}
  0x65   :  { %s13182_s2 = smov 64   ;;  %s13183_s30 = smov 4  }
  0x66   :  { %75 = dma.hbm_to_vmem [thread:$0]  %s13719_s4, 192, %s70_s28, [#allocation9], %s13182_s2, %s13182_s2, %s13183_s30  }
  0x67   :  { %s13184_s26 = smov [#allocation13]   ;;  %s13185_s17 = smov [#allocation14]  }
  0x68   :  { %s93_s16 = sshll.u32 %s13184_s26, 4  ;;  %s107_s18 = sshll.u32 %s13185_s17, 4  ;;  %s94_s16 = int_to_ptr.vmem [resolvable:$true] %s93_s16  ;;  %s13322_s18 = int_to_ptr.vmem [resolvable:$true] %s107_s18 }
  0x69   :  { %s13096_s23 = scalar_lea.hbm %s13721_s6, 384 }
  0x6a   :  { %p13097_p6 = scmp.ne.s32.totalorder %s13721_s6, %s13096_s23  ;;  %p13100_p7 = scmp.lt.u32.totalorder %s13096_s23, %s13721_s6 }
  0x6c   :  { %p13102_p8 = pnand %p13100_p7, %p13097_p6 }
  0x6e   :  { %13105 = shalt.err (!%p13102_p8)
}
  0x6f   :  { %s13106_s4 = scalar_lea.vmem %s94_s16, 384  ;;  %p13111_p10 = scmp.lt.s32.totalorder %s94_s16, %s94_s16 }
  0x70   :  { %p13107_p9 = scmp.ne.s32.totalorder %s94_s16, %s13106_s4  ;;  %p13112_p11 = scmp.lt.s32.totalorder %s13106_s4, %s13106_s4 }
  0x72   :  { %p13113_p12 = por %p13112_p11, %p13111_p10 }
  0x74   :  { %p13114_p13 = pnand %p13113_p12, %p13107_p9 }
  0x76   :  { %13117 = shalt.err (!%p13114_p13)
}
  0x77   :  { %99 = dma.hbm_to_vmem [thread:$0]  %s13721_s6, 384, %s94_s16, [#allocation12], %s13182_s2, %s13182_s2, %s13183_s30  }
  0x78   :  { %s13118_s12 = scalar_lea.hbm %s13723_s8, 32 }
  0x79   :  { %p13119_p0 = scmp.ne.s32.totalorder %s13723_s8, %s13118_s12  ;;  %p13122_p1 = scmp.lt.u32.totalorder %s13118_s12, %s13723_s8 }
  0x7b   :  { %p13124_p2 = pnand %p13122_p1, %p13119_p0 }
  0x7d   :  { %13127 = shalt.err (!%p13124_p2)
}
  0x7e   :  { %s13128_s15 = scalar_lea.vmem %s13322_s18, 32  ;;  %p13133_p4 = scmp.lt.s32.totalorder %s13322_s18, %s13322_s18 }
  0x7f   :  { %p13129_p3 = scmp.ne.s32.totalorder %s13322_s18, %s13128_s15  ;;  %p13134_p5 = scmp.lt.s32.totalorder %s13128_s15, %s13128_s15 }
  0x81   :  { %p13135_p6 = por %p13134_p5, %p13133_p4 }
  0x83   :  { %p13136_p7 = pnand %p13135_p6, %p13129_p3 }
  0x85   :  { %13139 = shalt.err (!%p13136_p7)
}
  0x86   :  { %s13186_s6 = smov 1  }
  0x87   :  { %113 = dma.hbm_to_vmem [thread:$0]  %s13723_s8, 32, %s13322_s18, [#allocation15], %s13176_s20, %s13176_s20, %s13186_s6  }
  0x88   :  { %13162 = dma.done.wait [#allocation3], 128  }
  0x89   :  { %13163 = vsyncadd [#allocation3], 4294967168 }
  0x8a   :  { %13164 = dma.done.wait [#allocation6], 576  }
  0x8b   :  { %13165 = vsyncadd [#allocation6], 4294966720 }
  0x8c   :  { %13166 = dma.done.wait [#allocation9], 49344  }
  0x8d   :  { %13167 = vsyncadd [#allocation9], 4294917952 }
  0x8e   :  { %13168 = dma.done.wait [#allocation12], 98688  }
  0x8f   :  { %13169 = vsyncadd [#allocation12], 4294868608 }
  0x90   :  { %13170 = dma.done.wait [#allocation15], 32  }
  0x91   :  { %13171 = vsyncadd [#allocation15], 4294967264  ;;  %v13187_v0 = vmov 0   ;;  %v11166_v1 = vld [vmem:[#allocation5 + $0x4] ss:$16 sps:$4 sm:$0xff]   ;;  %v139_v3 = vld [vmem:[#allocation2] sm:$0xff] }
  0x92   :  { %223 = vmatprep.mubr.bf16.mxu0 %v13187_v0  ;;  %264 = vmatprep.mubr.bf16.mxu1 %v13187_v0  ;;  %v11168_v2 = vld [vmem:[#allocation5] ss:$16 sps:$4 sm:$0xff]   ;;  %v140_v4 = vpack.c.bf16 %v139_v3, %v139_v3  ;;  %v11169_v5 = vld [vmem:[#allocation5 + $0xc] ss:$16 sps:$4 sm:$0xff]   ;;  %v11171_v6 = vld [vmem:[#allocation5 + $0x8] ss:$16 sps:$4 sm:$0xff]  }
  0x93   :  { %191 = vmatprep.subr.bf16.mxu0 %v11166_v1  ;;  %vm187_vm0 = vcmask 130048   ;;  %v11172_v7 = vld [vmem:[#allocation8] ss:$16 sps:$4 sm:$0xff]   ;;  %232 = vmatprep.subr.bf16.mxu1 %v11169_v5  ;;  %v11174_v8 = vld [vmem:[#allocation8 + $0x4] ss:$16 sps:$4 sm:$0xff]   ;;  %vm9645_vm1 = vcmask 523264  }
  0x94   :  { %192 = vmatpush1.bf16.msra.mxu0 %v11168_v2  ;;  %233 = vmatpush1.bf16.msra.mxu1 %v11171_v6  ;;  %v11175_v9 = vld [vmem:[#allocation8 + $0x8] ss:$16 sps:$4 sm:$0xff]   ;;  %v11177_v10 = vld [vmem:[#allocation8 + $0xc] ss:$16 sps:$4 sm:$0xff]   ;;  %v11180_v11 = vld [vmem:[#allocation8 + $0x24] ss:$16 sps:$4 sm:$0xff]  }
  0x95   :  { %1071 = vmatprep.subr.bf16.mxu0 %v11174_v8  ;;  %1153 = vmatprep.subr.bf16.mxu1 %v11177_v10  ;;  %v11178_v12 = vld [vmem:[#allocation8 + $0x20] ss:$16 sps:$4 sm:$0xff]   ;;  %v11183_v13 = vld [vmem:[#allocation8 + $0x2c] ss:$16 sps:$4 sm:$0xff]   ;;  %v11181_v14 = vld [vmem:[#allocation8 + $0x28] ss:$16 sps:$4 sm:$0xff]  }
  0x96   :  { %v11186_v15 = vld [vmem:[#allocation8 + $0x44] ss:$16 sps:$4 sm:$0xff]   ;;  %v11189_v16 = vld [vmem:[#allocation8 + $0x4c] ss:$16 sps:$4 sm:$0xff]   ;;  %v11184_v17 = vld [vmem:[#allocation8 + $0x40] ss:$16 sps:$4 sm:$0xff]  }
  0x97   :  { %9671 = vmatmul.mubr.msk.bf16.vlgmr.msra.gmra.mrb[0].mxu0 %vm187_vm0, %v140_v4  ;;  %9672 = vmatmul.mubr.msk.bf16.vlgmr.msra.gmra.mrb[0].mxu1 %vm187_vm0, %v140_v4  ;;  %v11192_v18 = vld [vmem:[#allocation8 + $0x64] ss:$16 sps:$4 sm:$0xff]   ;;  %v11187_v19 = vld [vmem:[#allocation8 + $0x48] ss:$16 sps:$4 sm:$0xff]   ;;  %v11195_v20 = vld [vmem:[#allocation8 + $0x6c] ss:$16 sps:$4 sm:$0xff]  }
  0x98   :  { %1072 = vmatpush1.bf16.msra.mxu0 %v11172_v7  ;;  %1154 = vmatpush1.bf16.msra.mxu1 %v11175_v9  ;;  %v11190_v21 = vld [vmem:[#allocation8 + $0x60] ss:$16 sps:$4 sm:$0xff]   ;;  %v11198_v22 = vld [vmem:[#allocation8 + $0x84] ss:$16 sps:$4 sm:$0xff]   ;;  %v11193_v23 = vld [vmem:[#allocation8 + $0x68] ss:$16 sps:$4 sm:$0xff]   ;;  %v147_v9 = vlaneseq }
  0x99   :  { %1073 = vmatprep.subr.bf16.mxu0 %v11180_v11  ;;  %1155 = vmatprep.subr.bf16.mxu1 %v11183_v13  ;;  %v11201_v24 = vld [vmem:[#allocation8 + $0x8c] ss:$16 sps:$4 sm:$0xff]   ;;  %v11196_v25 = vld [vmem:[#allocation8 + $0x80] ss:$16 sps:$4 sm:$0xff]   ;;  %v11204_v26 = vld [vmem:[#allocation8 + $0xa4] ss:$16 sps:$4 sm:$0xff]  }
  0x9a   :  { %v11199_v27 = vld [vmem:[#allocation8 + $0x88] ss:$16 sps:$4 sm:$0xff]   ;;  %v11207_v28 = vld [vmem:[#allocation8 + $0xac] ss:$16 sps:$4 sm:$0xff]   ;;  %v11202_v29 = vld [vmem:[#allocation8 + $0xa0] ss:$16 sps:$4 sm:$0xff]  }
  0x9b   :  { %v11210_v30 = vld [vmem:[#allocation8 + $0xc4] ss:$16 sps:$4 sm:$0xff]   ;;  %v11205_v31 = vld [vmem:[#allocation8 + $0xa8] ss:$16 sps:$4 sm:$0xff]   ;;  %v11213_v32 = vld [vmem:[#allocation8 + $0xcc] ss:$16 sps:$4 sm:$0xff]  }
  0x9c   :  { %1074 = vmatpush1.bf16.msra.mxu0 %v11178_v12  ;;  %1156 = vmatpush1.bf16.msra.mxu1 %v11181_v14  ;;  %v11208_v33 = vld [vmem:[#allocation8 + $0xc0] ss:$16 sps:$4 sm:$0xff]   ;;  %v11216_v34 = vld [vmem:[#allocation8 + $0xe4] ss:$16 sps:$4 sm:$0xff]   ;;  %v11211_v35 = vld [vmem:[#allocation8 + $0xc8] ss:$16 sps:$4 sm:$0xff]  }
  0x9d   :  { %1075 = vmatprep.subr.bf16.mxu0 %v11186_v15  ;;  %1157 = vmatprep.subr.bf16.mxu1 %v11189_v16  ;;  %v11219_v36 = vld [vmem:[#allocation8 + $0xec] ss:$16 sps:$4 sm:$0xff]   ;;  %v11214_v37 = vld [vmem:[#allocation8 + $0xe0] ss:$16 sps:$4 sm:$0xff]   ;;  %v11222_v38 = vld [vmem:[#allocation8 + $0x104] ss:$16 sps:$4 sm:$0xff]  }
  0x9e   :  { %v11217_v39 = vld [vmem:[#allocation8 + $0xe8] ss:$16 sps:$4 sm:$0xff]   ;;  %v11225_v40 = vld [vmem:[#allocation8 + $0x10c] ss:$16 sps:$4 sm:$0xff]   ;;  %v11220_v41 = vld [vmem:[#allocation8 + $0x100] ss:$16 sps:$4 sm:$0xff]  }
  0x9f   :  { %v11228_v42 = vld [vmem:[#allocation8 + $0x124] ss:$16 sps:$4 sm:$0xff]   ;;  %v11223_v43 = vld [vmem:[#allocation8 + $0x108] ss:$16 sps:$4 sm:$0xff]   ;;  %v11226_v44 = vld [vmem:[#allocation8 + $0x120] ss:$16 sps:$4 sm:$0xff]  }
  0xa0   :  { %1076 = vmatpush1.bf16.msra.mxu0 %v11184_v17  ;;  %1158 = vmatpush1.bf16.msra.mxu1 %v11187_v19  ;;  %v11231_v45 = vld [vmem:[#allocation8 + $0x12c] ss:$16 sps:$4 sm:$0xff]   ;;  %v11229_v46 = vld [vmem:[#allocation8 + $0x128] ss:$16 sps:$4 sm:$0xff]   ;;  %v11234_v47 = vld [vmem:[#allocation8 + $0x144] ss:$16 sps:$4 sm:$0xff]  }
  0xa1   :  { %1077 = vmatprep.subr.bf16.mxu0 %v11192_v18  ;;  %1159 = vmatprep.subr.bf16.mxu1 %v11195_v20  ;;  %v11237_v48 = vld [vmem:[#allocation8 + $0x14c] ss:$16 sps:$4 sm:$0xff]   ;;  %v11232_v49 = vld [vmem:[#allocation8 + $0x140] ss:$16 sps:$4 sm:$0xff]   ;;  %v11240_v50 = vld [vmem:[#allocation8 + $0x164] ss:$16 sps:$4 sm:$0xff]  }
  0xa2   :  { %v11235_v51 = vld [vmem:[#allocation8 + $0x148] ss:$16 sps:$4 sm:$0xff]   ;;  %v11243_v52 = vld [vmem:[#allocation8 + $0x16c] ss:$16 sps:$4 sm:$0xff]   ;;  %v11238_v53 = vld [vmem:[#allocation8 + $0x160] ss:$16 sps:$4 sm:$0xff]  }
  0xa3   :  { %v11246_v54 = vld [vmem:[#allocation8 + $0x184] ss:$16 sps:$4 sm:$0xff]   ;;  %v11241_v55 = vld [vmem:[#allocation8 + $0x168] ss:$16 sps:$4 sm:$0xff]   ;;  %v11249_v56 = vld [vmem:[#allocation8 + $0x18c] ss:$16 sps:$4 sm:$0xff]  }
  0xa4   :  { %1078 = vmatpush1.bf16.msra.mxu0 %v11190_v21  ;;  %1160 = vmatpush1.bf16.msra.mxu1 %v11193_v23  ;;  %v11244_v57 = vld [vmem:[#allocation8 + $0x180] ss:$16 sps:$4 sm:$0xff]   ;;  %v11252_v58 = vld [vmem:[#allocation8 + $0x1a4] ss:$16 sps:$4 sm:$0xff]   ;;  %v11247_v59 = vld [vmem:[#allocation8 + $0x188] ss:$16 sps:$4 sm:$0xff]  }
  0xa5   :  { %1079 = vmatprep.subr.bf16.mxu0 %v11198_v22  ;;  %1161 = vmatprep.subr.bf16.mxu1 %v11201_v24  ;;  %v11255_v60 = vld [vmem:[#allocation8 + $0x1ac] ss:$16 sps:$4 sm:$0xff]   ;;  %v11250_v61 = vld [vmem:[#allocation8 + $0x1a0] ss:$16 sps:$4 sm:$0xff]   ;;  %v11253_v62 = vld [vmem:[#allocation8 + $0x1a8] ss:$16 sps:$4 sm:$0xff]  }
  0xa6   :  { %v11258_v63 = vld [vmem:[#allocation8 + $0x1c4] ss:$16 sps:$4 sm:$0xff]   ;;  %v11261_v0 = vld [vmem:[#allocation8 + $0x1cc] ss:$16 sps:$4 sm:$0xff]   ;;  %v11256_v1 = vld [vmem:[#allocation8 + $0x1c0] ss:$16 sps:$4 sm:$0xff]  }
  0xa7   :  { %v11259_v2 = vld [vmem:[#allocation8 + $0x1c8] ss:$16 sps:$4 sm:$0xff]   ;;  %v11264_v3 = vld [vmem:[#allocation8 + $0x1e4] ss:$16 sps:$4 sm:$0xff]   ;;  %v11267_v4 = vld [vmem:[#allocation8 + $0x1ec] ss:$16 sps:$4 sm:$0xff]  }
  0xa8   :  { %1080 = vmatpush1.bf16.msra.mxu0 %v11196_v25  ;;  %1162 = vmatpush1.bf16.msra.mxu1 %v11199_v27  ;;  %v11262_v5 = vld [vmem:[#allocation8 + $0x1e0] ss:$16 sps:$4 sm:$0xff]   ;;  %v11265_v6 = vld [vmem:[#allocation8 + $0x1e8] ss:$16 sps:$4 sm:$0xff]   ;;  %v11270_v7 = vld [vmem:[#allocation8 + $0x204] ss:$16 sps:$4 sm:$0xff]  }
  0xa9   :  { %1081 = vmatprep.subr.bf16.mxu0 %v11204_v26  ;;  %1163 = vmatprep.subr.bf16.mxu1 %v11207_v28  ;;  %v11273_v8 = vld [vmem:[#allocation8 + $0x20c] ss:$16 sps:$4 sm:$0xff]   ;;  %v13357_v10 = vshrl.u32 %v147_v9, 7  ;;  %v11268_v28 = vld [vmem:[#allocation8 + $0x200] ss:$16 sps:$4 sm:$0xff]  }
  0xaa   :  { %v13362_v12 = vld [vmem:[#allocation7] sm:$0xf]  ;;  %v11330_v9 = vld [vmem:[#allocation8 + $0x344] ss:$16 sps:$4 sm:$0xff]  }
  0xab   :  { %v13360_v11 = vsub.s32 0, %v13357_v10  ;;  %v13365_v13 = vsub.s32 1, %v13357_v10  ;;  %v13368_v14 = vsub.s32 3, %v13357_v10 }
  0xac   :  { %1082 = vmatpush1.bf16.msra.mxu0 %v11202_v29  ;;  %1164 = vmatpush1.bf16.msra.mxu1 %v11205_v31  ;;  %v11271_v29 = vld [vmem:[#allocation8 + $0x208] ss:$16 sps:$4 sm:$0xff]  }
  0xad   :  { %1083 = vmatprep.subr.bf16.mxu0 %v11210_v30  ;;  %1165 = vmatprep.subr.bf16.mxu1 %v11213_v32  ;;  %v150_v15 = vrot.slane %v13362_v12, %v13360_v11  ;;  %v154_v16 = vrot.slane %v13362_v12, %v13365_v13  ;;  %v162_v18 = vrot.slane %v13362_v12, %v13368_v14  ;;  %v11276_v32 = vld [vmem:[#allocation8 + $0x224] ss:$16 sps:$4 sm:$0xff]  }
  0xb0   :  { %1084 = vmatpush1.bf16.msra.mxu0 %v11208_v33  ;;  %1166 = vmatpush1.bf16.msra.mxu1 %v11211_v35  ;;  %v11279_v33 = vld [vmem:[#allocation8 + $0x22c] ss:$16 sps:$4 sm:$0xff]  }
  0xb1   :  { %1085 = vmatprep.subr.bf16.mxu0 %v11216_v34  ;;  %1167 = vmatprep.subr.bf16.mxu1 %v11219_v36 }
  0xb4   :  { %1086 = vmatpush1.bf16.msra.mxu0 %v11214_v37  ;;  %1168 = vmatpush1.bf16.msra.mxu1 %v11217_v39  ;;  %v11277_v39 = vld [vmem:[#allocation8 + $0x228] ss:$16 sps:$4 sm:$0xff]  }
  0xb5   :  { %1087 = vmatprep.subr.bf16.mxu0 %v11222_v38  ;;  %1169 = vmatprep.subr.bf16.mxu1 %v11225_v40  ;;  %v11274_v38 = vld [vmem:[#allocation8 + $0x220] ss:$16 sps:$4 sm:$0xff]  }
  0xb8   :  { %1088 = vmatpush1.bf16.msra.mxu0 %v11220_v41  ;;  %1170 = vmatpush1.bf16.msra.mxu1 %v11223_v43  ;;  %v11282_v41 = vld [vmem:[#allocation8 + $0x244] ss:$16 sps:$4 sm:$0xff]   ;;  %v11280_v43 = vld [vmem:[#allocation8 + $0x240] ss:$16 sps:$4 sm:$0xff]  }
  0xb9   :  { %1089 = vmatprep.subr.bf16.mxu0 %v11228_v42  ;;  %1171 = vmatprep.subr.bf16.mxu1 %v11231_v45  ;;  %v11285_v42 = vld [vmem:[#allocation8 + $0x24c] ss:$16 sps:$4 sm:$0xff]   ;;  %v11288_v45 = vld [vmem:[#allocation8 + $0x264] ss:$16 sps:$4 sm:$0xff]  }
  0xbc   :  { %1090 = vmatpush1.bf16.msra.mxu0 %v11226_v44  ;;  %1172 = vmatpush1.bf16.msra.mxu1 %v11229_v46  ;;  %v11283_v44 = vld [vmem:[#allocation8 + $0x248] ss:$16 sps:$4 sm:$0xff]   ;;  %v11291_v46 = vld [vmem:[#allocation8 + $0x26c] ss:$16 sps:$4 sm:$0xff]  }
  0xbd   :  { %1091 = vmatprep.subr.bf16.mxu0 %v11234_v47  ;;  %1173 = vmatprep.subr.bf16.mxu1 %v11237_v48  ;;  %v11286_v47 = vld [vmem:[#allocation8 + $0x260] ss:$16 sps:$4 sm:$0xff]   ;;  %v11289_v48 = vld [vmem:[#allocation8 + $0x268] ss:$16 sps:$4 sm:$0xff]  }
  0xc0   :  { %1092 = vmatpush1.bf16.msra.mxu0 %v11232_v49  ;;  %1174 = vmatpush1.bf16.msra.mxu1 %v11235_v51  ;;  %v11294_v49 = vld [vmem:[#allocation8 + $0x284] ss:$16 sps:$4 sm:$0xff]   ;;  %v11292_v51 = vld [vmem:[#allocation8 + $0x280] ss:$16 sps:$4 sm:$0xff]  }
  0xc1   :  { %1093 = vmatprep.subr.bf16.mxu0 %v11240_v50  ;;  %1175 = vmatprep.subr.bf16.mxu1 %v11243_v52  ;;  %v11297_v50 = vld [vmem:[#allocation8 + $0x28c] ss:$16 sps:$4 sm:$0xff]   ;;  %v11295_v52 = vld [vmem:[#allocation8 + $0x288] ss:$16 sps:$4 sm:$0xff]  }
  0xc4   :  { %1094 = vmatpush1.bf16.msra.mxu0 %v11238_v53  ;;  %1176 = vmatpush1.bf16.msra.mxu1 %v11241_v55  ;;  %v11300_v53 = vld [vmem:[#allocation8 + $0x2a4] ss:$16 sps:$4 sm:$0xff]   ;;  %v11298_v55 = vld [vmem:[#allocation8 + $0x2a0] ss:$16 sps:$4 sm:$0xff]  }
  0xc5   :  { %1095 = vmatprep.subr.bf16.mxu0 %v11246_v54  ;;  %1177 = vmatprep.subr.bf16.mxu1 %v11249_v56  ;;  %v11303_v54 = vld [vmem:[#allocation8 + $0x2ac] ss:$16 sps:$4 sm:$0xff]   ;;  %v11301_v56 = vld [vmem:[#allocation8 + $0x2a8] ss:$16 sps:$4 sm:$0xff]  }
  0xc8   :  { %1096 = vmatpush1.bf16.msra.mxu0 %v11244_v57  ;;  %1178 = vmatpush1.bf16.msra.mxu1 %v11247_v59  ;;  %v11306_v57 = vld [vmem:[#allocation8 + $0x2c4] ss:$16 sps:$4 sm:$0xff]   ;;  %v11304_v59 = vld [vmem:[#allocation8 + $0x2c0] ss:$16 sps:$4 sm:$0xff]  }
  0xc9   :  { %1097 = vmatprep.subr.bf16.mxu0 %v11252_v58  ;;  %1179 = vmatprep.subr.bf16.mxu1 %v11255_v60  ;;  %v11309_v58 = vld [vmem:[#allocation8 + $0x2cc] ss:$16 sps:$4 sm:$0xff]   ;;  %v11307_v60 = vld [vmem:[#allocation8 + $0x2c8] ss:$16 sps:$4 sm:$0xff]  }
  0xcc   :  { %1098 = vmatpush1.bf16.msra.mxu0 %v11250_v61  ;;  %1180 = vmatpush1.bf16.msra.mxu1 %v11253_v62  ;;  %v11312_v61 = vld [vmem:[#allocation8 + $0x2e4] ss:$16 sps:$4 sm:$0xff]   ;;  %v11315_v62 = vld [vmem:[#allocation8 + $0x2ec] ss:$16 sps:$4 sm:$0xff]  }
  0xcd   :  { %1099 = vmatprep.subr.bf16.mxu0 %v11258_v63  ;;  %1181 = vmatprep.subr.bf16.mxu1 %v11261_v0  ;;  %v11310_v63 = vld [vmem:[#allocation8 + $0x2e0] ss:$16 sps:$4 sm:$0xff]   ;;  %v11313_v0 = vld [vmem:[#allocation8 + $0x2e8] ss:$16 sps:$4 sm:$0xff]  }
  0xd0   :  { %1100 = vmatpush1.bf16.msra.mxu0 %v11256_v1  ;;  %1182 = vmatpush1.bf16.msra.mxu1 %v11259_v2  ;;  %v11318_v1 = vld [vmem:[#allocation8 + $0x304] ss:$16 sps:$4 sm:$0xff]   ;;  %v11321_v2 = vld [vmem:[#allocation8 + $0x30c] ss:$16 sps:$4 sm:$0xff]  }
  0xd1   :  { %1101 = vmatprep.subr.bf16.mxu0 %v11264_v3  ;;  %1183 = vmatprep.subr.bf16.mxu1 %v11267_v4  ;;  %v11316_v3 = vld [vmem:[#allocation8 + $0x300] ss:$16 sps:$4 sm:$0xff]   ;;  %v11319_v4 = vld [vmem:[#allocation8 + $0x308] ss:$16 sps:$4 sm:$0xff]  }
  0xd4   :  { %1102 = vmatpush1.bf16.msra.mxu0 %v11262_v5  ;;  %1184 = vmatpush1.bf16.msra.mxu1 %v11265_v6  ;;  %v11324_v5 = vld [vmem:[#allocation8 + $0x324] ss:$16 sps:$4 sm:$0xff]   ;;  %v11327_v6 = vld [vmem:[#allocation8 + $0x32c] ss:$16 sps:$4 sm:$0xff]  }
  0xd5   :  { %1112 = vmatprep.subr.bf16.mxu0 %v11270_v7  ;;  %1194 = vmatprep.subr.bf16.mxu1 %v11273_v8  ;;  %v11322_v7 = vld [vmem:[#allocation8 + $0x320] ss:$16 sps:$4 sm:$0xff]   ;;  %v11325_v8 = vld [vmem:[#allocation8 + $0x328] ss:$16 sps:$4 sm:$0xff]  }
 0x16a   :  { %v225_v17 = vpop.f32.mrb[0].mxu0  ;;  %v13376_v23 = vpop.f32.mrb[0].mxu1 }
 0x16b   :  { %v226_v19 = vadd.f32 %v225_v17, %v150_v15  ;;  %v227_v20 = vpop.f32.mrb[1].mxu0  ;;  %v268_v26 = vpop.f32.mrb[1].mxu1  ;;  %v11333_v15 = vld [vmem:[#allocation8 + $0x34c] ss:$16 sps:$4 sm:$0xff]   ;;  %v11331_v17 = vld [vmem:[#allocation8 + $0x348] ss:$16 sps:$4 sm:$0xff]  }
 0x16c   :  { %v228_v21 = vadd.f32 %v227_v20, %v154_v16  ;;  %v229_v22 = vpop.f32.mrb[2].mxu0  ;;  %v269_v30 = vadd.f32 %v268_v26, %v162_v18  ;;  %v270_v31 = vpop.f32.mrb[2].mxu1  ;;  %v11328_v16 = vld [vmem:[#allocation8 + $0x340] ss:$16 sps:$4 sm:$0xff]   ;;  %v11336_v18 = vld [vmem:[#allocation8 + $0x364] ss:$16 sps:$4 sm:$0xff]  }
 0x16d   :  { %v273_v24 = vmax.f32 %v226_v19, 0.0  ;;  %v230_v25 = vpop.f32.mrb[3].mxu0  ;;  %v271_v34 = vpop.f32.mrb[3].mxu1  ;;  %v11339_v19 = vld [vmem:[#allocation8 + $0x36c] ss:$16 sps:$4 sm:$0xff]  }
 0x16e   :  { %v274_v27 = vmax.f32 %v228_v21, 0.0  ;;  %v276_v36 = vmax.f32 %v269_v30, 0.0  ;;  %v11334_v20 = vld [vmem:[#allocation8 + $0x360] ss:$16 sps:$4 sm:$0xff]   ;;  %v11337_v21 = vld [vmem:[#allocation8 + $0x368] ss:$16 sps:$4 sm:$0xff]  }
 0x16f   :  { %v277_v37 = vpack.c.bf16 %v273_v24, %v273_v24  ;;  %v11342_v22 = vld [vmem:[#allocation8 + $0x384] ss:$16 sps:$4 sm:$0xff]   ;;  %v11345_v24 = vld [vmem:[#allocation8 + $0x38c] ss:$16 sps:$4 sm:$0xff]   ;;  %v11340_v25 = vld [vmem:[#allocation8 + $0x380] ss:$16 sps:$4 sm:$0xff]  }
 0x170   :  { %v278_v35 = vpack.c.bf16 %v274_v27, %v274_v27  ;;  %v280_v40 = vpack.c.bf16 %v276_v36, %v276_v36  ;;  %v11343_v26 = vld [vmem:[#allocation8 + $0x388] ss:$16 sps:$4 sm:$0xff]   ;;  %v11348_v27 = vld [vmem:[#allocation8 + $0x3a4] ss:$16 sps:$4 sm:$0xff]   ;;  %v11346_v30 = vld [vmem:[#allocation8 + $0x3a0] ss:$16 sps:$4 sm:$0xff]  }
 0x171   :  { %v11349_v31 = vld [vmem:[#allocation8 + $0x3a8] ss:$16 sps:$4 sm:$0xff]  }
 0x172   :  { %1103 = vmatprep.mubr.bf16.mxu0 %v278_v35  ;;  %1185 = vmatprep.mubr.bf16.mxu1 %v278_v35  ;;  %v11352_v35 = vld [vmem:[#allocation8 + $0x3c0] ss:$16 sps:$4 sm:$0xff]   ;;  %v11355_v36 = vld [vmem:[#allocation8 + $0x3c8] ss:$16 sps:$4 sm:$0xff]  }
 0x173   :  { %1104 = vmatmul.mubr.bf16.vlgmr.msra.gmra.mrb[4].mxu0 %v277_v37  ;;  %1186 = vmatmul.mubr.bf16.vlgmr.msra.gmra.mrb[4].mxu1 %v277_v37  ;;  %v11360_v37 = vld [vmem:[#allocation8 + $0x3e4] ss:$16 sps:$4 sm:$0xff]  }
 0x174   :  { %1113 = vmatpush1.bf16.msra.mxu0 %v11268_v28  ;;  %1195 = vmatpush1.bf16.msra.mxu1 %v11271_v29  ;;  %v11351_v28 = vld [vmem:[#allocation8 + $0x3ac] ss:$16 sps:$4 sm:$0xff]   ;;  %v13379_v29 = vsub.s32 2, %v13357_v10 }
 0x175   :  { %1114 = vmatprep.subr.bf16.mxu0 %v11276_v32  ;;  %1196 = vmatprep.subr.bf16.mxu1 %v11279_v33  ;;  %v11354_v32 = vld [vmem:[#allocation8 + $0x3c4] ss:$16 sps:$4 sm:$0xff]   ;;  %v11357_v33 = vld [vmem:[#allocation8 + $0x3cc] ss:$16 sps:$4 sm:$0xff]  }
 0x176   :  { %1144 = vmatprep.mubr.bf16.mxu0 %v280_v40  ;;  %1226 = vmatprep.mubr.bf16.mxu1 %v280_v40  ;;  %v158_v34 = vrot.slane %v13362_v12, %v13379_v29  ;;  %v11361_v40 = vld [vmem:[#allocation8 + $0x3e8] ss:$16 sps:$4 sm:$0xff]   ;;  %v11364_v12 = vld [vmem:[#allocation8 + $0x400] ss:$16 sps:$4 sm:$0xff]  }
 0x178   :  { %1115 = vmatpush1.bf16.msra.mxu0 %v11274_v38  ;;  %1197 = vmatpush1.bf16.msra.mxu1 %v11277_v39  ;;  %v11363_v38 = vld [vmem:[#allocation8 + $0x3ec] ss:$16 sps:$4 sm:$0xff]   ;;  %v267_v10 = vadd.f32 %v13376_v23, %v158_v34  ;;  %v11358_v39 = vld [vmem:[#allocation8 + $0x3e0] ss:$16 sps:$4 sm:$0xff]  }
 0x179   :  { %1116 = vmatprep.subr.bf16.mxu0 %v11282_v41  ;;  %1198 = vmatprep.subr.bf16.mxu1 %v11285_v42  ;;  %v11366_v41 = vld [vmem:[#allocation8 + $0x404] ss:$16 sps:$4 sm:$0xff]   ;;  %v11369_v42 = vld [vmem:[#allocation8 + $0x40c] ss:$16 sps:$4 sm:$0xff]   ;;  %v11370_v23 = vld [vmem:[#allocation8 + $0x420] ss:$16 sps:$4 sm:$0xff]  }
 0x17a   :  { %v11436_v34 = vld [vmem:[#allocation8 + $0x580] ss:$16 sps:$4 sm:$0xff]  }
 0x17c   :  { %1117 = vmatpush1.bf16.msra.mxu0 %v11280_v43  ;;  %1199 = vmatpush1.bf16.msra.mxu1 %v11283_v44  ;;  %v275_v43 = vmax.f32 %v267_v10, 0.0  ;;  %v11367_v44 = vld [vmem:[#allocation8 + $0x408] ss:$16 sps:$4 sm:$0xff]  }
 0x17d   :  { %1118 = vmatprep.subr.bf16.mxu0 %v11288_v45  ;;  %1200 = vmatprep.subr.bf16.mxu1 %v11291_v46  ;;  %v11372_v45 = vld [vmem:[#allocation8 + $0x424] ss:$16 sps:$4 sm:$0xff]   ;;  %v11375_v46 = vld [vmem:[#allocation8 + $0x42c] ss:$16 sps:$4 sm:$0xff]   ;;  %v11445_v10 = vld [vmem:[#allocation8 + $0x5a8] ss:$16 sps:$4 sm:$0xff]  }
 0x180   :  { %1119 = vmatpush1.bf16.msra.mxu0 %v11286_v47  ;;  %1201 = vmatpush1.bf16.msra.mxu1 %v11289_v48  ;;  %v279_v47 = vpack.c.bf16 %v275_v43, %v275_v43  ;;  %v11373_v48 = vld [vmem:[#allocation8 + $0x428] ss:$16 sps:$4 sm:$0xff]   ;;  %v11456_v43 = vld [vmem:[#allocation8 + $0x5e4] ss:$16 sps:$4 sm:$0xff]  }
 0x181   :  { %1120 = vmatprep.subr.bf16.mxu0 %v11294_v49  ;;  %1202 = vmatprep.subr.bf16.mxu1 %v11297_v50  ;;  %v11378_v49 = vld [vmem:[#allocation8 + $0x444] ss:$16 sps:$4 sm:$0xff]   ;;  %v11381_v50 = vld [vmem:[#allocation8 + $0x44c] ss:$16 sps:$4 sm:$0xff]  }
 0x184   :  { %1121 = vmatpush1.bf16.msra.mxu0 %v11292_v51  ;;  %1203 = vmatpush1.bf16.msra.mxu1 %v11295_v52  ;;  %v11376_v51 = vld [vmem:[#allocation8 + $0x440] ss:$16 sps:$4 sm:$0xff]   ;;  %v11379_v52 = vld [vmem:[#allocation8 + $0x448] ss:$16 sps:$4 sm:$0xff]  }
 0x185   :  { %1122 = vmatprep.subr.bf16.mxu0 %v11300_v53  ;;  %1204 = vmatprep.subr.bf16.mxu1 %v11303_v54  ;;  %v11384_v53 = vld [vmem:[#allocation8 + $0x464] ss:$16 sps:$4 sm:$0xff]   ;;  %v11387_v54 = vld [vmem:[#allocation8 + $0x46c] ss:$16 sps:$4 sm:$0xff]  }
 0x188   :  { %1123 = vmatpush1.bf16.msra.mxu0 %v11298_v55  ;;  %1205 = vmatpush1.bf16.msra.mxu1 %v11301_v56  ;;  %v11382_v55 = vld [vmem:[#allocation8 + $0x460] ss:$16 sps:$4 sm:$0xff]   ;;  %v11385_v56 = vld [vmem:[#allocation8 + $0x468] ss:$16 sps:$4 sm:$0xff]  }
 0x189   :  { %1124 = vmatprep.subr.bf16.mxu0 %v11306_v57  ;;  %1206 = vmatprep.subr.bf16.mxu1 %v11309_v58  ;;  %v11390_v57 = vld [vmem:[#allocation8 + $0x484] ss:$16 sps:$4 sm:$0xff]   ;;  %v11393_v58 = vld [vmem:[#allocation8 + $0x48c] ss:$16 sps:$4 sm:$0xff]  }
 0x18c   :  { %1125 = vmatpush1.bf16.msra.mxu0 %v11304_v59  ;;  %1207 = vmatpush1.bf16.msra.mxu1 %v11307_v60  ;;  %v11388_v59 = vld [vmem:[#allocation8 + $0x480] ss:$16 sps:$4 sm:$0xff]   ;;  %v11391_v60 = vld [vmem:[#allocation8 + $0x488] ss:$16 sps:$4 sm:$0xff]  }
 0x18d   :  { %1126 = vmatprep.subr.bf16.mxu0 %v11312_v61  ;;  %1208 = vmatprep.subr.bf16.mxu1 %v11315_v62  ;;  %v11396_v61 = vld [vmem:[#allocation8 + $0x4a4] ss:$16 sps:$4 sm:$0xff]   ;;  %v11399_v62 = vld [vmem:[#allocation8 + $0x4ac] ss:$16 sps:$4 sm:$0xff]  }
 0x190   :  { %1127 = vmatpush1.bf16.msra.mxu0 %v11310_v63  ;;  %1209 = vmatpush1.bf16.msra.mxu1 %v11313_v0  ;;  %v11394_v63 = vld [vmem:[#allocation8 + $0x4a0] ss:$16 sps:$4 sm:$0xff]   ;;  %v11397_v0 = vld [vmem:[#allocation8 + $0x4a8] ss:$16 sps:$4 sm:$0xff]  }
 0x191   :  { %1128 = vmatprep.subr.bf16.mxu0 %v11318_v1  ;;  %1210 = vmatprep.subr.bf16.mxu1 %v11321_v2  ;;  %v11402_v1 = vld [vmem:[#allocation8 + $0x4c4] ss:$16 sps:$4 sm:$0xff]   ;;  %v11405_v2 = vld [vmem:[#allocation8 + $0x4cc] ss:$16 sps:$4 sm:$0xff]  }
 0x194   :  { %1129 = vmatpush1.bf16.msra.mxu0 %v11316_v3  ;;  %1211 = vmatpush1.bf16.msra.mxu1 %v11319_v4  ;;  %v11400_v3 = vld [vmem:[#allocation8 + $0x4c0] ss:$16 sps:$4 sm:$0xff]   ;;  %v11403_v4 = vld [vmem:[#allocation8 + $0x4c8] ss:$16 sps:$4 sm:$0xff]  }
 0x195   :  { %1130 = vmatprep.subr.bf16.mxu0 %v11324_v5  ;;  %1212 = vmatprep.subr.bf16.mxu1 %v11327_v6  ;;  %v11408_v5 = vld [vmem:[#allocation8 + $0x4e4] ss:$16 sps:$4 sm:$0xff]   ;;  %v11411_v6 = vld [vmem:[#allocation8 + $0x4ec] ss:$16 sps:$4 sm:$0xff]  }
 0x198   :  { %1131 = vmatpush1.bf16.msra.mxu0 %v11322_v7  ;;  %1213 = vmatpush1.bf16.msra.mxu1 %v11325_v8  ;;  %v11406_v7 = vld [vmem:[#allocation8 + $0x4e0] ss:$16 sps:$4 sm:$0xff]   ;;  %v11409_v8 = vld [vmem:[#allocation8 + $0x4e8] ss:$16 sps:$4 sm:$0xff]  }
 0x199   :  { %1132 = vmatprep.subr.bf16.mxu0 %v11330_v9  ;;  %1214 = vmatprep.subr.bf16.mxu1 %v11333_v15  ;;  %v11414_v9 = vld [vmem:[#allocation8 + $0x504] ss:$16 sps:$4 sm:$0xff]   ;;  %v11417_v15 = vld [vmem:[#allocation8 + $0x50c] ss:$16 sps:$4 sm:$0xff]  }
 0x19c   :  { %1133 = vmatpush1.bf16.msra.mxu0 %v11328_v16  ;;  %1215 = vmatpush1.bf16.msra.mxu1 %v11331_v17  ;;  %v11412_v16 = vld [vmem:[#allocation8 + $0x500] ss:$16 sps:$4 sm:$0xff]   ;;  %v11415_v17 = vld [vmem:[#allocation8 + $0x508] ss:$16 sps:$4 sm:$0xff]  }
 0x19d   :  { %1134 = vmatprep.subr.bf16.mxu0 %v11336_v18  ;;  %1216 = vmatprep.subr.bf16.mxu1 %v11339_v19  ;;  %v11420_v18 = vld [vmem:[#allocation8 + $0x524] ss:$16 sps:$4 sm:$0xff]   ;;  %v11423_v19 = vld [vmem:[#allocation8 + $0x52c] ss:$16 sps:$4 sm:$0xff]  }
 0x1a0   :  { %1135 = vmatpush1.bf16.msra.mxu0 %v11334_v20  ;;  %1217 = vmatpush1.bf16.msra.mxu1 %v11337_v21  ;;  %v11418_v20 = vld [vmem:[#allocation8 + $0x520] ss:$16 sps:$4 sm:$0xff]   ;;  %v11421_v21 = vld [vmem:[#allocation8 + $0x528] ss:$16 sps:$4 sm:$0xff]  }
 0x1a1   :  { %1136 = vmatprep.subr.bf16.mxu0 %v11342_v22  ;;  %1218 = vmatprep.subr.bf16.mxu1 %v11345_v24  ;;  %v11426_v22 = vld [vmem:[#allocation8 + $0x544] ss:$16 sps:$4 sm:$0xff]   ;;  %v11429_v24 = vld [vmem:[#allocation8 + $0x54c] ss:$16 sps:$4 sm:$0xff]  }
 0x1a4   :  { %1137 = vmatpush1.bf16.msra.mxu0 %v11340_v25  ;;  %1219 = vmatpush1.bf16.msra.mxu1 %v11343_v26  ;;  %v11424_v25 = vld [vmem:[#allocation8 + $0x540] ss:$16 sps:$4 sm:$0xff]   ;;  %v11427_v26 = vld [vmem:[#allocation8 + $0x548] ss:$16 sps:$4 sm:$0xff]  }
 0x1a5   :  { %1138 = vmatprep.subr.bf16.mxu0 %v11348_v27  ;;  %1220 = vmatprep.subr.bf16.mxu1 %v11351_v28  ;;  %v11432_v27 = vld [vmem:[#allocation8 + $0x564] ss:$16 sps:$4 sm:$0xff]   ;;  %v11435_v28 = vld [vmem:[#allocation8 + $0x56c] ss:$16 sps:$4 sm:$0xff]  }
 0x1a8   :  { %1139 = vmatpush1.bf16.msra.mxu0 %v11346_v30  ;;  %1221 = vmatpush1.bf16.msra.mxu1 %v11349_v31  ;;  %v11430_v30 = vld [vmem:[#allocation8 + $0x560] ss:$16 sps:$4 sm:$0xff]   ;;  %v11433_v31 = vld [vmem:[#allocation8 + $0x568] ss:$16 sps:$4 sm:$0xff]  }
 0x1a9   :  { %1140 = vmatprep.subr.bf16.mxu0 %v11354_v32  ;;  %1222 = vmatprep.subr.bf16.mxu1 %v11357_v33  ;;  %v11438_v32 = vld [vmem:[#allocation8 + $0x584] ss:$16 sps:$4 sm:$0xff]   ;;  %v11441_v33 = vld [vmem:[#allocation8 + $0x58c] ss:$16 sps:$4 sm:$0xff]  }
 0x1ac   :  { %1141 = vmatpush1.bf16.msra.mxu0 %v11352_v35  ;;  %1223 = vmatpush1.bf16.msra.mxu1 %v11355_v36  ;;  %v11439_v35 = vld [vmem:[#allocation8 + $0x588] ss:$16 sps:$4 sm:$0xff]   ;;  %v11444_v36 = vld [vmem:[#allocation8 + $0x5a4] ss:$16 sps:$4 sm:$0xff]  }
 0x1ad   :  { %1142 = vmatprep.subr.bf16.mxu0 %v11360_v37  ;;  %1224 = vmatprep.subr.bf16.mxu1 %v11363_v38  ;;  %v11447_v37 = vld [vmem:[#allocation8 + $0x5ac] ss:$16 sps:$4 sm:$0xff]   ;;  %v11442_v38 = vld [vmem:[#allocation8 + $0x5a0] ss:$16 sps:$4 sm:$0xff]  }
 0x1b0   :  { %1143 = vmatpush1.bf16.msra.mxu0 %v11358_v39  ;;  %1225 = vmatpush1.bf16.msra.mxu1 %v11361_v40  ;;  %v11450_v39 = vld [vmem:[#allocation8 + $0x5c4] ss:$16 sps:$4 sm:$0xff]   ;;  %v11453_v40 = vld [vmem:[#allocation8 + $0x5cc] ss:$16 sps:$4 sm:$0xff]  }
 0x1b1   :  { %2035 = vmatprep.subr.bf16.mxu0 %v11366_v41  ;;  %2117 = vmatprep.subr.bf16.mxu1 %v11369_v42  ;;  %v11448_v41 = vld [vmem:[#allocation8 + $0x5c0] ss:$16 sps:$4 sm:$0xff]   ;;  %v11451_v42 = vld [vmem:[#allocation8 + $0x5c8] ss:$16 sps:$4 sm:$0xff]  }
 0x1b3   :  { %1145 = vmatmul.mubr.bf16.vlgmr.msra.gmra.mrb[4].mxu0 %v279_v47  ;;  %1227 = vmatmul.mubr.bf16.vlgmr.msra.gmra.mrb[4].mxu1 %v279_v47  ;;  %v11465_v47 = vld [vmem:[#allocation8 + $0x60c] ss:$16 sps:$4 sm:$0xff]  }
 0x1b4   :  { %2036 = vmatpush1.bf16.msra.mxu0 %v11364_v12  ;;  %2118 = vmatpush1.bf16.msra.mxu1 %v11367_v44  ;;  %v11459_v12 = vld [vmem:[#allocation8 + $0x5ec] ss:$16 sps:$4 sm:$0xff]   ;;  %v11454_v44 = vld [vmem:[#allocation8 + $0x5e0] ss:$16 sps:$4 sm:$0xff]  }
 0x1b5   :  { %2037 = vmatprep.subr.bf16.mxu0 %v11372_v45  ;;  %2119 = vmatprep.subr.bf16.mxu1 %v11375_v46  ;;  %v11457_v45 = vld [vmem:[#allocation8 + $0x5e8] ss:$16 sps:$4 sm:$0xff]   ;;  %v11462_v46 = vld [vmem:[#allocation8 + $0x604] ss:$16 sps:$4 sm:$0xff]  }
 0x1b8   :  { %2038 = vmatpush1.bf16.msra.mxu0 %v11370_v23  ;;  %2120 = vmatpush1.bf16.msra.mxu1 %v11373_v48  ;;  %v13384_v23 = vld [vmem:[#allocation10] sm:$0xf] }
 0x1b9   :  { %2039 = vmatprep.subr.bf16.mxu0 %v11378_v49  ;;  %2121 = vmatprep.subr.bf16.mxu1 %v11381_v50  ;;  %v414_v48 = vrot.slane %v13384_v23, %v13360_v11  ;;  %v418_v49 = vrot.slane %v13384_v23, %v13365_v13  ;;  %v426_v50 = vrot.slane %v13384_v23, %v13368_v14 }
 0x1bc   :  { %2040 = vmatpush1.bf16.msra.mxu0 %v11376_v51  ;;  %2122 = vmatpush1.bf16.msra.mxu1 %v11379_v52 }
 0x1bd   :  { %2041 = vmatprep.subr.bf16.mxu0 %v11384_v53  ;;  %2123 = vmatprep.subr.bf16.mxu1 %v11387_v54 }
 0x1c0   :  { %2042 = vmatpush1.bf16.msra.mxu0 %v11382_v55  ;;  %2124 = vmatpush1.bf16.msra.mxu1 %v11385_v56 }
 0x1c1   :  { %2043 = vmatprep.subr.bf16.mxu0 %v11390_v57  ;;  %2125 = vmatprep.subr.bf16.mxu1 %v11393_v58 }
 0x1c4   :  { %2044 = vmatpush1.bf16.msra.mxu0 %v11388_v59  ;;  %2126 = vmatpush1.bf16.msra.mxu1 %v11391_v60 }
 0x1c5   :  { %2045 = vmatprep.subr.bf16.mxu0 %v11396_v61  ;;  %2127 = vmatprep.subr.bf16.mxu1 %v11399_v62 }
 0x1c8   :  { %2046 = vmatpush1.bf16.msra.mxu0 %v11394_v63  ;;  %2128 = vmatpush1.bf16.msra.mxu1 %v11397_v0  ;;  %v11460_v0 = vld [vmem:[#allocation8 + $0x600] ss:$16 sps:$4 sm:$0xff]  }
 0x1c9   :  { %2047 = vmatprep.subr.bf16.mxu0 %v11402_v1  ;;  %2129 = vmatprep.subr.bf16.mxu1 %v11405_v2  ;;  %v11463_v1 = vld [vmem:[#allocation8 + $0x608] ss:$16 sps:$4 sm:$0xff]  }
 0x1cc   :  { %2048 = vmatpush1.bf16.msra.mxu0 %v11400_v3  ;;  %2130 = vmatpush1.bf16.msra.mxu1 %v11403_v4  ;;  %v11468_v4 = vld [vmem:[#allocation8 + $0x624] ss:$16 sps:$4 sm:$0xff]  }
 0x1cd   :  { %2049 = vmatprep.subr.bf16.mxu0 %v11408_v5  ;;  %2131 = vmatprep.subr.bf16.mxu1 %v11411_v6  ;;  %v11471_v5 = vld [vmem:[#allocation8 + $0x62c] ss:$16 sps:$4 sm:$0xff]  }
 0x1d0   :  { %2050 = vmatpush1.bf16.msra.mxu0 %v11406_v7  ;;  %2132 = vmatpush1.bf16.msra.mxu1 %v11409_v8  ;;  %v11466_v7 = vld [vmem:[#allocation8 + $0x620] ss:$16 sps:$4 sm:$0xff]   ;;  %v11469_v8 = vld [vmem:[#allocation8 + $0x628] ss:$16 sps:$4 sm:$0xff]  }
 0x1d1   :  { %2051 = vmatprep.subr.bf16.mxu0 %v11414_v9  ;;  %2133 = vmatprep.subr.bf16.mxu1 %v11417_v15  ;;  %v11474_v15 = vld [vmem:[#allocation8 + $0x644] ss:$16 sps:$4 sm:$0xff]  }
 0x1d4   :  { %2052 = vmatpush1.bf16.msra.mxu0 %v11412_v16  ;;  %2134 = vmatpush1.bf16.msra.mxu1 %v11415_v17  ;;  %v11477_v16 = vld [vmem:[#allocation8 + $0x64c] ss:$16 sps:$4 sm:$0xff]   ;;  %v11472_v17 = vld [vmem:[#allocation8 + $0x640] ss:$16 sps:$4 sm:$0xff]  }
 0x1d5   :  { %2053 = vmatprep.subr.bf16.mxu0 %v11420_v18  ;;  %2135 = vmatprep.subr.bf16.mxu1 %v11423_v19  ;;  %v11475_v18 = vld [vmem:[#allocation8 + $0x648] ss:$16 sps:$4 sm:$0xff]   ;;  %v11480_v19 = vld [vmem:[#allocation8 + $0x664] ss:$16 sps:$4 sm:$0xff]  }
 0x1d8   :  { %2054 = vmatpush1.bf16.msra.mxu0 %v11418_v20  ;;  %2136 = vmatpush1.bf16.msra.mxu1 %v11421_v21  ;;  %v11483_v20 = vld [vmem:[#allocation8 + $0x66c] ss:$16 sps:$4 sm:$0xff]   ;;  %v11478_v21 = vld [vmem:[#allocation8 + $0x660] ss:$16 sps:$4 sm:$0xff]  }
 0x1d9   :  { %2055 = vmatprep.subr.bf16.mxu0 %v11426_v22  ;;  %2137 = vmatprep.subr.bf16.mxu1 %v11429_v24  ;;  %v11481_v22 = vld [vmem:[#allocation8 + $0x668] ss:$16 sps:$4 sm:$0xff]   ;;  %v11486_v24 = vld [vmem:[#allocation8 + $0x684] ss:$16 sps:$4 sm:$0xff]  }
 0x1dc   :  { %2056 = vmatpush1.bf16.msra.mxu0 %v11424_v25  ;;  %2138 = vmatpush1.bf16.msra.mxu1 %v11427_v26  ;;  %v11489_v25 = vld [vmem:[#allocation8 + $0x68c] ss:$16 sps:$4 sm:$0xff]   ;;  %v11484_v26 = vld [vmem:[#allocation8 + $0x680] ss:$16 sps:$4 sm:$0xff]  }
 0x1dd   :  { %2057 = vmatprep.subr.bf16.mxu0 %v11432_v27  ;;  %2139 = vmatprep.subr.bf16.mxu1 %v11435_v28  ;;  %v11487_v27 = vld [vmem:[#allocation8 + $0x688] ss:$16 sps:$4 sm:$0xff]   ;;  %v11492_v28 = vld [vmem:[#allocation8 + $0x6a4] ss:$16 sps:$4 sm:$0xff]  }
 0x1e0   :  { %2058 = vmatpush1.bf16.msra.mxu0 %v11430_v30  ;;  %2140 = vmatpush1.bf16.msra.mxu1 %v11433_v31  ;;  %v11495_v30 = vld [vmem:[#allocation8 + $0x6ac] ss:$16 sps:$4 sm:$0xff]   ;;  %v11490_v31 = vld [vmem:[#allocation8 + $0x6a0] ss:$16 sps:$4 sm:$0xff]  }
 0x1e1   :  { %2059 = vmatprep.subr.bf16.mxu0 %v11438_v32  ;;  %2141 = vmatprep.subr.bf16.mxu1 %v11441_v33  ;;  %v11493_v32 = vld [vmem:[#allocation8 + $0x6a8] ss:$16 sps:$4 sm:$0xff]   ;;  %v11498_v33 = vld [vmem:[#allocation8 + $0x6c4] ss:$16 sps:$4 sm:$0xff]  }
 0x1e4   :  { %2060 = vmatpush1.bf16.msra.mxu0 %v11436_v34  ;;  %2142 = vmatpush1.bf16.msra.mxu1 %v11439_v35  ;;  %v11501_v34 = vld [vmem:[#allocation8 + $0x6cc] ss:$16 sps:$4 sm:$0xff]   ;;  %v11496_v35 = vld [vmem:[#allocation8 + $0x6c0] ss:$16 sps:$4 sm:$0xff]  }
 0x1e5   :  { %2061 = vmatprep.subr.bf16.mxu0 %v11444_v36  ;;  %2143 = vmatprep.subr.bf16.mxu1 %v11447_v37  ;;  %v11499_v36 = vld [vmem:[#allocation8 + $0x6c8] ss:$16 sps:$4 sm:$0xff]   ;;  %v11504_v37 = vld [vmem:[#allocation8 + $0x6e4] ss:$16 sps:$4 sm:$0xff]  }
 0x1e8   :  { %2062 = vmatpush1.bf16.msra.mxu0 %v11442_v38  ;;  %2144 = vmatpush1.bf16.msra.mxu1 %v11445_v10  ;;  %v11507_v38 = vld [vmem:[#allocation8 + $0x6ec] ss:$16 sps:$4 sm:$0xff]   ;;  %v11502_v10 = vld [vmem:[#allocation8 + $0x6e0] ss:$16 sps:$4 sm:$0xff]  }
 0x1e9   :  { %2063 = vmatprep.subr.bf16.mxu0 %v11450_v39  ;;  %2145 = vmatprep.subr.bf16.mxu1 %v11453_v40  ;;  %v11505_v39 = vld [vmem:[#allocation8 + $0x6e8] ss:$16 sps:$4 sm:$0xff]   ;;  %v11510_v40 = vld [vmem:[#allocation8 + $0x704] ss:$16 sps:$4 sm:$0xff]  }
 0x1ec   :  { %2064 = vmatpush1.bf16.msra.mxu0 %v11448_v41  ;;  %2146 = vmatpush1.bf16.msra.mxu1 %v11451_v42  ;;  %v11513_v41 = vld [vmem:[#allocation8 + $0x70c] ss:$16 sps:$4 sm:$0xff]   ;;  %v11508_v42 = vld [vmem:[#allocation8 + $0x700] ss:$16 sps:$4 sm:$0xff]  }
 0x1ed   :  { %2065 = vmatprep.subr.bf16.mxu0 %v11456_v43  ;;  %2147 = vmatprep.subr.bf16.mxu1 %v11459_v12  ;;  %v11511_v43 = vld [vmem:[#allocation8 + $0x708] ss:$16 sps:$4 sm:$0xff]   ;;  %v11516_v12 = vld [vmem:[#allocation8 + $0x724] ss:$16 sps:$4 sm:$0xff]  }
 0x1f0   :  { %2066 = vmatpush1.bf16.msra.mxu0 %v11454_v44  ;;  %2148 = vmatpush1.bf16.msra.mxu1 %v11457_v45  ;;  %v11519_v44 = vld [vmem:[#allocation8 + $0x72c] ss:$16 sps:$4 sm:$0xff]   ;;  %v11514_v45 = vld [vmem:[#allocation8 + $0x720] ss:$16 sps:$4 sm:$0xff]  }
 0x1f1   :  { %2076 = vmatprep.subr.bf16.mxu0 %v11462_v46  ;;  %2158 = vmatprep.subr.bf16.mxu1 %v11465_v47  ;;  %v11517_v46 = vld [vmem:[#allocation8 + $0x728] ss:$16 sps:$4 sm:$0xff]   ;;  %v11522_v47 = vld [vmem:[#allocation8 + $0x744] ss:$16 sps:$4 sm:$0xff]  }
 0x286   :  { %v1146_v51 = vpop.f32.mrb[4].mxu0  ;;  %v13392_v52 = vpop.f32.mrb[4].mxu1 }
 0x287   :  { %v11043_v53 = vadd.f32 %v1146_v51, %v414_v48  ;;  %v1148_v54 = vpop.f32.mrb[5].mxu0  ;;  %v1230_v55 = vpop.f32.mrb[5].mxu1  ;;  %v11525_v48 = vld [vmem:[#allocation8 + $0x74c] ss:$16 sps:$4 sm:$0xff]   ;;  %v11528_v51 = vld [vmem:[#allocation8 + $0x764] ss:$16 sps:$4 sm:$0xff]  }
 0x288   :  { %v11044_v56 = vadd.f32 %v1148_v54, %v418_v49  ;;  %v11046_v57 = vadd.f32 %v1230_v55, %v426_v50  ;;  %v1150_v58 = vpop.f32.mrb[6].mxu0  ;;  %v1232_v59 = vpop.f32.mrb[6].mxu1  ;;  %v11520_v49 = vld [vmem:[#allocation8 + $0x740] ss:$16 sps:$4 sm:$0xff]   ;;  %v11523_v50 = vld [vmem:[#allocation8 + $0x748] ss:$16 sps:$4 sm:$0xff]  }
 0x289   :  { %v1235_v60 = vmax.f32 %v11043_v53, 0.0  ;;  %v1151_v61 = vpop.f32.mrb[7].mxu0  ;;  %v1233_v62 = vpop.f32.mrb[7].mxu1  ;;  %v11531_v53 = vld [vmem:[#allocation8 + $0x76c] ss:$16 sps:$4 sm:$0xff]  }
 0x28a   :  { %v1236_v63 = vmax.f32 %v11044_v56, 0.0  ;;  %v1238_v2 = vmax.f32 %v11046_v57, 0.0  ;;  %v11526_v54 = vld [vmem:[#allocation8 + $0x760] ss:$16 sps:$4 sm:$0xff]   ;;  %v11529_v55 = vld [vmem:[#allocation8 + $0x768] ss:$16 sps:$4 sm:$0xff]  }
 0x28b   :  { %v1239_v6 = vpack.c.bf16 %v1235_v60, %v1235_v60  ;;  %v11534_v56 = vld [vmem:[#allocation8 + $0x784] ss:$16 sps:$4 sm:$0xff]   ;;  %v11537_v57 = vld [vmem:[#allocation8 + $0x78c] ss:$16 sps:$4 sm:$0xff]   ;;  %v11532_v58 = vld [vmem:[#allocation8 + $0x780] ss:$16 sps:$4 sm:$0xff]  }
 0x28c   :  { %v1240_v3 = vpack.c.bf16 %v1236_v63, %v1236_v63  ;;  %v1242_v9 = vpack.c.bf16 %v1238_v2, %v1238_v2  ;;  %v11535_v59 = vld [vmem:[#allocation8 + $0x788] ss:$16 sps:$4 sm:$0xff]   ;;  %v11540_v60 = vld [vmem:[#allocation8 + $0x7a4] ss:$16 sps:$4 sm:$0xff]   ;;  %v11543_v61 = vld [vmem:[#allocation8 + $0x7ac] ss:$16 sps:$4 sm:$0xff]  }
 0x28d   :  { %v11538_v62 = vld [vmem:[#allocation8 + $0x7a0] ss:$16 sps:$4 sm:$0xff]   ;;  %v11541_v63 = vld [vmem:[#allocation8 + $0x7a8] ss:$16 sps:$4 sm:$0xff]   ;;  %v11549_v2 = vld [vmem:[#allocation8 + $0x7cc] ss:$16 sps:$4 sm:$0xff]  }
 0x28e   :  { %2067 = vmatprep.mubr.bf16.mxu0 %v1240_v3  ;;  %2149 = vmatprep.mubr.bf16.mxu1 %v1240_v3  ;;  %v11544_v3 = vld [vmem:[#allocation8 + $0x7c0] ss:$16 sps:$4 sm:$0xff]  }
 0x28f   :  { %2068 = vmatmul.mubr.bf16.vlgmr.msra.gmra.mrb[8].mxu0 %v1239_v6  ;;  %2150 = vmatmul.mubr.bf16.vlgmr.msra.gmra.mrb[8].mxu1 %v1239_v6  ;;  %v11552_v6 = vld [vmem:[#allocation8 + $0x7e4] ss:$16 sps:$4 sm:$0xff]  }
 0x290   :  { %2077 = vmatpush1.bf16.msra.mxu0 %v11460_v0  ;;  %2159 = vmatpush1.bf16.msra.mxu1 %v11463_v1  ;;  %v422_v0 = vrot.slane %v13384_v23, %v13379_v29  ;;  %v11546_v1 = vld [vmem:[#allocation8 + $0x7c4] ss:$16 sps:$4 sm:$0xff]  }
 0x291   :  { %2108 = vmatprep.mubr.bf16.mxu0 %v1242_v9  ;;  %2190 = vmatprep.mubr.bf16.mxu1 %v1242_v9  ;;  %v11553_v9 = vld [vmem:[#allocation8 + $0x7e8] ss:$16 sps:$4 sm:$0xff]   ;;  %v11558_v23 = vld [vmem:[#allocation8 + $0x804] ss:$16 sps:$4 sm:$0xff]  }
 0x292   :  { %2078 = vmatprep.subr.bf16.mxu0 %v11468_v4  ;;  %2160 = vmatprep.subr.bf16.mxu1 %v11471_v5  ;;  %v11547_v4 = vld [vmem:[#allocation8 + $0x7c8] ss:$16 sps:$4 sm:$0xff]   ;;  %v11045_v5 = vadd.f32 %v13392_v52, %v422_v0  ;;  %v11564_v52 = vld [vmem:[#allocation8 + $0x824] ss:$16 sps:$4 sm:$0xff]  }
 0x293   :  { %v11630_v0 = vld [vmem:[#allocation8 + $0x984] ss:$16 sps:$4 sm:$0xff]  }
 0x294   :  { %2079 = vmatpush1.bf16.msra.mxu0 %v11466_v7  ;;  %2161 = vmatpush1.bf16.msra.mxu1 %v11469_v8  ;;  %v11555_v7 = vld [vmem:[#allocation8 + $0x7ec] ss:$16 sps:$4 sm:$0xff]   ;;  %v11550_v8 = vld [vmem:[#allocation8 + $0x7e0] ss:$16 sps:$4 sm:$0xff]  }
 0x295   :  { %2080 = vmatprep.subr.bf16.mxu0 %v11474_v15  ;;  %2162 = vmatprep.subr.bf16.mxu1 %v11477_v16  ;;  %v1237_v15 = vmax.f32 %v11045_v5, 0.0  ;;  %v11561_v16 = vld [vmem:[#allocation8 + $0x80c] ss:$16 sps:$4 sm:$0xff]  }
 0x296   :  { %v11639_v5 = vld [vmem:[#allocation8 + $0x9ac] ss:$16 sps:$4 sm:$0xff]  }
 0x298   :  { %2081 = vmatpush1.bf16.msra.mxu0 %v11472_v17  ;;  %2163 = vmatpush1.bf16.msra.mxu1 %v11475_v18  ;;  %v11556_v17 = vld [vmem:[#allocation8 + $0x800] ss:$16 sps:$4 sm:$0xff]   ;;  %v11559_v18 = vld [vmem:[#allocation8 + $0x808] ss:$16 sps:$4 sm:$0xff]  }
 0x299   :  { %2082 = vmatprep.subr.bf16.mxu0 %v11480_v19  ;;  %2164 = vmatprep.subr.bf16.mxu1 %v11483_v20  ;;  %v1241_v19 = vpack.c.bf16 %v1237_v15, %v1237_v15  ;;  %v11567_v20 = vld [vmem:[#allocation8 + $0x82c] ss:$16 sps:$4 sm:$0xff]   ;;  %v11640_v15 = vld [vmem:[#allocation8 + $0x9c0] ss:$16 sps:$4 sm:$0xff]  }
 0x29c   :  { %2083 = vmatpush1.bf16.msra.mxu0 %v11478_v21  ;;  %2165 = vmatpush1.bf16.msra.mxu1 %v11481_v22  ;;  %v11562_v21 = vld [vmem:[#allocation8 + $0x820] ss:$16 sps:$4 sm:$0xff]   ;;  %v11565_v22 = vld [vmem:[#allocation8 + $0x828] ss:$16 sps:$4 sm:$0xff]  }
 0x29d   :  { %2084 = vmatprep.subr.bf16.mxu0 %v11486_v24  ;;  %2166 = vmatprep.subr.bf16.mxu1 %v11489_v25  ;;  %v11570_v24 = vld [vmem:[#allocation8 + $0x844] ss:$16 sps:$4 sm:$0xff]   ;;  %v11573_v25 = vld [vmem:[#allocation8 + $0x84c] ss:$16 sps:$4 sm:$0xff]  }
 0x2a0   :  { %2085 = vmatpush1.bf16.msra.mxu0 %v11484_v26  ;;  %2167 = vmatpush1.bf16.msra.mxu1 %v11487_v27  ;;  %v11568_v26 = vld [vmem:[#allocation8 + $0x840] ss:$16 sps:$4 sm:$0xff]   ;;  %v11571_v27 = vld [vmem:[#allocation8 + $0x848] ss:$16 sps:$4 sm:$0xff]  }
 0x2a1   :  { %2086 = vmatprep.subr.bf16.mxu0 %v11492_v28  ;;  %2168 = vmatprep.subr.bf16.mxu1 %v11495_v30  ;;  %v11576_v28 = vld [vmem:[#allocation8 + $0x864] ss:$16 sps:$4 sm:$0xff]   ;;  %v11579_v30 = vld [vmem:[#allocation8 + $0x86c] ss:$16 sps:$4 sm:$0xff]  }
 0x2a4   :  { %2087 = vmatpush1.bf16.msra.mxu0 %v11490_v31  ;;  %2169 = vmatpush1.bf16.msra.mxu1 %v11493_v32  ;;  %v11574_v31 = vld [vmem:[#allocation8 + $0x860] ss:$16 sps:$4 sm:$0xff]   ;;  %v11577_v32 = vld [vmem:[#allocation8 + $0x868] ss:$16 sps:$4 sm:$0xff]  }
 0x2a5   :  { %2088 = vmatprep.subr.bf16.mxu0 %v11498_v33  ;;  %2170 = vmatprep.subr.bf16.mxu1 %v11501_v34  ;;  %v11582_v33 = vld [vmem:[#allocation8 + $0x884] ss:$16 sps:$4 sm:$0xff]   ;;  %v11585_v34 = vld [vmem:[#allocation8 + $0x88c] ss:$16 sps:$4 sm:$0xff]  }
 0x2a8   :  { %2089 = vmatpush1.bf16.msra.mxu0 %v11496_v35  ;;  %2171 = vmatpush1.bf16.msra.mxu1 %v11499_v36  ;;  %v11580_v35 = vld [vmem:[#allocation8 + $0x880] ss:$16 sps:$4 sm:$0xff]   ;;  %v11583_v36 = vld [vmem:[#allocation8 + $0x888] ss:$16 sps:$4 sm:$0xff]  }
 0x2a9   :  { %2090 = vmatprep.subr.bf16.mxu0 %v11504_v37  ;;  %2172 = vmatprep.subr.bf16.mxu1 %v11507_v38  ;;  %v11588_v37 = vld [vmem:[#allocation8 + $0x8a4] ss:$16 sps:$4 sm:$0xff]   ;;  %v11591_v38 = vld [vmem:[#allocation8 + $0x8ac] ss:$16 sps:$4 sm:$0xff]  }
 0x2ac   :  { %2091 = vmatpush1.bf16.msra.mxu0 %v11502_v10  ;;  %2173 = vmatpush1.bf16.msra.mxu1 %v11505_v39  ;;  %v11586_v10 = vld [vmem:[#allocation8 + $0x8a0] ss:$16 sps:$4 sm:$0xff]   ;;  %v11589_v39 = vld [vmem:[#allocation8 + $0x8a8] ss:$16 sps:$4 sm:$0xff]  }
 0x2ad   :  { %2092 = vmatprep.subr.bf16.mxu0 %v11510_v40  ;;  %2174 = vmatprep.subr.bf16.mxu1 %v11513_v41  ;;  %v11594_v40 = vld [vmem:[#allocation8 + $0x8c4] ss:$16 sps:$4 sm:$0xff]   ;;  %v11597_v41 = vld [vmem:[#allocation8 + $0x8cc] ss:$16 sps:$4 sm:$0xff]  }
 0x2b0   :  { %2093 = vmatpush1.bf16.msra.mxu0 %v11508_v42  ;;  %2175 = vmatpush1.bf16.msra.mxu1 %v11511_v43  ;;  %v11592_v42 = vld [vmem:[#allocation8 + $0x8c0] ss:$16 sps:$4 sm:$0xff]   ;;  %v11595_v43 = vld [vmem:[#allocation8 + $0x8c8] ss:$16 sps:$4 sm:$0xff]  }
 0x2b1   :  { %2094 = vmatprep.subr.bf16.mxu0 %v11516_v12  ;;  %2176 = vmatprep.subr.bf16.mxu1 %v11519_v44  ;;  %v11600_v12 = vld [vmem:[#allocation8 + $0x8e4] ss:$16 sps:$4 sm:$0xff]   ;;  %v11603_v44 = vld [vmem:[#allocation8 + $0x8ec] ss:$16 sps:$4 sm:$0xff]  }
 0x2b4   :  { %2095 = vmatpush1.bf16.msra.mxu0 %v11514_v45  ;;  %2177 = vmatpush1.bf16.msra.mxu1 %v11517_v46  ;;  %v11598_v45 = vld [vmem:[#allocation8 + $0x8e0] ss:$16 sps:$4 sm:$0xff]   ;;  %v11601_v46 = vld [vmem:[#allocation8 + $0x8e8] ss:$16 sps:$4 sm:$0xff]  }
 0x2b5   :  { %2096 = vmatprep.subr.bf16.mxu0 %v11522_v47  ;;  %2178 = vmatprep.subr.bf16.mxu1 %v11525_v48  ;;  %v11606_v47 = vld [vmem:[#allocation8 + $0x904] ss:$16 sps:$4 sm:$0xff]   ;;  %v11609_v48 = vld [vmem:[#allocation8 + $0x90c] ss:$16 sps:$4 sm:$0xff]  }
 0x2b8   :  { %2097 = vmatpush1.bf16.msra.mxu0 %v11520_v49  ;;  %2179 = vmatpush1.bf16.msra.mxu1 %v11523_v50  ;;  %v11604_v49 = vld [vmem:[#allocation8 + $0x900] ss:$16 sps:$4 sm:$0xff]   ;;  %v11607_v50 = vld [vmem:[#allocation8 + $0x908] ss:$16 sps:$4 sm:$0xff]  }
 0x2b9   :  { %2098 = vmatprep.subr.bf16.mxu0 %v11528_v51  ;;  %2180 = vmatprep.subr.bf16.mxu1 %v11531_v53  ;;  %v11612_v51 = vld [vmem:[#allocation8 + $0x924] ss:$16 sps:$4 sm:$0xff]   ;;  %v11615_v53 = vld [vmem:[#allocation8 + $0x92c] ss:$16 sps:$4 sm:$0xff]  }
 0x2bc   :  { %2099 = vmatpush1.bf16.msra.mxu0 %v11526_v54  ;;  %2181 = vmatpush1.bf16.msra.mxu1 %v11529_v55  ;;  %v11610_v54 = vld [vmem:[#allocation8 + $0x920] ss:$16 sps:$4 sm:$0xff]   ;;  %v11613_v55 = vld [vmem:[#allocation8 + $0x928] ss:$16 sps:$4 sm:$0xff]  }
 0x2bd   :  { %2100 = vmatprep.subr.bf16.mxu0 %v11534_v56  ;;  %2182 = vmatprep.subr.bf16.mxu1 %v11537_v57  ;;  %v11618_v56 = vld [vmem:[#allocation8 + $0x944] ss:$16 sps:$4 sm:$0xff]   ;;  %v11621_v57 = vld [vmem:[#allocation8 + $0x94c] ss:$16 sps:$4 sm:$0xff]  }
 0x2c0   :  { %2101 = vmatpush1.bf16.msra.mxu0 %v11532_v58  ;;  %2183 = vmatpush1.bf16.msra.mxu1 %v11535_v59  ;;  %v11616_v58 = vld [vmem:[#allocation8 + $0x940] ss:$16 sps:$4 sm:$0xff]   ;;  %v11619_v59 = vld [vmem:[#allocation8 + $0x948] ss:$16 sps:$4 sm:$0xff]  }
 0x2c1   :  { %2102 = vmatprep.subr.bf16.mxu0 %v11540_v60  ;;  %2184 = vmatprep.subr.bf16.mxu1 %v11543_v61  ;;  %v11624_v60 = vld [vmem:[#allocation8 + $0x964] ss:$16 sps:$4 sm:$0xff]   ;;  %v11627_v61 = vld [vmem:[#allocation8 + $0x96c] ss:$16 sps:$4 sm:$0xff]  }
 0x2c4   :  { %2103 = vmatpush1.bf16.msra.mxu0 %v11538_v62  ;;  %2185 = vmatpush1.bf16.msra.mxu1 %v11541_v63  ;;  %v11622_v62 = vld [vmem:[#allocation8 + $0x960] ss:$16 sps:$4 sm:$0xff]   ;;  %v11625_v63 = vld [vmem:[#allocation8 + $0x968] ss:$16 sps:$4 sm:$0xff]  }
 0x2c5   :  { %2104 = vmatprep.subr.bf16.mxu0 %v11546_v1  ;;  %2186 = vmatprep.subr.bf16.mxu1 %v11549_v2  ;;  %v11633_v1 = vld [vmem:[#allocation8 + $0x98c] ss:$16 sps:$4 sm:$0xff]   ;;  %v11628_v2 = vld [vmem:[#allocation8 + $0x980] ss:$16 sps:$4 sm:$0xff]  }
 0x2c8   :  { %2105 = vmatpush1.bf16.msra.mxu0 %v11544_v3  ;;  %2187 = vmatpush1.bf16.msra.mxu1 %v11547_v4  ;;  %v11631_v3 = vld [vmem:[#allocation8 + $0x988] ss:$16 sps:$4 sm:$0xff]   ;;  %v11636_v4 = vld [vmem:[#allocation8 + $0x9a4] ss:$16 sps:$4 sm:$0xff]  }
 0x2c9   :  { %2106 = vmatprep.subr.bf16.mxu0 %v11552_v6  ;;  %2188 = vmatprep.subr.bf16.mxu1 %v11555_v7  ;;  %v11634_v6 = vld [vmem:[#allocation8 + $0x9a0] ss:$16 sps:$4 sm:$0xff]   ;;  %v11637_v7 = vld [vmem:[#allocation8 + $0x9a8] ss:$16 sps:$4 sm:$0xff]  }
 0x2cc   :  { %2107 = vmatpush1.bf16.msra.mxu0 %v11550_v8  ;;  %2189 = vmatpush1.bf16.msra.mxu1 %v11553_v9  ;;  %v11642_v8 = vld [vmem:[#allocation8 + $0x9c4] ss:$16 sps:$4 sm:$0xff]   ;;  %v11645_v9 = vld [vmem:[#allocation8 + $0x9cc] ss:$16 sps:$4 sm:$0xff]  }
 0x2cd   :  { %2999 = vmatprep.subr.bf16.mxu0 %v11558_v23  ;;  %3081 = vmatprep.subr.bf16.mxu1 %v11561_v16  ;;  %v11643_v23 = vld [vmem:[#allocation8 + $0x9c8] ss:$16 sps:$4 sm:$0xff]   ;;  %v11648_v16 = vld [vmem:[#allocation8 + $0x9e4] ss:$16 sps:$4 sm:$0xff]  }
 0x2cf   :  { %2109 = vmatmul.mubr.bf16.vlgmr.msra.gmra.mrb[8].mxu0 %v1241_v19  ;;  %2191 = vmatmul.mubr.bf16.vlgmr.msra.gmra.mrb[8].mxu1 %v1241_v19  ;;  %v11649_v19 = vld [vmem:[#allocation8 + $0x9e8] ss:$16 sps:$4 sm:$0xff]  }
 0x2d0   :  { %3000 = vmatpush1.bf16.msra.mxu0 %v11556_v17  ;;  %3082 = vmatpush1.bf16.msra.mxu1 %v11559_v18  ;;  %v11651_v17 = vld [vmem:[#allocation8 + $0x9ec] ss:$16 sps:$4 sm:$0xff]   ;;  %v11646_v18 = vld [vmem:[#allocation8 + $0x9e0] ss:$16 sps:$4 sm:$0xff]  }
 0x2d1   :  { %3001 = vmatprep.subr.bf16.mxu0 %v11564_v52  ;;  %3083 = vmatprep.subr.bf16.mxu1 %v11567_v20  ;;  %v11654_v52 = vld [vmem:[#allocation8 + $0xa04] ss:$16 sps:$4 sm:$0xff]   ;;  %v11657_v20 = vld [vmem:[#allocation8 + $0xa0c] ss:$16 sps:$4 sm:$0xff]  }
 0x2d4   :  { %3002 = vmatpush1.bf16.msra.mxu0 %v11562_v21  ;;  %3084 = vmatpush1.bf16.msra.mxu1 %v11565_v22  ;;  %v13397_v21 = vld [vmem:[#allocation10 + $0x4] sm:$0xf] }
 0x2d5   :  { %3003 = vmatprep.subr.bf16.mxu0 %v11570_v24  ;;  %3085 = vmatprep.subr.bf16.mxu1 %v11573_v25  ;;  %v1378_v22 = vrot.slane %v13397_v21, %v13360_v11  ;;  %v1382_v24 = vrot.slane %v13397_v21, %v13365_v13  ;;  %v1390_v25 = vrot.slane %v13397_v21, %v13368_v14 }
 0x2d8   :  { %3004 = vmatpush1.bf16.msra.mxu0 %v11568_v26  ;;  %3086 = vmatpush1.bf16.msra.mxu1 %v11571_v27 }
 0x2d9   :  { %3005 = vmatprep.subr.bf16.mxu0 %v11576_v28  ;;  %3087 = vmatprep.subr.bf16.mxu1 %v11579_v30 }
 0x2dc   :  { %3006 = vmatpush1.bf16.msra.mxu0 %v11574_v31  ;;  %3088 = vmatpush1.bf16.msra.mxu1 %v11577_v32 }
 0x2dd   :  { %3007 = vmatprep.subr.bf16.mxu0 %v11582_v33  ;;  %3089 = vmatprep.subr.bf16.mxu1 %v11585_v34 }
 0x2e0   :  { %3008 = vmatpush1.bf16.msra.mxu0 %v11580_v35  ;;  %3090 = vmatpush1.bf16.msra.mxu1 %v11583_v36 }
 0x2e1   :  { %3009 = vmatprep.subr.bf16.mxu0 %v11588_v37  ;;  %3091 = vmatprep.subr.bf16.mxu1 %v11591_v38 }
 0x2e4   :  { %3010 = vmatpush1.bf16.msra.mxu0 %v11586_v10  ;;  %3092 = vmatpush1.bf16.msra.mxu1 %v11589_v39 }
 0x2e5   :  { %3011 = vmatprep.subr.bf16.mxu0 %v11594_v40  ;;  %3093 = vmatprep.subr.bf16.mxu1 %v11597_v41  ;;  %v11652_v41 = vld [vmem:[#allocation8 + $0xa00] ss:$16 sps:$4 sm:$0xff]  }
 0x2e8   :  { %3012 = vmatpush1.bf16.msra.mxu0 %v11592_v42  ;;  %3094 = vmatpush1.bf16.msra.mxu1 %v11595_v43  ;;  %v11655_v42 = vld [vmem:[#allocation8 + $0xa08] ss:$16 sps:$4 sm:$0xff]  }
 0x2e9   :  { %3013 = vmatprep.subr.bf16.mxu0 %v11600_v12  ;;  %3095 = vmatprep.subr.bf16.mxu1 %v11603_v44  ;;  %v11660_v12 = vld [vmem:[#allocation8 + $0xa24] ss:$16 sps:$4 sm:$0xff]   ;;  %v11663_v44 = vld [vmem:[#allocation8 + $0xa2c] ss:$16 sps:$4 sm:$0xff]  }
 0x2ec   :  { %3014 = vmatpush1.bf16.msra.mxu0 %v11598_v45  ;;  %3096 = vmatpush1.bf16.msra.mxu1 %v11601_v46  ;;  %v11658_v46 = vld [vmem:[#allocation8 + $0xa20] ss:$16 sps:$4 sm:$0xff]  }
 0x2ed   :  { %3015 = vmatprep.subr.bf16.mxu0 %v11606_v47  ;;  %3097 = vmatprep.subr.bf16.mxu1 %v11609_v48  ;;  %v11661_v47 = vld [vmem:[#allocation8 + $0xa28] ss:$16 sps:$4 sm:$0xff]   ;;  %v11666_v48 = vld [vmem:[#allocation8 + $0xa44] ss:$16 sps:$4 sm:$0xff]  }
 0x2f0   :  { %3016 = vmatpush1.bf16.msra.mxu0 %v11604_v49  ;;  %3098 = vmatpush1.bf16.msra.mxu1 %v11607_v50  ;;  %v11669_v49 = vld [vmem:[#allocation8 + $0xa4c] ss:$16 sps:$4 sm:$0xff]   ;;  %v11664_v50 = vld [vmem:[#allocation8 + $0xa40] ss:$16 sps:$4 sm:$0xff]  }
 0x2f1   :  { %3017 = vmatprep.subr.bf16.mxu0 %v11612_v51  ;;  %3099 = vmatprep.subr.bf16.mxu1 %v11615_v53  ;;  %v11667_v51 = vld [vmem:[#allocation8 + $0xa48] ss:$16 sps:$4 sm:$0xff]   ;;  %v11672_v53 = vld [vmem:[#allocation8 + $0xa64] ss:$16 sps:$4 sm:$0xff]  }
 0x2f4   :  { %3018 = vmatpush1.bf16.msra.mxu0 %v11610_v54  ;;  %3100 = vmatpush1.bf16.msra.mxu1 %v11613_v55  ;;  %v11675_v54 = vld [vmem:[#allocation8 + $0xa6c] ss:$16 sps:$4 sm:$0xff]   ;;  %v11670_v55 = vld [vmem:[#allocation8 + $0xa60] ss:$16 sps:$4 sm:$0xff]  }
 0x2f5   :  { %3019 = vmatprep.subr.bf16.mxu0 %v11618_v56  ;;  %3101 = vmatprep.subr.bf16.mxu1 %v11621_v57  ;;  %v11673_v56 = vld [vmem:[#allocation8 + $0xa68] ss:$16 sps:$4 sm:$0xff]   ;;  %v11678_v57 = vld [vmem:[#allocation8 + $0xa84] ss:$16 sps:$4 sm:$0xff]  }
 0x2f8   :  { %3020 = vmatpush1.bf16.msra.mxu0 %v11616_v58  ;;  %3102 = vmatpush1.bf16.msra.mxu1 %v11619_v59  ;;  %v11681_v58 = vld [vmem:[#allocation8 + $0xa8c] ss:$16 sps:$4 sm:$0xff]   ;;  %v11676_v59 = vld [vmem:[#allocation8 + $0xa80] ss:$16 sps:$4 sm:$0xff]  }
 0x2f9   :  { %3021 = vmatprep.subr.bf16.mxu0 %v11624_v60  ;;  %3103 = vmatprep.subr.bf16.mxu1 %v11627_v61  ;;  %v11679_v60 = vld [vmem:[#allocation8 + $0xa88] ss:$16 sps:$4 sm:$0xff]   ;;  %v11684_v61 = vld [vmem:[#allocation8 + $0xaa4] ss:$16 sps:$4 sm:$0xff]  }
 0x2fc   :  { %3022 = vmatpush1.bf16.msra.mxu0 %v11622_v62  ;;  %3104 = vmatpush1.bf16.msra.mxu1 %v11625_v63  ;;  %v11687_v62 = vld [vmem:[#allocation8 + $0xaac] ss:$16 sps:$4 sm:$0xff]   ;;  %v11682_v63 = vld [vmem:[#allocation8 + $0xaa0] ss:$16 sps:$4 sm:$0xff]  }
 0x2fd   :  { %3023 = vmatprep.subr.bf16.mxu0 %v11630_v0  ;;  %3105 = vmatprep.subr.bf16.mxu1 %v11633_v1  ;;  %v11685_v0 = vld [vmem:[#allocation8 + $0xaa8] ss:$16 sps:$4 sm:$0xff]   ;;  %v11690_v1 = vld [vmem:[#allocation8 + $0xac4] ss:$16 sps:$4 sm:$0xff]  }
 0x300   :  { %3024 = vmatpush1.bf16.msra.mxu0 %v11628_v2  ;;  %3106 = vmatpush1.bf16.msra.mxu1 %v11631_v3  ;;  %v11693_v2 = vld [vmem:[#allocation8 + $0xacc] ss:$16 sps:$4 sm:$0xff]   ;;  %v11688_v3 = vld [vmem:[#allocation8 + $0xac0] ss:$16 sps:$4 sm:$0xff]  }
 0x301   :  { %3025 = vmatprep.subr.bf16.mxu0 %v11636_v4  ;;  %3107 = vmatprep.subr.bf16.mxu1 %v11639_v5  ;;  %v11691_v4 = vld [vmem:[#allocation8 + $0xac8] ss:$16 sps:$4 sm:$0xff]   ;;  %v11696_v5 = vld [vmem:[#allocation8 + $0xae4] ss:$16 sps:$4 sm:$0xff]  }
 0x304   :  { %3026 = vmatpush1.bf16.msra.mxu0 %v11634_v6  ;;  %3108 = vmatpush1.bf16.msra.mxu1 %v11637_v7  ;;  %v11699_v6 = vld [vmem:[#allocation8 + $0xaec] ss:$16 sps:$4 sm:$0xff]   ;;  %v11694_v7 = vld [vmem:[#allocation8 + $0xae0] ss:$16 sps:$4 sm:$0xff]  }
 0x305   :  { %3027 = vmatprep.subr.bf16.mxu0 %v11642_v8  ;;  %3109 = vmatprep.subr.bf16.mxu1 %v11645_v9  ;;  %v11697_v8 = vld [vmem:[#allocation8 + $0xae8] ss:$16 sps:$4 sm:$0xff]   ;;  %v11702_v9 = vld [vmem:[#allocation8 + $0xb04] ss:$16 sps:$4 sm:$0xff]  }
 0x308   :  { %3028 = vmatpush1.bf16.msra.mxu0 %v11640_v15  ;;  %3110 = vmatpush1.bf16.msra.mxu1 %v11643_v23  ;;  %v11705_v15 = vld [vmem:[#allocation8 + $0xb0c] ss:$16 sps:$4 sm:$0xff]   ;;  %v11700_v23 = vld [vmem:[#allocation8 + $0xb00] ss:$16 sps:$4 sm:$0xff]  }
 0x309   :  { %3029 = vmatprep.subr.bf16.mxu0 %v11648_v16  ;;  %3111 = vmatprep.subr.bf16.mxu1 %v11651_v17  ;;  %v11703_v16 = vld [vmem:[#allocation8 + $0xb08] ss:$16 sps:$4 sm:$0xff]   ;;  %v11708_v17 = vld [vmem:[#allocation8 + $0xb24] ss:$16 sps:$4 sm:$0xff]  }
 0x30c   :  { %3030 = vmatpush1.bf16.msra.mxu0 %v11646_v18  ;;  %3112 = vmatpush1.bf16.msra.mxu1 %v11649_v19  ;;  %v11711_v18 = vld [vmem:[#allocation8 + $0xb2c] ss:$16 sps:$4 sm:$0xff]   ;;  %v11706_v19 = vld [vmem:[#allocation8 + $0xb20] ss:$16 sps:$4 sm:$0xff]  }
 0x30d   :  { %3040 = vmatprep.subr.bf16.mxu0 %v11654_v52  ;;  %3122 = vmatprep.subr.bf16.mxu1 %v11657_v20  ;;  %v11709_v52 = vld [vmem:[#allocation8 + $0xb28] ss:$16 sps:$4 sm:$0xff]   ;;  %v11714_v20 = vld [vmem:[#allocation8 + $0xb44] ss:$16 sps:$4 sm:$0xff]  }
 0x3a2   :  { %v2110_v26 = vpop.f32.mrb[8].mxu0  ;;  %v13405_v27 = vpop.f32.mrb[8].mxu1 }
 0x3a3   :  { %v11047_v28 = vadd.f32 %v2110_v26, %v1378_v22  ;;  %v2112_v30 = vpop.f32.mrb[9].mxu0  ;;  %v2194_v31 = vpop.f32.mrb[9].mxu1  ;;  %v11717_v22 = vld [vmem:[#allocation8 + $0xb4c] ss:$16 sps:$4 sm:$0xff]   ;;  %v11720_v26 = vld [vmem:[#allocation8 + $0xb64] ss:$16 sps:$4 sm:$0xff]  }
 0x3a4   :  { %v11048_v32 = vadd.f32 %v2112_v30, %v1382_v24  ;;  %v11050_v33 = vadd.f32 %v2194_v31, %v1390_v25  ;;  %v2114_v34 = vpop.f32.mrb[10].mxu0  ;;  %v2196_v35 = vpop.f32.mrb[10].mxu1  ;;  %v11712_v24 = vld [vmem:[#allocation8 + $0xb40] ss:$16 sps:$4 sm:$0xff]   ;;  %v11715_v25 = vld [vmem:[#allocation8 + $0xb48] ss:$16 sps:$4 sm:$0xff]  }
 0x3a5   :  { %v2199_v36 = vmax.f32 %v11047_v28, 0.0  ;;  %v2115_v37 = vpop.f32.mrb[11].mxu0  ;;  %v2197_v38 = vpop.f32.mrb[11].mxu1  ;;  %v11723_v28 = vld [vmem:[#allocation8 + $0xb6c] ss:$16 sps:$4 sm:$0xff]  }
 0x3a6   :  { %v2200_v10 = vmax.f32 %v11048_v32, 0.0  ;;  %v2202_v39 = vmax.f32 %v11050_v33, 0.0  ;;  %v11718_v30 = vld [vmem:[#allocation8 + $0xb60] ss:$16 sps:$4 sm:$0xff]   ;;  %v11721_v31 = vld [vmem:[#allocation8 + $0xb68] ss:$16 sps:$4 sm:$0xff]  }
 0x3a7   :  { %v2203_v43 = vpack.c.bf16 %v2199_v36, %v2199_v36  ;;  %v11726_v32 = vld [vmem:[#allocation8 + $0xb84] ss:$16 sps:$4 sm:$0xff]   ;;  %v11729_v33 = vld [vmem:[#allocation8 + $0xb8c] ss:$16 sps:$4 sm:$0xff]   ;;  %v11724_v34 = vld [vmem:[#allocation8 + $0xb80] ss:$16 sps:$4 sm:$0xff]  }
 0x3a8   :  { %v2204_v40 = vpack.c.bf16 %v2200_v10, %v2200_v10  ;;  %v2206_v45 = vpack.c.bf16 %v2202_v39, %v2202_v39  ;;  %v11727_v35 = vld [vmem:[#allocation8 + $0xb88] ss:$16 sps:$4 sm:$0xff]   ;;  %v11732_v36 = vld [vmem:[#allocation8 + $0xba4] ss:$16 sps:$4 sm:$0xff]   ;;  %v11735_v37 = vld [vmem:[#allocation8 + $0xbac] ss:$16 sps:$4 sm:$0xff]   ;;  %v1386_v39 = vrot.slane %v13397_v21, %v13379_v29 }
 0x3a9   :  { %v11730_v38 = vld [vmem:[#allocation8 + $0xba0] ss:$16 sps:$4 sm:$0xff]   ;;  %v11733_v10 = vld [vmem:[#allocation8 + $0xba8] ss:$16 sps:$4 sm:$0xff]  }
 0x3aa   :  { %3031 = vmatprep.mubr.bf16.mxu0 %v2204_v40  ;;  %3113 = vmatprep.mubr.bf16.mxu1 %v2204_v40  ;;  %v11738_v40 = vld [vmem:[#allocation8 + $0xbc4] ss:$16 sps:$4 sm:$0xff]   ;;  %v11750_v21 = vld [vmem:[#allocation11 + $0x4] ss:$16 sps:$4 sm:$0xff]  }
 0x3ab   :  { %3032 = vmatmul.mubr.bf16.vlgmr.msra.gmra.mrb[12].mxu0 %v2203_v43  ;;  %3114 = vmatmul.mubr.bf16.vlgmr.msra.gmra.mrb[12].mxu1 %v2203_v43  ;;  %v11739_v43 = vld [vmem:[#allocation8 + $0xbc8] ss:$16 sps:$4 sm:$0xff]  }
 0x3ac   :  { %3041 = vmatpush1.bf16.msra.mxu0 %v11652_v41  ;;  %3123 = vmatpush1.bf16.msra.mxu1 %v11655_v42  ;;  %v11741_v41 = vld [vmem:[#allocation8 + $0xbcc] ss:$16 sps:$4 sm:$0xff]   ;;  %v11736_v42 = vld [vmem:[#allocation8 + $0xbc0] ss:$16 sps:$4 sm:$0xff]  }
 0x3ad   :  { %3072 = vmatprep.mubr.bf16.mxu0 %v2206_v45  ;;  %3154 = vmatprep.mubr.bf16.mxu1 %v2206_v45  ;;  %v11747_v45 = vld [vmem:[#allocation8 + $0xbec] ss:$16 sps:$4 sm:$0xff]  }
 0x3ae   :  { %3042 = vmatprep.subr.bf16.mxu0 %v11660_v12  ;;  %3124 = vmatprep.subr.bf16.mxu1 %v11663_v44  ;;  %v11049_v12 = vadd.f32 %v13405_v27, %v1386_v39  ;;  %v11744_v44 = vld [vmem:[#allocation8 + $0xbe4] ss:$16 sps:$4 sm:$0xff]   ;;  %v11756_v27 = vld [vmem:[#allocation11 + $0x24] ss:$16 sps:$4 sm:$0xff]  }
 0x3af   :  { %v11822_v39 = vld [vmem:[#allocation11 + $0x184] ss:$16 sps:$4 sm:$0xff]  }
 0x3b0   :  { %3043 = vmatpush1.bf16.msra.mxu0 %v11658_v46  ;;  %3125 = vmatpush1.bf16.msra.mxu1 %v11661_v47  ;;  %v11742_v46 = vld [vmem:[#allocation8 + $0xbe0] ss:$16 sps:$4 sm:$0xff]   ;;  %v11745_v47 = vld [vmem:[#allocation8 + $0xbe8] ss:$16 sps:$4 sm:$0xff]  }
 0x3b1   :  { %3044 = vmatprep.subr.bf16.mxu0 %v11666_v48  ;;  %3126 = vmatprep.subr.bf16.mxu1 %v11669_v49  ;;  %v2201_v48 = vmax.f32 %v11049_v12, 0.0  ;;  %v11753_v49 = vld [vmem:[#allocation11 + $0xc] ss:$16 sps:$4 sm:$0xff]  }
 0x3b2   :  { %v11831_v12 = vld [vmem:[#allocation11 + $0x1ac] ss:$16 sps:$4 sm:$0xff]  }
 0x3b4   :  { %3045 = vmatpush1.bf16.msra.mxu0 %v11664_v50  ;;  %3127 = vmatpush1.bf16.msra.mxu1 %v11667_v51  ;;  %v11748_v50 = vld [vmem:[#allocation11] ss:$16 sps:$4 sm:$0xff]   ;;  %v11751_v51 = vld [vmem:[#allocation11 + $0x8] ss:$16 sps:$4 sm:$0xff]  }
 0x3b5   :  { %3046 = vmatprep.subr.bf16.mxu0 %v11672_v53  ;;  %3128 = vmatprep.subr.bf16.mxu1 %v11675_v54  ;;  %v2205_v53 = vpack.c.bf16 %v2201_v48, %v2201_v48  ;;  %v11759_v54 = vld [vmem:[#allocation11 + $0x2c] ss:$16 sps:$4 sm:$0xff]   ;;  %v11832_v48 = vld [vmem:[#allocation11 + $0x1c0] ss:$16 sps:$4 sm:$0xff]  }
 0x3b8   :  { %3047 = vmatpush1.bf16.msra.mxu0 %v11670_v55  ;;  %3129 = vmatpush1.bf16.msra.mxu1 %v11673_v56  ;;  %v11754_v55 = vld [vmem:[#allocation11 + $0x20] ss:$16 sps:$4 sm:$0xff]   ;;  %v11757_v56 = vld [vmem:[#allocation11 + $0x28] ss:$16 sps:$4 sm:$0xff]  }
 0x3b9   :  { %3048 = vmatprep.subr.bf16.mxu0 %v11678_v57  ;;  %3130 = vmatprep.subr.bf16.mxu1 %v11681_v58  ;;  %v11762_v57 = vld [vmem:[#allocation11 + $0x44] ss:$16 sps:$4 sm:$0xff]   ;;  %v11765_v58 = vld [vmem:[#allocation11 + $0x4c] ss:$16 sps:$4 sm:$0xff]  }
 0x3bc   :  { %3049 = vmatpush1.bf16.msra.mxu0 %v11676_v59  ;;  %3131 = vmatpush1.bf16.msra.mxu1 %v11679_v60  ;;  %v11760_v59 = vld [vmem:[#allocation11 + $0x40] ss:$16 sps:$4 sm:$0xff]   ;;  %v11763_v60 = vld [vmem:[#allocation11 + $0x48] ss:$16 sps:$4 sm:$0xff]  }
 0x3bd   :  { %3050 = vmatprep.subr.bf16.mxu0 %v11684_v61  ;;  %3132 = vmatprep.subr.bf16.mxu1 %v11687_v62  ;;  %v11768_v61 = vld [vmem:[#allocation11 + $0x64] ss:$16 sps:$4 sm:$0xff]   ;;  %v11771_v62 = vld [vmem:[#allocation11 + $0x6c] ss:$16 sps:$4 sm:$0xff]  }
 0x3c0   :  { %3051 = vmatpush1.bf16.msra.mxu0 %v11682_v63  ;;  %3133 = vmatpush1.bf16.msra.mxu1 %v11685_v0  ;;  %v11766_v63 = vld [vmem:[#allocation11 + $0x60] ss:$16 sps:$4 sm:$0xff]   ;;  %v11769_v0 = vld [vmem:[#allocation11 + $0x68] ss:$16 sps:$4 sm:$0xff]  }
 0x3c1   :  { %3052 = vmatprep.subr.bf16.mxu0 %v11690_v1  ;;  %3134 = vmatprep.subr.bf16.mxu1 %v11693_v2  ;;  %v11774_v1 = vld [vmem:[#allocation11 + $0x84] ss:$16 sps:$4 sm:$0xff]   ;;  %v11777_v2 = vld [vmem:[#allocation11 + $0x8c] ss:$16 sps:$4 sm:$0xff]  }
 0x3c4   :  { %3053 = vmatpush1.bf16.msra.mxu0 %v11688_v3  ;;  %3135 = vmatpush1.bf16.msra.mxu1 %v11691_v4  ;;  %v11772_v3 = vld [vmem:[#allocation11 + $0x80] ss:$16 sps:$4 sm:$0xff]   ;;  %v11775_v4 = vld [vmem:[#allocation11 + $0x88] ss:$16 sps:$4 sm:$0xff]  }
 0x3c5   :  { %3054 = vmatprep.subr.bf16.mxu0 %v11696_v5  ;;  %3136 = vmatprep.subr.bf16.mxu1 %v11699_v6  ;;  %v11780_v5 = vld [vmem:[#allocation11 + $0xa4] ss:$16 sps:$4 sm:$0xff]   ;;  %v11783_v6 = vld [vmem:[#allocation11 + $0xac] ss:$16 sps:$4 sm:$0xff]  }
 0x3c8   :  { %3055 = vmatpush1.bf16.msra.mxu0 %v11694_v7  ;;  %3137 = vmatpush1.bf16.msra.mxu1 %v11697_v8  ;;  %v11778_v7 = vld [vmem:[#allocation11 + $0xa0] ss:$16 sps:$4 sm:$0xff]   ;;  %v11781_v8 = vld [vmem:[#allocation11 + $0xa8] ss:$16 sps:$4 sm:$0xff]  }
 0x3c9   :  { %3056 = vmatprep.subr.bf16.mxu0 %v11702_v9  ;;  %3138 = vmatprep.subr.bf16.mxu1 %v11705_v15  ;;  %v11786_v9 = vld [vmem:[#allocation11 + $0xc4] ss:$16 sps:$4 sm:$0xff]   ;;  %v11789_v15 = vld [vmem:[#allocation11 + $0xcc] ss:$16 sps:$4 sm:$0xff]  }
 0x3cc   :  { %3057 = vmatpush1.bf16.msra.mxu0 %v11700_v23  ;;  %3139 = vmatpush1.bf16.msra.mxu1 %v11703_v16  ;;  %v11784_v23 = vld [vmem:[#allocation11 + $0xc0] ss:$16 sps:$4 sm:$0xff]   ;;  %v11787_v16 = vld [vmem:[#allocation11 + $0xc8] ss:$16 sps:$4 sm:$0xff]  }
 0x3cd   :  { %3058 = vmatprep.subr.bf16.mxu0 %v11708_v17  ;;  %3140 = vmatprep.subr.bf16.mxu1 %v11711_v18  ;;  %v11792_v17 = vld [vmem:[#allocation11 + $0xe4] ss:$16 sps:$4 sm:$0xff]   ;;  %v11795_v18 = vld [vmem:[#allocation11 + $0xec] ss:$16 sps:$4 sm:$0xff]  }
 0x3d0   :  { %3059 = vmatpush1.bf16.msra.mxu0 %v11706_v19  ;;  %3141 = vmatpush1.bf16.msra.mxu1 %v11709_v52  ;;  %v11790_v19 = vld [vmem:[#allocation11 + $0xe0] ss:$16 sps:$4 sm:$0xff]   ;;  %v11793_v52 = vld [vmem:[#allocation11 + $0xe8] ss:$16 sps:$4 sm:$0xff]  }
 0x3d1   :  { %3060 = vmatprep.subr.bf16.mxu0 %v11714_v20  ;;  %3142 = vmatprep.subr.bf16.mxu1 %v11717_v22  ;;  %v11798_v20 = vld [vmem:[#allocation11 + $0x104] ss:$16 sps:$4 sm:$0xff]   ;;  %v11801_v22 = vld [vmem:[#allocation11 + $0x10c] ss:$16 sps:$4 sm:$0xff]  }
 0x3d4   :  { %3061 = vmatpush1.bf16.msra.mxu0 %v11712_v24  ;;  %3143 = vmatpush1.bf16.msra.mxu1 %v11715_v25  ;;  %v11796_v24 = vld [vmem:[#allocation11 + $0x100] ss:$16 sps:$4 sm:$0xff]   ;;  %v11799_v25 = vld [vmem:[#allocation11 + $0x108] ss:$16 sps:$4 sm:$0xff]  }
 0x3d5   :  { %3062 = vmatprep.subr.bf16.mxu0 %v11720_v26  ;;  %3144 = vmatprep.subr.bf16.mxu1 %v11723_v28  ;;  %v11804_v26 = vld [vmem:[#allocation11 + $0x124] ss:$16 sps:$4 sm:$0xff]   ;;  %v11807_v28 = vld [vmem:[#allocation11 + $0x12c] ss:$16 sps:$4 sm:$0xff]  }
 0x3d8   :  { %3063 = vmatpush1.bf16.msra.mxu0 %v11718_v30  ;;  %3145 = vmatpush1.bf16.msra.mxu1 %v11721_v31  ;;  %v11802_v30 = vld [vmem:[#allocation11 + $0x120] ss:$16 sps:$4 sm:$0xff]   ;;  %v11805_v31 = vld [vmem:[#allocation11 + $0x128] ss:$16 sps:$4 sm:$0xff]  }
 0x3d9   :  { %3064 = vmatprep.subr.bf16.mxu0 %v11726_v32  ;;  %3146 = vmatprep.subr.bf16.mxu1 %v11729_v33  ;;  %v11810_v32 = vld [vmem:[#allocation11 + $0x144] ss:$16 sps:$4 sm:$0xff]   ;;  %v11813_v33 = vld [vmem:[#allocation11 + $0x14c] ss:$16 sps:$4 sm:$0xff]  }
 0x3dc   :  { %3065 = vmatpush1.bf16.msra.mxu0 %v11724_v34  ;;  %3147 = vmatpush1.bf16.msra.mxu1 %v11727_v35  ;;  %v11808_v34 = vld [vmem:[#allocation11 + $0x140] ss:$16 sps:$4 sm:$0xff]   ;;  %v11811_v35 = vld [vmem:[#allocation11 + $0x148] ss:$16 sps:$4 sm:$0xff]  }
 0x3dd   :  { %3066 = vmatprep.subr.bf16.mxu0 %v11732_v36  ;;  %3148 = vmatprep.subr.bf16.mxu1 %v11735_v37  ;;  %v11816_v36 = vld [vmem:[#allocation11 + $0x164] ss:$16 sps:$4 sm:$0xff]   ;;  %v11819_v37 = vld [vmem:[#allocation11 + $0x16c] ss:$16 sps:$4 sm:$0xff]  }
 0x3e0   :  { %3067 = vmatpush1.bf16.msra.mxu0 %v11730_v38  ;;  %3149 = vmatpush1.bf16.msra.mxu1 %v11733_v10  ;;  %v11814_v38 = vld [vmem:[#allocation11 + $0x160] ss:$16 sps:$4 sm:$0xff]   ;;  %v11817_v10 = vld [vmem:[#allocation11 + $0x168] ss:$16 sps:$4 sm:$0xff]  }
 0x3e1   :  { %3068 = vmatprep.subr.bf16.mxu0 %v11738_v40  ;;  %3150 = vmatprep.subr.bf16.mxu1 %v11741_v41  ;;  %v11825_v40 = vld [vmem:[#allocation11 + $0x18c] ss:$16 sps:$4 sm:$0xff]   ;;  %v11820_v41 = vld [vmem:[#allocation11 + $0x180] ss:$16 sps:$4 sm:$0xff]  }
 0x3e4   :  { %3069 = vmatpush1.bf16.msra.mxu0 %v11736_v42  ;;  %3151 = vmatpush1.bf16.msra.mxu1 %v11739_v43  ;;  %v11823_v42 = vld [vmem:[#allocation11 + $0x188] ss:$16 sps:$4 sm:$0xff]   ;;  %v11828_v43 = vld [vmem:[#allocation11 + $0x1a4] ss:$16 sps:$4 sm:$0xff]  }
 0x3e5   :  { %3070 = vmatprep.subr.bf16.mxu0 %v11744_v44  ;;  %3152 = vmatprep.subr.bf16.mxu1 %v11747_v45  ;;  %v11826_v44 = vld [vmem:[#allocation11 + $0x1a0] ss:$16 sps:$4 sm:$0xff]   ;;  %v11829_v45 = vld [vmem:[#allocation11 + $0x1a8] ss:$16 sps:$4 sm:$0xff]  }
 0x3e8   :  { %3071 = vmatpush1.bf16.msra.mxu0 %v11742_v46  ;;  %3153 = vmatpush1.bf16.msra.mxu1 %v11745_v47  ;;  %v11834_v46 = vld [vmem:[#allocation11 + $0x1c4] ss:$16 sps:$4 sm:$0xff]   ;;  %v11837_v47 = vld [vmem:[#allocation11 + $0x1cc] ss:$16 sps:$4 sm:$0xff]  }
 0x3e9   :  { %3961 = vmatprep.subr.bf16.mxu0 %v11750_v21  ;;  %4043 = vmatprep.subr.bf16.mxu1 %v11753_v49  ;;  %v11835_v21 = vld [vmem:[#allocation11 + $0x1c8] ss:$16 sps:$4 sm:$0xff]   ;;  %v11840_v49 = vld [vmem:[#allocation11 + $0x1e4] ss:$16 sps:$4 sm:$0xff]  }
 0x3eb   :  { %3073 = vmatmul.mubr.bf16.vlgmr.msra.gmra.mrb[12].mxu0 %v2205_v53  ;;  %3155 = vmatmul.mubr.bf16.vlgmr.msra.gmra.mrb[12].mxu1 %v2205_v53  ;;  %v11841_v53 = vld [vmem:[#allocation11 + $0x1e8] ss:$16 sps:$4 sm:$0xff]  }
 0x3ec   :  { %3962 = vmatpush1.bf16.msra.mxu0 %v11748_v50  ;;  %4044 = vmatpush1.bf16.msra.mxu1 %v11751_v51  ;;  %v11843_v50 = vld [vmem:[#allocation11 + $0x1ec] ss:$16 sps:$4 sm:$0xff]   ;;  %v11838_v51 = vld [vmem:[#allocation11 + $0x1e0] ss:$16 sps:$4 sm:$0xff]  }
 0x3ed   :  { %3963 = vmatprep.subr.bf16.mxu0 %v11756_v27  ;;  %4045 = vmatprep.subr.bf16.mxu1 %v11759_v54  ;;  %v11846_v27 = vld [vmem:[#allocation11 + $0x204] ss:$16 sps:$4 sm:$0xff]   ;;  %v11849_v54 = vld [vmem:[#allocation11 + $0x20c] ss:$16 sps:$4 sm:$0xff]  }
 0x3f0   :  { %3964 = vmatpush1.bf16.msra.mxu0 %v11754_v55  ;;  %4046 = vmatpush1.bf16.msra.mxu1 %v11757_v56  ;;  %v13410_v55 = vld [vmem:[#allocation10 + $0x8] sm:$0xf] }
 0x3f1   :  { %3965 = vmatprep.subr.bf16.mxu0 %v11762_v57  ;;  %4047 = vmatprep.subr.bf16.mxu1 %v11765_v58  ;;  %v2342_v56 = vrot.slane %v13410_v55, %v13360_v11  ;;  %v2346_v57 = vrot.slane %v13410_v55, %v13365_v13  ;;  %v2354_v58 = vrot.slane %v13410_v55, %v13368_v14 }
 0x3f4   :  { %3966 = vmatpush1.bf16.msra.mxu0 %v11760_v59  ;;  %4048 = vmatpush1.bf16.msra.mxu1 %v11763_v60 }
 0x3f5   :  { %3967 = vmatprep.subr.bf16.mxu0 %v11768_v61  ;;  %4049 = vmatprep.subr.bf16.mxu1 %v11771_v62 }
 0x3f8   :  { %3968 = vmatpush1.bf16.msra.mxu0 %v11766_v63  ;;  %4050 = vmatpush1.bf16.msra.mxu1 %v11769_v0 }
 0x3f9   :  { %3969 = vmatprep.subr.bf16.mxu0 %v11774_v1  ;;  %4051 = vmatprep.subr.bf16.mxu1 %v11777_v2 }
 0x3fc   :  { %3970 = vmatpush1.bf16.msra.mxu0 %v11772_v3  ;;  %4052 = vmatpush1.bf16.msra.mxu1 %v11775_v4 }
 0x3fd   :  { %3971 = vmatprep.subr.bf16.mxu0 %v11780_v5  ;;  %4053 = vmatprep.subr.bf16.mxu1 %v11783_v6 }
 0x400   :  { %3972 = vmatpush1.bf16.msra.mxu0 %v11778_v7  ;;  %4054 = vmatpush1.bf16.msra.mxu1 %v11781_v8 }
 0x401   :  { %3973 = vmatprep.subr.bf16.mxu0 %v11786_v9  ;;  %4055 = vmatprep.subr.bf16.mxu1 %v11789_v15  ;;  %v11844_v15 = vld [vmem:[#allocation11 + $0x200] ss:$16 sps:$4 sm:$0xff]  }
 0x404   :  { %3974 = vmatpush1.bf16.msra.mxu0 %v11784_v23  ;;  %4056 = vmatpush1.bf16.msra.mxu1 %v11787_v16  ;;  %v11847_v23 = vld [vmem:[#allocation11 + $0x208] ss:$16 sps:$4 sm:$0xff]  }
 0x405   :  { %3975 = vmatprep.subr.bf16.mxu0 %v11792_v17  ;;  %4057 = vmatprep.subr.bf16.mxu1 %v11795_v18  ;;  %v11852_v17 = vld [vmem:[#allocation11 + $0x224] ss:$16 sps:$4 sm:$0xff]   ;;  %v11855_v18 = vld [vmem:[#allocation11 + $0x22c] ss:$16 sps:$4 sm:$0xff]  }
 0x408   :  { %3976 = vmatpush1.bf16.msra.mxu0 %v11790_v19  ;;  %4058 = vmatpush1.bf16.msra.mxu1 %v11793_v52  ;;  %v11850_v52 = vld [vmem:[#allocation11 + $0x220] ss:$16 sps:$4 sm:$0xff]  }
 0x409   :  { %3977 = vmatprep.subr.bf16.mxu0 %v11798_v20  ;;  %4059 = vmatprep.subr.bf16.mxu1 %v11801_v22  ;;  %v11853_v20 = vld [vmem:[#allocation11 + $0x228] ss:$16 sps:$4 sm:$0xff]   ;;  %v11858_v22 = vld [vmem:[#allocation11 + $0x244] ss:$16 sps:$4 sm:$0xff]  }
 0x40c   :  { %3978 = vmatpush1.bf16.msra.mxu0 %v11796_v24  ;;  %4060 = vmatpush1.bf16.msra.mxu1 %v11799_v25  ;;  %v11861_v24 = vld [vmem:[#allocation11 + $0x24c] ss:$16 sps:$4 sm:$0xff]   ;;  %v11856_v25 = vld [vmem:[#allocation11 + $0x240] ss:$16 sps:$4 sm:$0xff]  }
 0x40d   :  { %3979 = vmatprep.subr.bf16.mxu0 %v11804_v26  ;;  %4061 = vmatprep.subr.bf16.mxu1 %v11807_v28  ;;  %v11859_v26 = vld [vmem:[#allocation11 + $0x248] ss:$16 sps:$4 sm:$0xff]   ;;  %v11864_v28 = vld [vmem:[#allocation11 + $0x264] ss:$16 sps:$4 sm:$0xff]  }
 0x410   :  { %3980 = vmatpush1.bf16.msra.mxu0 %v11802_v30  ;;  %4062 = vmatpush1.bf16.msra.mxu1 %v11805_v31  ;;  %v11867_v30 = vld [vmem:[#allocation11 + $0x26c] ss:$16 sps:$4 sm:$0xff]   ;;  %v11862_v31 = vld [vmem:[#allocation11 + $0x260] ss:$16 sps:$4 sm:$0xff]  }
 0x411   :  { %3981 = vmatprep.subr.bf16.mxu0 %v11810_v32  ;;  %4063 = vmatprep.subr.bf16.mxu1 %v11813_v33  ;;  %v11865_v32 = vld [vmem:[#allocation11 + $0x268] ss:$16 sps:$4 sm:$0xff]   ;;  %v11870_v33 = vld [vmem:[#allocation11 + $0x284] ss:$16 sps:$4 sm:$0xff]  }
 0x414   :  { %3982 = vmatpush1.bf16.msra.mxu0 %v11808_v34  ;;  %4064 = vmatpush1.bf16.msra.mxu1 %v11811_v35  ;;  %v11873_v34 = vld [vmem:[#allocation11 + $0x28c] ss:$16 sps:$4 sm:$0xff]   ;;  %v11868_v35 = vld [vmem:[#allocation11 + $0x280] ss:$16 sps:$4 sm:$0xff]  }
 0x415   :  { %3983 = vmatprep.subr.bf16.mxu0 %v11816_v36  ;;  %4065 = vmatprep.subr.bf16.mxu1 %v11819_v37  ;;  %v11871_v36 = vld [vmem:[#allocation11 + $0x288] ss:$16 sps:$4 sm:$0xff]   ;;  %v11876_v37 = vld [vmem:[#allocation11 + $0x2a4] ss:$16 sps:$4 sm:$0xff]  }
 0x418   :  { %3984 = vmatpush1.bf16.msra.mxu0 %v11814_v38  ;;  %4066 = vmatpush1.bf16.msra.mxu1 %v11817_v10  ;;  %v11879_v38 = vld [vmem:[#allocation11 + $0x2ac] ss:$16 sps:$4 sm:$0xff]   ;;  %v11874_v10 = vld [vmem:[#allocation11 + $0x2a0] ss:$16 sps:$4 sm:$0xff]  }
 0x419   :  { %3985 = vmatprep.subr.bf16.mxu0 %v11822_v39  ;;  %4067 = vmatprep.subr.bf16.mxu1 %v11825_v40  ;;  %v11877_v39 = vld [vmem:[#allocation11 + $0x2a8] ss:$16 sps:$4 sm:$0xff]   ;;  %v11882_v40 = vld [vmem:[#allocation11 + $0x2c4] ss:$16 sps:$4 sm:$0xff]  }
 0x41c   :  { %3986 = vmatpush1.bf16.msra.mxu0 %v11820_v41  ;;  %4068 = vmatpush1.bf16.msra.mxu1 %v11823_v42  ;;  %v11885_v41 = vld [vmem:[#allocation11 + $0x2cc] ss:$16 sps:$4 sm:$0xff]   ;;  %v11880_v42 = vld [vmem:[#allocation11 + $0x2c0] ss:$16 sps:$4 sm:$0xff]  }
 0x41d   :  { %3987 = vmatprep.subr.bf16.mxu0 %v11828_v43  ;;  %4069 = vmatprep.subr.bf16.mxu1 %v11831_v12  ;;  %v11883_v43 = vld [vmem:[#allocation11 + $0x2c8] ss:$16 sps:$4 sm:$0xff]   ;;  %v11888_v12 = vld [vmem:[#allocation11 + $0x2e4] ss:$16 sps:$4 sm:$0xff]  }
 0x420   :  { %3988 = vmatpush1.bf16.msra.mxu0 %v11826_v44  ;;  %4070 = vmatpush1.bf16.msra.mxu1 %v11829_v45  ;;  %v11891_v44 = vld [vmem:[#allocation11 + $0x2ec] ss:$16 sps:$4 sm:$0xff]   ;;  %v11886_v45 = vld [vmem:[#allocation11 + $0x2e0] ss:$16 sps:$4 sm:$0xff]  }
 0x421   :  { %3989 = vmatprep.subr.bf16.mxu0 %v11834_v46  ;;  %4071 = vmatprep.subr.bf16.mxu1 %v11837_v47  ;;  %v11889_v46 = vld [vmem:[#allocation11 + $0x2e8] ss:$16 sps:$4 sm:$0xff]   ;;  %v11894_v47 = vld [vmem:[#allocation11 + $0x304] ss:$16 sps:$4 sm:$0xff]  }
 0x424   :  { %3990 = vmatpush1.bf16.msra.mxu0 %v11832_v48  ;;  %4072 = vmatpush1.bf16.msra.mxu1 %v11835_v21  ;;  %v11897_v48 = vld [vmem:[#allocation11 + $0x30c] ss:$16 sps:$4 sm:$0xff]   ;;  %v11892_v21 = vld [vmem:[#allocation11 + $0x300] ss:$16 sps:$4 sm:$0xff]  }
 0x425   :  { %3991 = vmatprep.subr.bf16.mxu0 %v11840_v49  ;;  %4073 = vmatprep.subr.bf16.mxu1 %v11843_v50  ;;  %v11895_v49 = vld [vmem:[#allocation11 + $0x308] ss:$16 sps:$4 sm:$0xff]   ;;  %v11900_v50 = vld [vmem:[#allocation11 + $0x324] ss:$16 sps:$4 sm:$0xff]  }
 0x428   :  { %3992 = vmatpush1.bf16.msra.mxu0 %v11838_v51  ;;  %4074 = vmatpush1.bf16.msra.mxu1 %v11841_v53  ;;  %v11903_v51 = vld [vmem:[#allocation11 + $0x32c] ss:$16 sps:$4 sm:$0xff]   ;;  %v11898_v53 = vld [vmem:[#allocation11 + $0x320] ss:$16 sps:$4 sm:$0xff]  }
 0x429   :  { %4002 = vmatprep.subr.bf16.mxu0 %v11846_v27  ;;  %4084 = vmatprep.subr.bf16.mxu1 %v11849_v54  ;;  %v11901_v27 = vld [vmem:[#allocation11 + $0x328] ss:$16 sps:$4 sm:$0xff]   ;;  %v11906_v54 = vld [vmem:[#allocation11 + $0x344] ss:$16 sps:$4 sm:$0xff]  }
 0x4be   :  { %v3074_v59 = vpop.f32.mrb[12].mxu0  ;;  %v13418_v60 = vpop.f32.mrb[12].mxu1 }
 0x4bf   :  { %v11051_v61 = vadd.f32 %v3074_v59, %v2342_v56  ;;  %v3076_v62 = vpop.f32.mrb[13].mxu0  ;;  %v3158_v63 = vpop.f32.mrb[13].mxu1  ;;  %v11909_v56 = vld [vmem:[#allocation11 + $0x34c] ss:$16 sps:$4 sm:$0xff]   ;;  %v11912_v59 = vld [vmem:[#allocation11 + $0x364] ss:$16 sps:$4 sm:$0xff]  }
 0x4c0   :  { %v11052_v0 = vadd.f32 %v3076_v62, %v2346_v57  ;;  %v11054_v1 = vadd.f32 %v3158_v63, %v2354_v58  ;;  %v3078_v2 = vpop.f32.mrb[14].mxu0  ;;  %v3160_v3 = vpop.f32.mrb[14].mxu1  ;;  %v11904_v57 = vld [vmem:[#allocation11 + $0x340] ss:$16 sps:$4 sm:$0xff]   ;;  %v11907_v58 = vld [vmem:[#allocation11 + $0x348] ss:$16 sps:$4 sm:$0xff]  }
 0x4c1   :  { %v3163_v4 = vmax.f32 %v11051_v61, 0.0  ;;  %v3079_v5 = vpop.f32.mrb[15].mxu0  ;;  %v3161_v6 = vpop.f32.mrb[15].mxu1  ;;  %v11915_v61 = vld [vmem:[#allocation11 + $0x36c] ss:$16 sps:$4 sm:$0xff]  }
 0x4c2   :  { %v3164_v7 = vmax.f32 %v11052_v0, 0.0  ;;  %v3166_v8 = vmax.f32 %v11054_v1, 0.0  ;;  %v11910_v62 = vld [vmem:[#allocation11 + $0x360] ss:$16 sps:$4 sm:$0xff]   ;;  %v11913_v63 = vld [vmem:[#allocation11 + $0x368] ss:$16 sps:$4 sm:$0xff]  }
 0x4c3   :  { %v13422_v16 = vpack.c.bf16 %v3163_v4, %v3163_v4  ;;  %v11918_v0 = vld [vmem:[#allocation11 + $0x384] ss:$16 sps:$4 sm:$0xff]   ;;  %v11921_v1 = vld [vmem:[#allocation11 + $0x38c] ss:$16 sps:$4 sm:$0xff]   ;;  %v11916_v2 = vld [vmem:[#allocation11 + $0x380] ss:$16 sps:$4 sm:$0xff]  }
 0x4c4   :  { %v13420_v9 = vpack.c.bf16 %v3164_v7, %v3164_v7  ;;  %v13426_v19 = vpack.c.bf16 %v3166_v8, %v3166_v8  ;;  %v11919_v3 = vld [vmem:[#allocation11 + $0x388] ss:$16 sps:$4 sm:$0xff]   ;;  %v11924_v4 = vld [vmem:[#allocation11 + $0x3a4] ss:$16 sps:$4 sm:$0xff]   ;;  %v11927_v5 = vld [vmem:[#allocation11 + $0x3ac] ss:$16 sps:$4 sm:$0xff]   ;;  %v2350_v8 = vrot.slane %v13410_v55, %v13379_v29 }
 0x4c5   :  { %v11922_v6 = vld [vmem:[#allocation11 + $0x3a0] ss:$16 sps:$4 sm:$0xff]   ;;  %v11925_v7 = vld [vmem:[#allocation11 + $0x3a8] ss:$16 sps:$4 sm:$0xff]   ;;  %v11942_v55 = vld [vmem:[#allocation11 + $0x404] ss:$16 sps:$4 sm:$0xff]  }
 0x4c6   :  { %3993 = vmatprep.mubr.bf16.mxu0 %v13420_v9  ;;  %4075 = vmatprep.mubr.bf16.mxu1 %v13420_v9 }
 0x4c7   :  { %3994 = vmatmul.mubr.bf16.vlgmr.msra.gmra.mrb[16].mxu0 %v13422_v16  ;;  %4076 = vmatmul.mubr.bf16.vlgmr.msra.gmra.mrb[16].mxu1 %v13422_v16 }
 0x4c8   :  { %4003 = vmatpush1.bf16.msra.mxu0 %v11844_v15  ;;  %4085 = vmatpush1.bf16.msra.mxu1 %v11847_v23  ;;  %v11930_v15 = vld [vmem:[#allocation11 + $0x3c4] ss:$16 sps:$4 sm:$0xff]   ;;  %v11933_v23 = vld [vmem:[#allocation11 + $0x3cc] ss:$16 sps:$4 sm:$0xff]  }
 0x4c9   :  { %4034 = vmatprep.mubr.bf16.mxu0 %v13426_v19  ;;  %4116 = vmatprep.mubr.bf16.mxu1 %v13426_v19 }
 0x4ca   :  { %4004 = vmatprep.subr.bf16.mxu0 %v11852_v17  ;;  %4086 = vmatprep.subr.bf16.mxu1 %v11855_v18  ;;  %v11928_v17 = vld [vmem:[#allocation11 + $0x3c0] ss:$16 sps:$4 sm:$0xff]   ;;  %v11931_v18 = vld [vmem:[#allocation11 + $0x3c8] ss:$16 sps:$4 sm:$0xff]  }
 0x4cc   :  { %4005 = vmatpush1.bf16.msra.mxu0 %v11850_v52  ;;  %4087 = vmatpush1.bf16.msra.mxu1 %v11853_v20  ;;  %v11053_v52 = vadd.f32 %v13418_v60, %v2350_v8  ;;  %v11936_v20 = vld [vmem:[#allocation11 + $0x3e4] ss:$16 sps:$4 sm:$0xff]   ;;  %v12011_v8 = vld [vmem:[#allocation11 + $0x56c] ss:$16 sps:$4 sm:$0xff]  }
 0x4cd   :  { %4006 = vmatprep.subr.bf16.mxu0 %v11858_v22  ;;  %4088 = vmatprep.subr.bf16.mxu1 %v11861_v24  ;;  %v11939_v22 = vld [vmem:[#allocation11 + $0x3ec] ss:$16 sps:$4 sm:$0xff]   ;;  %v11934_v24 = vld [vmem:[#allocation11 + $0x3e0] ss:$16 sps:$4 sm:$0xff]   ;;  %v11948_v60 = vld [vmem:[#allocation11 + $0x424] ss:$16 sps:$4 sm:$0xff]  }
 0x4d0   :  { %4007 = vmatpush1.bf16.msra.mxu0 %v11856_v25  ;;  %4089 = vmatpush1.bf16.msra.mxu1 %v11859_v26  ;;  %v11937_v25 = vld [vmem:[#allocation11 + $0x3e8] ss:$16 sps:$4 sm:$0xff]   ;;  %v3165_v26 = vmax.f32 %v11053_v52, 0.0  ;;  %v12012_v52 = vld [vmem:[#allocation11 + $0x580] ss:$16 sps:$4 sm:$0xff]  }
 0x4d1   :  { %4008 = vmatprep.subr.bf16.mxu0 %v11864_v28  ;;  %4090 = vmatprep.subr.bf16.mxu1 %v11867_v30  ;;  %v11945_v28 = vld [vmem:[#allocation11 + $0x40c] ss:$16 sps:$4 sm:$0xff]   ;;  %v11940_v30 = vld [vmem:[#allocation11 + $0x400] ss:$16 sps:$4 sm:$0xff]  }
 0x4d4   :  { %4009 = vmatpush1.bf16.msra.mxu0 %v11862_v31  ;;  %4091 = vmatpush1.bf16.msra.mxu1 %v11865_v32  ;;  %v11943_v31 = vld [vmem:[#allocation11 + $0x408] ss:$16 sps:$4 sm:$0xff]   ;;  %v13435_v32 = vpack.c.bf16 %v3165_v26, %v3165_v26 }
 0x4d5   :  { %4010 = vmatprep.subr.bf16.mxu0 %v11870_v33  ;;  %4092 = vmatprep.subr.bf16.mxu1 %v11873_v34  ;;  %v11951_v33 = vld [vmem:[#allocation11 + $0x42c] ss:$16 sps:$4 sm:$0xff]   ;;  %v11946_v34 = vld [vmem:[#allocation11 + $0x420] ss:$16 sps:$4 sm:$0xff]   ;;  %v12021_v26 = vld [vmem:[#allocation11 + $0x5a8] ss:$16 sps:$4 sm:$0xff]  }
 0x4d8   :  { %4011 = vmatpush1.bf16.msra.mxu0 %v11868_v35  ;;  %4093 = vmatpush1.bf16.msra.mxu1 %v11871_v36  ;;  %v11949_v35 = vld [vmem:[#allocation11 + $0x428] ss:$16 sps:$4 sm:$0xff]   ;;  %v11954_v36 = vld [vmem:[#allocation11 + $0x444] ss:$16 sps:$4 sm:$0xff]  }
 0x4d9   :  { %4012 = vmatprep.subr.bf16.mxu0 %v11876_v37  ;;  %4094 = vmatprep.subr.bf16.mxu1 %v11879_v38  ;;  %v11957_v37 = vld [vmem:[#allocation11 + $0x44c] ss:$16 sps:$4 sm:$0xff]   ;;  %v11952_v38 = vld [vmem:[#allocation11 + $0x440] ss:$16 sps:$4 sm:$0xff]  }
 0x4dc   :  { %4013 = vmatpush1.bf16.msra.mxu0 %v11874_v10  ;;  %4095 = vmatpush1.bf16.msra.mxu1 %v11877_v39  ;;  %v11955_v10 = vld [vmem:[#allocation11 + $0x448] ss:$16 sps:$4 sm:$0xff]   ;;  %v11960_v39 = vld [vmem:[#allocation11 + $0x464] ss:$16 sps:$4 sm:$0xff]  }
 0x4dd   :  { %4014 = vmatprep.subr.bf16.mxu0 %v11882_v40  ;;  %4096 = vmatprep.subr.bf16.mxu1 %v11885_v41  ;;  %v11963_v40 = vld [vmem:[#allocation11 + $0x46c] ss:$16 sps:$4 sm:$0xff]   ;;  %v11958_v41 = vld [vmem:[#allocation11 + $0x460] ss:$16 sps:$4 sm:$0xff]  }
 0x4e0   :  { %4015 = vmatpush1.bf16.msra.mxu0 %v11880_v42  ;;  %4097 = vmatpush1.bf16.msra.mxu1 %v11883_v43  ;;  %v11961_v42 = vld [vmem:[#allocation11 + $0x468] ss:$16 sps:$4 sm:$0xff]   ;;  %v11966_v43 = vld [vmem:[#allocation11 + $0x484] ss:$16 sps:$4 sm:$0xff]  }
 0x4e1   :  { %4016 = vmatprep.subr.bf16.mxu0 %v11888_v12  ;;  %4098 = vmatprep.subr.bf16.mxu1 %v11891_v44  ;;  %v11969_v12 = vld [vmem:[#allocation11 + $0x48c] ss:$16 sps:$4 sm:$0xff]   ;;  %v11964_v44 = vld [vmem:[#allocation11 + $0x480] ss:$16 sps:$4 sm:$0xff]  }
 0x4e4   :  { %4017 = vmatpush1.bf16.msra.mxu0 %v11886_v45  ;;  %4099 = vmatpush1.bf16.msra.mxu1 %v11889_v46  ;;  %v11967_v45 = vld [vmem:[#allocation11 + $0x488] ss:$16 sps:$4 sm:$0xff]   ;;  %v11972_v46 = vld [vmem:[#allocation11 + $0x4a4] ss:$16 sps:$4 sm:$0xff]  }
 0x4e5   :  { %4018 = vmatprep.subr.bf16.mxu0 %v11894_v47  ;;  %4100 = vmatprep.subr.bf16.mxu1 %v11897_v48  ;;  %v11975_v47 = vld [vmem:[#allocation11 + $0x4ac] ss:$16 sps:$4 sm:$0xff]   ;;  %v11970_v48 = vld [vmem:[#allocation11 + $0x4a0] ss:$16 sps:$4 sm:$0xff]  }
 0x4e8   :  { %4019 = vmatpush1.bf16.msra.mxu0 %v11892_v21  ;;  %4101 = vmatpush1.bf16.msra.mxu1 %v11895_v49  ;;  %v11973_v21 = vld [vmem:[#allocation11 + $0x4a8] ss:$16 sps:$4 sm:$0xff]   ;;  %v11978_v49 = vld [vmem:[#allocation11 + $0x4c4] ss:$16 sps:$4 sm:$0xff]  }
 0x4e9   :  { %4020 = vmatprep.subr.bf16.mxu0 %v11900_v50  ;;  %4102 = vmatprep.subr.bf16.mxu1 %v11903_v51  ;;  %v11981_v50 = vld [vmem:[#allocation11 + $0x4cc] ss:$16 sps:$4 sm:$0xff]   ;;  %v11976_v51 = vld [vmem:[#allocation11 + $0x4c0] ss:$16 sps:$4 sm:$0xff]  }
 0x4ec   :  { %4021 = vmatpush1.bf16.msra.mxu0 %v11898_v53  ;;  %4103 = vmatpush1.bf16.msra.mxu1 %v11901_v27  ;;  %v11979_v53 = vld [vmem:[#allocation11 + $0x4c8] ss:$16 sps:$4 sm:$0xff]   ;;  %v11984_v27 = vld [vmem:[#allocation11 + $0x4e4] ss:$16 sps:$4 sm:$0xff]  }
 0x4ed   :  { %4022 = vmatprep.subr.bf16.mxu0 %v11906_v54  ;;  %4104 = vmatprep.subr.bf16.mxu1 %v11909_v56  ;;  %v11987_v54 = vld [vmem:[#allocation11 + $0x4ec] ss:$16 sps:$4 sm:$0xff]   ;;  %v11982_v56 = vld [vmem:[#allocation11 + $0x4e0] ss:$16 sps:$4 sm:$0xff]  }
 0x4f0   :  { %4023 = vmatpush1.bf16.msra.mxu0 %v11904_v57  ;;  %4105 = vmatpush1.bf16.msra.mxu1 %v11907_v58  ;;  %v11985_v57 = vld [vmem:[#allocation11 + $0x4e8] ss:$16 sps:$4 sm:$0xff]   ;;  %v11990_v58 = vld [vmem:[#allocation11 + $0x504] ss:$16 sps:$4 sm:$0xff]  }
 0x4f1   :  { %4024 = vmatprep.subr.bf16.mxu0 %v11912_v59  ;;  %4106 = vmatprep.subr.bf16.mxu1 %v11915_v61  ;;  %v11993_v59 = vld [vmem:[#allocation11 + $0x50c] ss:$16 sps:$4 sm:$0xff]   ;;  %v11988_v61 = vld [vmem:[#allocation11 + $0x500] ss:$16 sps:$4 sm:$0xff]  }
 0x4f4   :  { %4025 = vmatpush1.bf16.msra.mxu0 %v11910_v62  ;;  %4107 = vmatpush1.bf16.msra.mxu1 %v11913_v63  ;;  %v11991_v62 = vld [vmem:[#allocation11 + $0x508] ss:$16 sps:$4 sm:$0xff]   ;;  %v11996_v63 = vld [vmem:[#allocation11 + $0x524] ss:$16 sps:$4 sm:$0xff]  }
 0x4f5   :  { %4026 = vmatprep.subr.bf16.mxu0 %v11918_v0  ;;  %4108 = vmatprep.subr.bf16.mxu1 %v11921_v1  ;;  %v11999_v0 = vld [vmem:[#allocation11 + $0x52c] ss:$16 sps:$4 sm:$0xff]   ;;  %v11994_v1 = vld [vmem:[#allocation11 + $0x520] ss:$16 sps:$4 sm:$0xff]  }
 0x4f8   :  { %4027 = vmatpush1.bf16.msra.mxu0 %v11916_v2  ;;  %4109 = vmatpush1.bf16.msra.mxu1 %v11919_v3  ;;  %v11997_v2 = vld [vmem:[#allocation11 + $0x528] ss:$16 sps:$4 sm:$0xff]   ;;  %v12002_v3 = vld [vmem:[#allocation11 + $0x544] ss:$16 sps:$4 sm:$0xff]  }
 0x4f9   :  { %4028 = vmatprep.subr.bf16.mxu0 %v11924_v4  ;;  %4110 = vmatprep.subr.bf16.mxu1 %v11927_v5  ;;  %v12005_v4 = vld [vmem:[#allocation11 + $0x54c] ss:$16 sps:$4 sm:$0xff]   ;;  %v12000_v5 = vld [vmem:[#allocation11 + $0x540] ss:$16 sps:$4 sm:$0xff]  }
 0x4fc   :  { %4029 = vmatpush1.bf16.msra.mxu0 %v11922_v6  ;;  %4111 = vmatpush1.bf16.msra.mxu1 %v11925_v7  ;;  %v12003_v6 = vld [vmem:[#allocation11 + $0x548] ss:$16 sps:$4 sm:$0xff]   ;;  %v12008_v7 = vld [vmem:[#allocation11 + $0x564] ss:$16 sps:$4 sm:$0xff]  }
 0x4fd   :  { %4030 = vmatprep.subr.bf16.mxu0 %v11930_v15  ;;  %4112 = vmatprep.subr.bf16.mxu1 %v11933_v23  ;;  %v12006_v15 = vld [vmem:[#allocation11 + $0x560] ss:$16 sps:$4 sm:$0xff]   ;;  %v12009_v23 = vld [vmem:[#allocation11 + $0x568] ss:$16 sps:$4 sm:$0xff]  }
 0x500   :  { %4031 = vmatpush1.bf16.msra.mxu0 %v11928_v17  ;;  %4113 = vmatpush1.bf16.msra.mxu1 %v11931_v18  ;;  %v12014_v17 = vld [vmem:[#allocation11 + $0x584] ss:$16 sps:$4 sm:$0xff]   ;;  %v12017_v18 = vld [vmem:[#allocation11 + $0x58c] ss:$16 sps:$4 sm:$0xff]  }
 0x501   :  { %4032 = vmatprep.subr.bf16.mxu0 %v11936_v20  ;;  %4114 = vmatprep.subr.bf16.mxu1 %v11939_v22  ;;  %v12015_v20 = vld [vmem:[#allocation11 + $0x588] ss:$16 sps:$4 sm:$0xff]   ;;  %v12020_v22 = vld [vmem:[#allocation11 + $0x5a4] ss:$16 sps:$4 sm:$0xff]  }
 0x504   :  { %4033 = vmatpush1.bf16.msra.mxu0 %v11934_v24  ;;  %4115 = vmatpush1.bf16.msra.mxu1 %v11937_v25  ;;  %v12023_v24 = vld [vmem:[#allocation11 + $0x5ac] ss:$16 sps:$4 sm:$0xff]   ;;  %v12018_v25 = vld [vmem:[#allocation11 + $0x5a0] ss:$16 sps:$4 sm:$0xff]  }
 0x505   :  { %4925 = vmatprep.subr.bf16.mxu0 %v11942_v55  ;;  %5007 = vmatprep.subr.bf16.mxu1 %v11945_v28  ;;  %v12026_v55 = vld [vmem:[#allocation11 + $0x5c4] ss:$16 sps:$4 sm:$0xff]   ;;  %v12029_v28 = vld [vmem:[#allocation11 + $0x5cc] ss:$16 sps:$4 sm:$0xff]  }
 0x507   :  { %4035 = vmatmul.mubr.bf16.vlgmr.msra.gmra.mrb[16].mxu0 %v13435_v32  ;;  %4117 = vmatmul.mubr.bf16.vlgmr.msra.gmra.mrb[16].mxu1 %v13435_v32 }
 0x508   :  { %4926 = vmatpush1.bf16.msra.mxu0 %v11940_v30  ;;  %5008 = vmatpush1.bf16.msra.mxu1 %v11943_v31  ;;  %v12024_v30 = vld [vmem:[#allocation11 + $0x5c0] ss:$16 sps:$4 sm:$0xff]   ;;  %v12027_v31 = vld [vmem:[#allocation11 + $0x5c8] ss:$16 sps:$4 sm:$0xff]  }
 0x509   :  { %4927 = vmatprep.subr.bf16.mxu0 %v11948_v60  ;;  %5009 = vmatprep.subr.bf16.mxu1 %v11951_v33  ;;  %v12032_v60 = vld [vmem:[#allocation11 + $0x5e4] ss:$16 sps:$4 sm:$0xff]   ;;  %v12035_v33 = vld [vmem:[#allocation11 + $0x5ec] ss:$16 sps:$4 sm:$0xff]  }
 0x50c   :  { %4928 = vmatpush1.bf16.msra.mxu0 %v11946_v34  ;;  %5010 = vmatpush1.bf16.msra.mxu1 %v11949_v35  ;;  %v12030_v34 = vld [vmem:[#allocation11 + $0x5e0] ss:$16 sps:$4 sm:$0xff]   ;;  %v12033_v35 = vld [vmem:[#allocation11 + $0x5e8] ss:$16 sps:$4 sm:$0xff]  }
 0x50d   :  { %4929 = vmatprep.subr.bf16.mxu0 %v11954_v36  ;;  %5011 = vmatprep.subr.bf16.mxu1 %v11957_v37  ;;  %v12038_v36 = vld [vmem:[#allocation11 + $0x604] ss:$16 sps:$4 sm:$0xff]   ;;  %v12041_v37 = vld [vmem:[#allocation11 + $0x60c] ss:$16 sps:$4 sm:$0xff]  }
 0x510   :  { %4930 = vmatpush1.bf16.msra.mxu0 %v11952_v38  ;;  %5012 = vmatpush1.bf16.msra.mxu1 %v11955_v10  ;;  %v13439_v38 = vld [vmem:[#allocation13] sm:$0xf] }
 0x511   :  { %4931 = vmatprep.subr.bf16.mxu0 %v11960_v39  ;;  %5013 = vmatprep.subr.bf16.mxu1 %v11963_v40  ;;  %v3304_v10 = vrot.slane %v13439_v38, %v13360_v11  ;;  %v3308_v39 = vrot.slane %v13439_v38, %v13365_v13  ;;  %v3316_v40 = vrot.slane %v13439_v38, %v13368_v14 }
 0x514   :  { %4932 = vmatpush1.bf16.msra.mxu0 %v11958_v41  ;;  %5014 = vmatpush1.bf16.msra.mxu1 %v11961_v42 }
 0x515   :  { %4933 = vmatprep.subr.bf16.mxu0 %v11966_v43  ;;  %5015 = vmatprep.subr.bf16.mxu1 %v11969_v12 }
 0x518   :  { %4934 = vmatpush1.bf16.msra.mxu0 %v11964_v44  ;;  %5016 = vmatpush1.bf16.msra.mxu1 %v11967_v45 }
 0x519   :  { %4935 = vmatprep.subr.bf16.mxu0 %v11972_v46  ;;  %5017 = vmatprep.subr.bf16.mxu1 %v11975_v47 }
 0x51c   :  { %4936 = vmatpush1.bf16.msra.mxu0 %v11970_v48  ;;  %5018 = vmatpush1.bf16.msra.mxu1 %v11973_v21 }
 0x51d   :  { %4937 = vmatprep.subr.bf16.mxu0 %v11978_v49  ;;  %5019 = vmatprep.subr.bf16.mxu1 %v11981_v50 }
 0x520   :  { %4938 = vmatpush1.bf16.msra.mxu0 %v11976_v51  ;;  %5020 = vmatpush1.bf16.msra.mxu1 %v11979_v53 }
 0x521   :  { %4939 = vmatprep.subr.bf16.mxu0 %v11984_v27  ;;  %5021 = vmatprep.subr.bf16.mxu1 %v11987_v54  ;;  %v12036_v54 = vld [vmem:[#allocation11 + $0x600] ss:$16 sps:$4 sm:$0xff]  }
 0x524   :  { %4940 = vmatpush1.bf16.msra.mxu0 %v11982_v56  ;;  %5022 = vmatpush1.bf16.msra.mxu1 %v11985_v57  ;;  %v12039_v56 = vld [vmem:[#allocation11 + $0x608] ss:$16 sps:$4 sm:$0xff]  }
 0x525   :  { %4941 = vmatprep.subr.bf16.mxu0 %v11990_v58  ;;  %5023 = vmatprep.subr.bf16.mxu1 %v11993_v59  ;;  %v12044_v58 = vld [vmem:[#allocation11 + $0x624] ss:$16 sps:$4 sm:$0xff]   ;;  %v12047_v59 = vld [vmem:[#allocation11 + $0x62c] ss:$16 sps:$4 sm:$0xff]  }
 0x528   :  { %4942 = vmatpush1.bf16.msra.mxu0 %v11988_v61  ;;  %5024 = vmatpush1.bf16.msra.mxu1 %v11991_v62  ;;  %v12042_v62 = vld [vmem:[#allocation11 + $0x620] ss:$16 sps:$4 sm:$0xff]  }
 0x529   :  { %4943 = vmatprep.subr.bf16.mxu0 %v11996_v63  ;;  %5025 = vmatprep.subr.bf16.mxu1 %v11999_v0  ;;  %v12045_v63 = vld [vmem:[#allocation11 + $0x628] ss:$16 sps:$4 sm:$0xff]   ;;  %v12050_v0 = vld [vmem:[#allocation11 + $0x644] ss:$16 sps:$4 sm:$0xff]  }
 0x52c   :  { %4944 = vmatpush1.bf16.msra.mxu0 %v11994_v1  ;;  %5026 = vmatpush1.bf16.msra.mxu1 %v11997_v2  ;;  %v12053_v1 = vld [vmem:[#allocation11 + $0x64c] ss:$16 sps:$4 sm:$0xff]   ;;  %v12048_v2 = vld [vmem:[#allocation11 + $0x640] ss:$16 sps:$4 sm:$0xff]  }
 0x52d   :  { %4945 = vmatprep.subr.bf16.mxu0 %v12002_v3  ;;  %5027 = vmatprep.subr.bf16.mxu1 %v12005_v4  ;;  %v12051_v3 = vld [vmem:[#allocation11 + $0x648] ss:$16 sps:$4 sm:$0xff]   ;;  %v12056_v4 = vld [vmem:[#allocation11 + $0x664] ss:$16 sps:$4 sm:$0xff]  }
 0x530   :  { %4946 = vmatpush1.bf16.msra.mxu0 %v12000_v5  ;;  %5028 = vmatpush1.bf16.msra.mxu1 %v12003_v6  ;;  %v12059_v5 = vld [vmem:[#allocation11 + $0x66c] ss:$16 sps:$4 sm:$0xff]   ;;  %v12054_v6 = vld [vmem:[#allocation11 + $0x660] ss:$16 sps:$4 sm:$0xff]  }
 0x531   :  { %4947 = vmatprep.subr.bf16.mxu0 %v12008_v7  ;;  %5029 = vmatprep.subr.bf16.mxu1 %v12011_v8  ;;  %v12057_v7 = vld [vmem:[#allocation11 + $0x668] ss:$16 sps:$4 sm:$0xff]   ;;  %v12062_v8 = vld [vmem:[#allocation11 + $0x684] ss:$16 sps:$4 sm:$0xff]  }
 0x534   :  { %4948 = vmatpush1.bf16.msra.mxu0 %v12006_v15  ;;  %5030 = vmatpush1.bf16.msra.mxu1 %v12009_v23  ;;  %v12065_v15 = vld [vmem:[#allocation11 + $0x68c] ss:$16 sps:$4 sm:$0xff]   ;;  %v12060_v23 = vld [vmem:[#allocation11 + $0x680] ss:$16 sps:$4 sm:$0xff]  }
 0x535   :  { %4949 = vmatprep.subr.bf16.mxu0 %v12014_v17  ;;  %5031 = vmatprep.subr.bf16.mxu1 %v12017_v18  ;;  %v12063_v17 = vld [vmem:[#allocation11 + $0x688] ss:$16 sps:$4 sm:$0xff]   ;;  %v12068_v18 = vld [vmem:[#allocation11 + $0x6a4] ss:$16 sps:$4 sm:$0xff]  }
 0x538   :  { %4950 = vmatpush1.bf16.msra.mxu0 %v12012_v52  ;;  %5032 = vmatpush1.bf16.msra.mxu1 %v12015_v20  ;;  %v12071_v52 = vld [vmem:[#allocation11 + $0x6ac] ss:$16 sps:$4 sm:$0xff]   ;;  %v12066_v20 = vld [vmem:[#allocation11 + $0x6a0] ss:$16 sps:$4 sm:$0xff]  }
 0x539   :  { %4951 = vmatprep.subr.bf16.mxu0 %v12020_v22  ;;  %5033 = vmatprep.subr.bf16.mxu1 %v12023_v24  ;;  %v12069_v22 = vld [vmem:[#allocation11 + $0x6a8] ss:$16 sps:$4 sm:$0xff]   ;;  %v12074_v24 = vld [vmem:[#allocation11 + $0x6c4] ss:$16 sps:$4 sm:$0xff]  }
 0x53c   :  { %4952 = vmatpush1.bf16.msra.mxu0 %v12018_v25  ;;  %5034 = vmatpush1.bf16.msra.mxu1 %v12021_v26  ;;  %v12077_v25 = vld [vmem:[#allocation11 + $0x6cc] ss:$16 sps:$4 sm:$0xff]   ;;  %v12072_v26 = vld [vmem:[#allocation11 + $0x6c0] ss:$16 sps:$4 sm:$0xff]  }
 0x53d   :  { %4953 = vmatprep.subr.bf16.mxu0 %v12026_v55  ;;  %5035 = vmatprep.subr.bf16.mxu1 %v12029_v28  ;;  %v12075_v55 = vld [vmem:[#allocation11 + $0x6c8] ss:$16 sps:$4 sm:$0xff]   ;;  %v12080_v28 = vld [vmem:[#allocation11 + $0x6e4] ss:$16 sps:$4 sm:$0xff]  }
 0x540   :  { %4954 = vmatpush1.bf16.msra.mxu0 %v12024_v30  ;;  %5036 = vmatpush1.bf16.msra.mxu1 %v12027_v31  ;;  %v12083_v30 = vld [vmem:[#allocation11 + $0x6ec] ss:$16 sps:$4 sm:$0xff]   ;;  %v12078_v31 = vld [vmem:[#allocation11 + $0x6e0] ss:$16 sps:$4 sm:$0xff]  }
 0x541   :  { %4955 = vmatprep.subr.bf16.mxu0 %v12032_v60  ;;  %5037 = vmatprep.subr.bf16.mxu1 %v12035_v33  ;;  %v12081_v60 = vld [vmem:[#allocation11 + $0x6e8] ss:$16 sps:$4 sm:$0xff]   ;;  %v12086_v33 = vld [vmem:[#allocation11 + $0x704] ss:$16 sps:$4 sm:$0xff]  }
 0x544   :  { %4956 = vmatpush1.bf16.msra.mxu0 %v12030_v34  ;;  %5038 = vmatpush1.bf16.msra.mxu1 %v12033_v35  ;;  %v12089_v34 = vld [vmem:[#allocation11 + $0x70c] ss:$16 sps:$4 sm:$0xff]   ;;  %v12084_v35 = vld [vmem:[#allocation11 + $0x700] ss:$16 sps:$4 sm:$0xff]  }
 0x545   :  { %4966 = vmatprep.subr.bf16.mxu0 %v12038_v36  ;;  %5048 = vmatprep.subr.bf16.mxu1 %v12041_v37  ;;  %v12087_v36 = vld [vmem:[#allocation11 + $0x708] ss:$16 sps:$4 sm:$0xff]   ;;  %v12092_v37 = vld [vmem:[#allocation11 + $0x724] ss:$16 sps:$4 sm:$0xff]  }
 0x5da   :  { %v4036_v41 = vpop.f32.mrb[16].mxu0  ;;  %v13447_v42 = vpop.f32.mrb[16].mxu1 }
 0x5db   :  { %v11055_v43 = vadd.f32 %v4036_v41, %v3304_v10  ;;  %v4038_v12 = vpop.f32.mrb[17].mxu0  ;;  %v4120_v44 = vpop.f32.mrb[17].mxu1  ;;  %v12095_v10 = vld [vmem:[#allocation11 + $0x72c] ss:$16 sps:$4 sm:$0xff]   ;;  %v12098_v41 = vld [vmem:[#allocation11 + $0x744] ss:$16 sps:$4 sm:$0xff]  }
 0x5dc   :  { %v11056_v45 = vadd.f32 %v4038_v12, %v3308_v39  ;;  %v11058_v46 = vadd.f32 %v4120_v44, %v3316_v40  ;;  %v4040_v47 = vpop.f32.mrb[18].mxu0  ;;  %v4122_v48 = vpop.f32.mrb[18].mxu1  ;;  %v12090_v39 = vld [vmem:[#allocation11 + $0x720] ss:$16 sps:$4 sm:$0xff]   ;;  %v12093_v40 = vld [vmem:[#allocation11 + $0x728] ss:$16 sps:$4 sm:$0xff]  }
 0x5dd   :  { %v4125_v21 = vmax.f32 %v11055_v43, 0.0  ;;  %v4041_v49 = vpop.f32.mrb[19].mxu0  ;;  %v4123_v50 = vpop.f32.mrb[19].mxu1  ;;  %v12101_v43 = vld [vmem:[#allocation11 + $0x74c] ss:$16 sps:$4 sm:$0xff]  }
 0x5de   :  { %v4126_v51 = vmax.f32 %v11056_v45, 0.0  ;;  %v4128_v53 = vmax.f32 %v11058_v46, 0.0  ;;  %v12096_v12 = vld [vmem:[#allocation11 + $0x740] ss:$16 sps:$4 sm:$0xff]   ;;  %v12099_v44 = vld [vmem:[#allocation11 + $0x748] ss:$16 sps:$4 sm:$0xff]  }
 0x5df   :  { %v4129_v57 = vpack.c.bf16 %v4125_v21, %v4125_v21  ;;  %v12104_v45 = vld [vmem:[#allocation11 + $0x764] ss:$16 sps:$4 sm:$0xff]   ;;  %v12107_v46 = vld [vmem:[#allocation11 + $0x76c] ss:$16 sps:$4 sm:$0xff]   ;;  %v12102_v47 = vld [vmem:[#allocation11 + $0x760] ss:$16 sps:$4 sm:$0xff]  }
 0x5e0   :  { %v4130_v27 = vpack.c.bf16 %v4126_v51, %v4126_v51  ;;  %v4132_v61 = vpack.c.bf16 %v4128_v53, %v4128_v53  ;;  %v12105_v48 = vld [vmem:[#allocation11 + $0x768] ss:$16 sps:$4 sm:$0xff]   ;;  %v12110_v21 = vld [vmem:[#allocation11 + $0x784] ss:$16 sps:$4 sm:$0xff]   ;;  %v12113_v49 = vld [vmem:[#allocation11 + $0x78c] ss:$16 sps:$4 sm:$0xff]  }
 0x5e1   :  { %v12108_v50 = vld [vmem:[#allocation11 + $0x780] ss:$16 sps:$4 sm:$0xff]   ;;  %v12111_v51 = vld [vmem:[#allocation11 + $0x788] ss:$16 sps:$4 sm:$0xff]   ;;  %v12116_v53 = vld [vmem:[#allocation11 + $0x7a4] ss:$16 sps:$4 sm:$0xff]  }
 0x5e2   :  { %4957 = vmatprep.mubr.bf16.mxu0 %v4130_v27  ;;  %5039 = vmatprep.mubr.bf16.mxu1 %v4130_v27  ;;  %v12119_v27 = vld [vmem:[#allocation11 + $0x7ac] ss:$16 sps:$4 sm:$0xff]  }
 0x5e3   :  { %4958 = vmatmul.mubr.bf16.vlgmr.msra.gmra.mrb[20].mxu0 %v4129_v57  ;;  %5040 = vmatmul.mubr.bf16.vlgmr.msra.gmra.mrb[20].mxu1 %v4129_v57  ;;  %v3312_v57 = vrot.slane %v13439_v38, %v13379_v29  ;;  %v12134_v38 = vld [vmem:[#allocation11 + $0x804] ss:$16 sps:$4 sm:$0xff]  }
 0x5e4   :  { %4967 = vmatpush1.bf16.msra.mxu0 %v12036_v54  ;;  %5049 = vmatpush1.bf16.msra.mxu1 %v12039_v56  ;;  %v12114_v54 = vld [vmem:[#allocation11 + $0x7a0] ss:$16 sps:$4 sm:$0xff]   ;;  %v12117_v56 = vld [vmem:[#allocation11 + $0x7a8] ss:$16 sps:$4 sm:$0xff]  }
 0x5e5   :  { %4998 = vmatprep.mubr.bf16.mxu0 %v4132_v61  ;;  %5080 = vmatprep.mubr.bf16.mxu1 %v4132_v61  ;;  %v12120_v61 = vld [vmem:[#allocation11 + $0x7c0] ss:$16 sps:$4 sm:$0xff]  }
 0x5e6   :  { %4968 = vmatprep.subr.bf16.mxu0 %v12044_v58  ;;  %5050 = vmatprep.subr.bf16.mxu1 %v12047_v59  ;;  %v12122_v58 = vld [vmem:[#allocation11 + $0x7c4] ss:$16 sps:$4 sm:$0xff]   ;;  %v12125_v59 = vld [vmem:[#allocation11 + $0x7cc] ss:$16 sps:$4 sm:$0xff]  }
 0x5e8   :  { %4969 = vmatpush1.bf16.msra.mxu0 %v12042_v62  ;;  %5051 = vmatpush1.bf16.msra.mxu1 %v12045_v63  ;;  %v12123_v62 = vld [vmem:[#allocation11 + $0x7c8] ss:$16 sps:$4 sm:$0xff]   ;;  %v11057_v63 = vadd.f32 %v13447_v42, %v3312_v57  ;;  %v12140_v42 = vld [vmem:[#allocation11 + $0x824] ss:$16 sps:$4 sm:$0xff]  }
 0x5e9   :  { %4970 = vmatprep.subr.bf16.mxu0 %v12050_v0  ;;  %5052 = vmatprep.subr.bf16.mxu1 %v12053_v1  ;;  %v12128_v0 = vld [vmem:[#allocation11 + $0x7e4] ss:$16 sps:$4 sm:$0xff]   ;;  %v12131_v1 = vld [vmem:[#allocation11 + $0x7ec] ss:$16 sps:$4 sm:$0xff]  }
 0x5ea   :  { %v12200_v57 = vld [vmem:[#allocation11 + $0x964] ss:$16 sps:$4 sm:$0xff]  }
 0x5ec   :  { %4971 = vmatpush1.bf16.msra.mxu0 %v12048_v2  ;;  %5053 = vmatpush1.bf16.msra.mxu1 %v12051_v3  ;;  %v12126_v2 = vld [vmem:[#allocation11 + $0x7e0] ss:$16 sps:$4 sm:$0xff]   ;;  %v12129_v3 = vld [vmem:[#allocation11 + $0x7e8] ss:$16 sps:$4 sm:$0xff]  }
 0x5ed   :  { %4972 = vmatprep.subr.bf16.mxu0 %v12056_v4  ;;  %5054 = vmatprep.subr.bf16.mxu1 %v12059_v5  ;;  %v4127_v4 = vmax.f32 %v11057_v63, 0.0  ;;  %v12137_v5 = vld [vmem:[#allocation11 + $0x80c] ss:$16 sps:$4 sm:$0xff]  }
 0x5ee   :  { %v12209_v63 = vld [vmem:[#allocation11 + $0x98c] ss:$16 sps:$4 sm:$0xff]  }
 0x5f0   :  { %4973 = vmatpush1.bf16.msra.mxu0 %v12054_v6  ;;  %5055 = vmatpush1.bf16.msra.mxu1 %v12057_v7  ;;  %v12132_v6 = vld [vmem:[#allocation11 + $0x800] ss:$16 sps:$4 sm:$0xff]   ;;  %v12135_v7 = vld [vmem:[#allocation11 + $0x808] ss:$16 sps:$4 sm:$0xff]  }
 0x5f1   :  { %4974 = vmatprep.subr.bf16.mxu0 %v12062_v8  ;;  %5056 = vmatprep.subr.bf16.mxu1 %v12065_v15  ;;  %v4131_v8 = vpack.c.bf16 %v4127_v4, %v4127_v4  ;;  %v12143_v15 = vld [vmem:[#allocation11 + $0x82c] ss:$16 sps:$4 sm:$0xff]   ;;  %v12210_v4 = vld [vmem:[#allocation11 + $0x9a0] ss:$16 sps:$4 sm:$0xff]  }
 0x5f4   :  { %4975 = vmatpush1.bf16.msra.mxu0 %v12060_v23  ;;  %5057 = vmatpush1.bf16.msra.mxu1 %v12063_v17  ;;  %v12138_v23 = vld [vmem:[#allocation11 + $0x820] ss:$16 sps:$4 sm:$0xff]   ;;  %v12141_v17 = vld [vmem:[#allocation11 + $0x828] ss:$16 sps:$4 sm:$0xff]  }
 0x5f5   :  { %4976 = vmatprep.subr.bf16.mxu0 %v12068_v18  ;;  %5058 = vmatprep.subr.bf16.mxu1 %v12071_v52  ;;  %v12146_v18 = vld [vmem:[#allocation11 + $0x844] ss:$16 sps:$4 sm:$0xff]   ;;  %v12149_v52 = vld [vmem:[#allocation11 + $0x84c] ss:$16 sps:$4 sm:$0xff]  }
 0x5f8   :  { %4977 = vmatpush1.bf16.msra.mxu0 %v12066_v20  ;;  %5059 = vmatpush1.bf16.msra.mxu1 %v12069_v22  ;;  %v12144_v20 = vld [vmem:[#allocation11 + $0x840] ss:$16 sps:$4 sm:$0xff]   ;;  %v12147_v22 = vld [vmem:[#allocation11 + $0x848] ss:$16 sps:$4 sm:$0xff]  }
 0x5f9   :  { %4978 = vmatprep.subr.bf16.mxu0 %v12074_v24  ;;  %5060 = vmatprep.subr.bf16.mxu1 %v12077_v25  ;;  %v12152_v24 = vld [vmem:[#allocation11 + $0x864] ss:$16 sps:$4 sm:$0xff]   ;;  %v12155_v25 = vld [vmem:[#allocation11 + $0x86c] ss:$16 sps:$4 sm:$0xff]  }
 0x5fc   :  { %4979 = vmatpush1.bf16.msra.mxu0 %v12072_v26  ;;  %5061 = vmatpush1.bf16.msra.mxu1 %v12075_v55  ;;  %v12150_v26 = vld [vmem:[#allocation11 + $0x860] ss:$16 sps:$4 sm:$0xff]   ;;  %v12153_v55 = vld [vmem:[#allocation11 + $0x868] ss:$16 sps:$4 sm:$0xff]  }
 0x5fd   :  { %4980 = vmatprep.subr.bf16.mxu0 %v12080_v28  ;;  %5062 = vmatprep.subr.bf16.mxu1 %v12083_v30  ;;  %v12158_v28 = vld [vmem:[#allocation11 + $0x884] ss:$16 sps:$4 sm:$0xff]   ;;  %v12161_v30 = vld [vmem:[#allocation11 + $0x88c] ss:$16 sps:$4 sm:$0xff]  }
 0x600   :  { %4981 = vmatpush1.bf16.msra.mxu0 %v12078_v31  ;;  %5063 = vmatpush1.bf16.msra.mxu1 %v12081_v60  ;;  %v12156_v31 = vld [vmem:[#allocation11 + $0x880] ss:$16 sps:$4 sm:$0xff]   ;;  %v12159_v60 = vld [vmem:[#allocation11 + $0x888] ss:$16 sps:$4 sm:$0xff]  }
 0x601   :  { %4982 = vmatprep.subr.bf16.mxu0 %v12086_v33  ;;  %5064 = vmatprep.subr.bf16.mxu1 %v12089_v34  ;;  %v12164_v33 = vld [vmem:[#allocation11 + $0x8a4] ss:$16 sps:$4 sm:$0xff]   ;;  %v12167_v34 = vld [vmem:[#allocation11 + $0x8ac] ss:$16 sps:$4 sm:$0xff]  }
 0x604   :  { %4983 = vmatpush1.bf16.msra.mxu0 %v12084_v35  ;;  %5065 = vmatpush1.bf16.msra.mxu1 %v12087_v36  ;;  %v12162_v35 = vld [vmem:[#allocation11 + $0x8a0] ss:$16 sps:$4 sm:$0xff]   ;;  %v12165_v36 = vld [vmem:[#allocation11 + $0x8a8] ss:$16 sps:$4 sm:$0xff]  }
 0x605   :  { %4984 = vmatprep.subr.bf16.mxu0 %v12092_v37  ;;  %5066 = vmatprep.subr.bf16.mxu1 %v12095_v10  ;;  %v12170_v37 = vld [vmem:[#allocation11 + $0x8c4] ss:$16 sps:$4 sm:$0xff]   ;;  %v12173_v10 = vld [vmem:[#allocation11 + $0x8cc] ss:$16 sps:$4 sm:$0xff]  }
 0x608   :  { %4985 = vmatpush1.bf16.msra.mxu0 %v12090_v39  ;;  %5067 = vmatpush1.bf16.msra.mxu1 %v12093_v40  ;;  %v12168_v39 = vld [vmem:[#allocation11 + $0x8c0] ss:$16 sps:$4 sm:$0xff]   ;;  %v12171_v40 = vld [vmem:[#allocation11 + $0x8c8] ss:$16 sps:$4 sm:$0xff]  }
 0x609   :  { %4986 = vmatprep.subr.bf16.mxu0 %v12098_v41  ;;  %5068 = vmatprep.subr.bf16.mxu1 %v12101_v43  ;;  %v12176_v41 = vld [vmem:[#allocation11 + $0x8e4] ss:$16 sps:$4 sm:$0xff]   ;;  %v12179_v43 = vld [vmem:[#allocation11 + $0x8ec] ss:$16 sps:$4 sm:$0xff]  }
 0x60c   :  { %4987 = vmatpush1.bf16.msra.mxu0 %v12096_v12  ;;  %5069 = vmatpush1.bf16.msra.mxu1 %v12099_v44  ;;  %v12174_v12 = vld [vmem:[#allocation11 + $0x8e0] ss:$16 sps:$4 sm:$0xff]   ;;  %v12177_v44 = vld [vmem:[#allocation11 + $0x8e8] ss:$16 sps:$4 sm:$0xff]  }
 0x60d   :  { %4988 = vmatprep.subr.bf16.mxu0 %v12104_v45  ;;  %5070 = vmatprep.subr.bf16.mxu1 %v12107_v46  ;;  %v12182_v45 = vld [vmem:[#allocation11 + $0x904] ss:$16 sps:$4 sm:$0xff]   ;;  %v12185_v46 = vld [vmem:[#allocation11 + $0x90c] ss:$16 sps:$4 sm:$0xff]  }
 0x610   :  { %4989 = vmatpush1.bf16.msra.mxu0 %v12102_v47  ;;  %5071 = vmatpush1.bf16.msra.mxu1 %v12105_v48  ;;  %v12180_v47 = vld [vmem:[#allocation11 + $0x900] ss:$16 sps:$4 sm:$0xff]   ;;  %v12183_v48 = vld [vmem:[#allocation11 + $0x908] ss:$16 sps:$4 sm:$0xff]  }
 0x611   :  { %4990 = vmatprep.subr.bf16.mxu0 %v12110_v21  ;;  %5072 = vmatprep.subr.bf16.mxu1 %v12113_v49  ;;  %v12188_v21 = vld [vmem:[#allocation11 + $0x924] ss:$16 sps:$4 sm:$0xff]   ;;  %v12191_v49 = vld [vmem:[#allocation11 + $0x92c] ss:$16 sps:$4 sm:$0xff]  }
 0x614   :  { %4991 = vmatpush1.bf16.msra.mxu0 %v12108_v50  ;;  %5073 = vmatpush1.bf16.msra.mxu1 %v12111_v51  ;;  %v12186_v50 = vld [vmem:[#allocation11 + $0x920] ss:$16 sps:$4 sm:$0xff]   ;;  %v12189_v51 = vld [vmem:[#allocation11 + $0x928] ss:$16 sps:$4 sm:$0xff]  }
 0x615   :  { %4992 = vmatprep.subr.bf16.mxu0 %v12116_v53  ;;  %5074 = vmatprep.subr.bf16.mxu1 %v12119_v27  ;;  %v12194_v53 = vld [vmem:[#allocation11 + $0x944] ss:$16 sps:$4 sm:$0xff]   ;;  %v12197_v27 = vld [vmem:[#allocation11 + $0x94c] ss:$16 sps:$4 sm:$0xff]  }
 0x618   :  { %4993 = vmatpush1.bf16.msra.mxu0 %v12114_v54  ;;  %5075 = vmatpush1.bf16.msra.mxu1 %v12117_v56  ;;  %v12192_v54 = vld [vmem:[#allocation11 + $0x940] ss:$16 sps:$4 sm:$0xff]   ;;  %v12195_v56 = vld [vmem:[#allocation11 + $0x948] ss:$16 sps:$4 sm:$0xff]  }
 0x619   :  { %4994 = vmatprep.subr.bf16.mxu0 %v12122_v58  ;;  %5076 = vmatprep.subr.bf16.mxu1 %v12125_v59  ;;  %v12203_v58 = vld [vmem:[#allocation11 + $0x96c] ss:$16 sps:$4 sm:$0xff]   ;;  %v12198_v59 = vld [vmem:[#allocation11 + $0x960] ss:$16 sps:$4 sm:$0xff]  }
 0x61c   :  { %4995 = vmatpush1.bf16.msra.mxu0 %v12120_v61  ;;  %5077 = vmatpush1.bf16.msra.mxu1 %v12123_v62  ;;  %v12201_v61 = vld [vmem:[#allocation11 + $0x968] ss:$16 sps:$4 sm:$0xff]   ;;  %v12206_v62 = vld [vmem:[#allocation11 + $0x984] ss:$16 sps:$4 sm:$0xff]  }
 0x61d   :  { %4996 = vmatprep.subr.bf16.mxu0 %v12128_v0  ;;  %5078 = vmatprep.subr.bf16.mxu1 %v12131_v1  ;;  %v12204_v0 = vld [vmem:[#allocation11 + $0x980] ss:$16 sps:$4 sm:$0xff]   ;;  %v12207_v1 = vld [vmem:[#allocation11 + $0x988] ss:$16 sps:$4 sm:$0xff]  }
 0x620   :  { %4997 = vmatpush1.bf16.msra.mxu0 %v12126_v2  ;;  %5079 = vmatpush1.bf16.msra.mxu1 %v12129_v3  ;;  %v12212_v2 = vld [vmem:[#allocation11 + $0x9a4] ss:$16 sps:$4 sm:$0xff]   ;;  %v12215_v3 = vld [vmem:[#allocation11 + $0x9ac] ss:$16 sps:$4 sm:$0xff]  }
 0x621   :  { %5889 = vmatprep.subr.bf16.mxu0 %v12134_v38  ;;  %5971 = vmatprep.subr.bf16.mxu1 %v12137_v5  ;;  %v12213_v38 = vld [vmem:[#allocation11 + $0x9a8] ss:$16 sps:$4 sm:$0xff]   ;;  %v12218_v5 = vld [vmem:[#allocation11 + $0x9c4] ss:$16 sps:$4 sm:$0xff]  }
 0x623   :  { %4999 = vmatmul.mubr.bf16.vlgmr.msra.gmra.mrb[20].mxu0 %v4131_v8  ;;  %5081 = vmatmul.mubr.bf16.vlgmr.msra.gmra.mrb[20].mxu1 %v4131_v8  ;;  %v12219_v8 = vld [vmem:[#allocation11 + $0x9c8] ss:$16 sps:$4 sm:$0xff]  }
 0x624   :  { %5890 = vmatpush1.bf16.msra.mxu0 %v12132_v6  ;;  %5972 = vmatpush1.bf16.msra.mxu1 %v12135_v7  ;;  %v12221_v6 = vld [vmem:[#allocation11 + $0x9cc] ss:$16 sps:$4 sm:$0xff]   ;;  %v12216_v7 = vld [vmem:[#allocation11 + $0x9c0] ss:$16 sps:$4 sm:$0xff]  }
 0x625   :  { %5891 = vmatprep.subr.bf16.mxu0 %v12140_v42  ;;  %5973 = vmatprep.subr.bf16.mxu1 %v12143_v15  ;;  %v12224_v42 = vld [vmem:[#allocation11 + $0x9e4] ss:$16 sps:$4 sm:$0xff]   ;;  %v12227_v15 = vld [vmem:[#allocation11 + $0x9ec] ss:$16 sps:$4 sm:$0xff]  }
 0x628   :  { %5892 = vmatpush1.bf16.msra.mxu0 %v12138_v23  ;;  %5974 = vmatpush1.bf16.msra.mxu1 %v12141_v17  ;;  %v12222_v23 = vld [vmem:[#allocation11 + $0x9e0] ss:$16 sps:$4 sm:$0xff]   ;;  %v12225_v17 = vld [vmem:[#allocation11 + $0x9e8] ss:$16 sps:$4 sm:$0xff]  }
 0x629   :  { %5893 = vmatprep.subr.bf16.mxu0 %v12146_v18  ;;  %5975 = vmatprep.subr.bf16.mxu1 %v12149_v52  ;;  %v12230_v18 = vld [vmem:[#allocation11 + $0xa04] ss:$16 sps:$4 sm:$0xff]   ;;  %v12233_v52 = vld [vmem:[#allocation11 + $0xa0c] ss:$16 sps:$4 sm:$0xff]  }
 0x62c   :  { %5894 = vmatpush1.bf16.msra.mxu0 %v12144_v20  ;;  %5976 = vmatpush1.bf16.msra.mxu1 %v12147_v22  ;;  %v13452_v20 = vld [vmem:[#allocation13 + $0x4] sm:$0xf] }
 0x62d   :  { %5895 = vmatprep.subr.bf16.mxu0 %v12152_v24  ;;  %5977 = vmatprep.subr.bf16.mxu1 %v12155_v25  ;;  %v4268_v22 = vrot.slane %v13452_v20, %v13360_v11  ;;  %v4272_v24 = vrot.slane %v13452_v20, %v13365_v13  ;;  %v4280_v25 = vrot.slane %v13452_v20, %v13368_v14 }
 0x630   :  { %5896 = vmatpush1.bf16.msra.mxu0 %v12150_v26  ;;  %5978 = vmatpush1.bf16.msra.mxu1 %v12153_v55 }
 0x631   :  { %5897 = vmatprep.subr.bf16.mxu0 %v12158_v28  ;;  %5979 = vmatprep.subr.bf16.mxu1 %v12161_v30 }
 0x634   :  { %5898 = vmatpush1.bf16.msra.mxu0 %v12156_v31  ;;  %5980 = vmatpush1.bf16.msra.mxu1 %v12159_v60 }
 0x635   :  { %5899 = vmatprep.subr.bf16.mxu0 %v12164_v33  ;;  %5981 = vmatprep.subr.bf16.mxu1 %v12167_v34 }
 0x638   :  { %5900 = vmatpush1.bf16.msra.mxu0 %v12162_v35  ;;  %5982 = vmatpush1.bf16.msra.mxu1 %v12165_v36 }
 0x639   :  { %5901 = vmatprep.subr.bf16.mxu0 %v12170_v37  ;;  %5983 = vmatprep.subr.bf16.mxu1 %v12173_v10 }
 0x63c   :  { %5902 = vmatpush1.bf16.msra.mxu0 %v12168_v39  ;;  %5984 = vmatpush1.bf16.msra.mxu1 %v12171_v40 }
 0x63d   :  { %5903 = vmatprep.subr.bf16.mxu0 %v12176_v41  ;;  %5985 = vmatprep.subr.bf16.mxu1 %v12179_v43  ;;  %v12228_v43 = vld [vmem:[#allocation11 + $0xa00] ss:$16 sps:$4 sm:$0xff]  }
 0x640   :  { %5904 = vmatpush1.bf16.msra.mxu0 %v12174_v12  ;;  %5986 = vmatpush1.bf16.msra.mxu1 %v12177_v44  ;;  %v12231_v12 = vld [vmem:[#allocation11 + $0xa08] ss:$16 sps:$4 sm:$0xff]  }
 0x641   :  { %5905 = vmatprep.subr.bf16.mxu0 %v12182_v45  ;;  %5987 = vmatprep.subr.bf16.mxu1 %v12185_v46  ;;  %v12236_v45 = vld [vmem:[#allocation11 + $0xa24] ss:$16 sps:$4 sm:$0xff]   ;;  %v12239_v46 = vld [vmem:[#allocation11 + $0xa2c] ss:$16 sps:$4 sm:$0xff]  }
 0x644   :  { %5906 = vmatpush1.bf16.msra.mxu0 %v12180_v47  ;;  %5988 = vmatpush1.bf16.msra.mxu1 %v12183_v48  ;;  %v12234_v48 = vld [vmem:[#allocation11 + $0xa20] ss:$16 sps:$4 sm:$0xff]  }
 0x645   :  { %5907 = vmatprep.subr.bf16.mxu0 %v12188_v21  ;;  %5989 = vmatprep.subr.bf16.mxu1 %v12191_v49  ;;  %v12237_v21 = vld [vmem:[#allocation11 + $0xa28] ss:$16 sps:$4 sm:$0xff]   ;;  %v12242_v49 = vld [vmem:[#allocation11 + $0xa44] ss:$16 sps:$4 sm:$0xff]  }
 0x648   :  { %5908 = vmatpush1.bf16.msra.mxu0 %v12186_v50  ;;  %5990 = vmatpush1.bf16.msra.mxu1 %v12189_v51  ;;  %v12245_v50 = vld [vmem:[#allocation11 + $0xa4c] ss:$16 sps:$4 sm:$0xff]   ;;  %v12240_v51 = vld [vmem:[#allocation11 + $0xa40] ss:$16 sps:$4 sm:$0xff]  }
 0x649   :  { %5909 = vmatprep.subr.bf16.mxu0 %v12194_v53  ;;  %5991 = vmatprep.subr.bf16.mxu1 %v12197_v27  ;;  %v12243_v53 = vld [vmem:[#allocation11 + $0xa48] ss:$16 sps:$4 sm:$0xff]   ;;  %v12248_v27 = vld [vmem:[#allocation11 + $0xa64] ss:$16 sps:$4 sm:$0xff]  }
 0x64c   :  { %5910 = vmatpush1.bf16.msra.mxu0 %v12192_v54  ;;  %5992 = vmatpush1.bf16.msra.mxu1 %v12195_v56  ;;  %v12251_v54 = vld [vmem:[#allocation11 + $0xa6c] ss:$16 sps:$4 sm:$0xff]   ;;  %v12246_v56 = vld [vmem:[#allocation11 + $0xa60] ss:$16 sps:$4 sm:$0xff]  }
 0x64d   :  { %5911 = vmatprep.subr.bf16.mxu0 %v12200_v57  ;;  %5993 = vmatprep.subr.bf16.mxu1 %v12203_v58  ;;  %v12249_v57 = vld [vmem:[#allocation11 + $0xa68] ss:$16 sps:$4 sm:$0xff]   ;;  %v12254_v58 = vld [vmem:[#allocation11 + $0xa84] ss:$16 sps:$4 sm:$0xff]  }
 0x650   :  { %5912 = vmatpush1.bf16.msra.mxu0 %v12198_v59  ;;  %5994 = vmatpush1.bf16.msra.mxu1 %v12201_v61  ;;  %v12257_v59 = vld [vmem:[#allocation11 + $0xa8c] ss:$16 sps:$4 sm:$0xff]   ;;  %v12252_v61 = vld [vmem:[#allocation11 + $0xa80] ss:$16 sps:$4 sm:$0xff]  }
 0x651   :  { %5913 = vmatprep.subr.bf16.mxu0 %v12206_v62  ;;  %5995 = vmatprep.subr.bf16.mxu1 %v12209_v63  ;;  %v12255_v62 = vld [vmem:[#allocation11 + $0xa88] ss:$16 sps:$4 sm:$0xff]   ;;  %v12260_v63 = vld [vmem:[#allocation11 + $0xaa4] ss:$16 sps:$4 sm:$0xff]  }
 0x654   :  { %5914 = vmatpush1.bf16.msra.mxu0 %v12204_v0  ;;  %5996 = vmatpush1.bf16.msra.mxu1 %v12207_v1  ;;  %v12263_v0 = vld [vmem:[#allocation11 + $0xaac] ss:$16 sps:$4 sm:$0xff]   ;;  %v12258_v1 = vld [vmem:[#allocation11 + $0xaa0] ss:$16 sps:$4 sm:$0xff]  }
 0x655   :  { %5915 = vmatprep.subr.bf16.mxu0 %v12212_v2  ;;  %5997 = vmatprep.subr.bf16.mxu1 %v12215_v3  ;;  %v12261_v2 = vld [vmem:[#allocation11 + $0xaa8] ss:$16 sps:$4 sm:$0xff]   ;;  %v12266_v3 = vld [vmem:[#allocation11 + $0xac4] ss:$16 sps:$4 sm:$0xff]  }
 0x658   :  { %5916 = vmatpush1.bf16.msra.mxu0 %v12210_v4  ;;  %5998 = vmatpush1.bf16.msra.mxu1 %v12213_v38  ;;  %v12269_v4 = vld [vmem:[#allocation11 + $0xacc] ss:$16 sps:$4 sm:$0xff]   ;;  %v12264_v38 = vld [vmem:[#allocation11 + $0xac0] ss:$16 sps:$4 sm:$0xff]  }
 0x659   :  { %5917 = vmatprep.subr.bf16.mxu0 %v12218_v5  ;;  %5999 = vmatprep.subr.bf16.mxu1 %v12221_v6  ;;  %v12267_v5 = vld [vmem:[#allocation11 + $0xac8] ss:$16 sps:$4 sm:$0xff]   ;;  %v12272_v6 = vld [vmem:[#allocation11 + $0xae4] ss:$16 sps:$4 sm:$0xff]  }
 0x65c   :  { %5918 = vmatpush1.bf16.msra.mxu0 %v12216_v7  ;;  %6000 = vmatpush1.bf16.msra.mxu1 %v12219_v8  ;;  %v12275_v7 = vld [vmem:[#allocation11 + $0xaec] ss:$16 sps:$4 sm:$0xff]   ;;  %v12270_v8 = vld [vmem:[#allocation11 + $0xae0] ss:$16 sps:$4 sm:$0xff]  }
 0x65d   :  { %5919 = vmatprep.subr.bf16.mxu0 %v12224_v42  ;;  %6001 = vmatprep.subr.bf16.mxu1 %v12227_v15  ;;  %v12273_v42 = vld [vmem:[#allocation11 + $0xae8] ss:$16 sps:$4 sm:$0xff]   ;;  %v12278_v15 = vld [vmem:[#allocation11 + $0xb04] ss:$16 sps:$4 sm:$0xff]  }
 0x660   :  { %5920 = vmatpush1.bf16.msra.mxu0 %v12222_v23  ;;  %6002 = vmatpush1.bf16.msra.mxu1 %v12225_v17  ;;  %v12281_v23 = vld [vmem:[#allocation11 + $0xb0c] ss:$16 sps:$4 sm:$0xff]   ;;  %v12276_v17 = vld [vmem:[#allocation11 + $0xb00] ss:$16 sps:$4 sm:$0xff]  }
 0x661   :  { %5930 = vmatprep.subr.bf16.mxu0 %v12230_v18  ;;  %6012 = vmatprep.subr.bf16.mxu1 %v12233_v52  ;;  %v12279_v18 = vld [vmem:[#allocation11 + $0xb08] ss:$16 sps:$4 sm:$0xff]   ;;  %v12284_v52 = vld [vmem:[#allocation11 + $0xb24] ss:$16 sps:$4 sm:$0xff]  }
 0x6f6   :  { %v5000_v26 = vpop.f32.mrb[20].mxu0  ;;  %v13460_v55 = vpop.f32.mrb[20].mxu1 }
 0x6f7   :  { %v11059_v28 = vadd.f32 %v5000_v26, %v4268_v22  ;;  %v5002_v30 = vpop.f32.mrb[21].mxu0  ;;  %v5084_v31 = vpop.f32.mrb[21].mxu1  ;;  %v12287_v22 = vld [vmem:[#allocation11 + $0xb2c] ss:$16 sps:$4 sm:$0xff]   ;;  %v12290_v26 = vld [vmem:[#allocation11 + $0xb44] ss:$16 sps:$4 sm:$0xff]  }
 0x6f8   :  { %v11060_v60 = vadd.f32 %v5002_v30, %v4272_v24  ;;  %v11062_v33 = vadd.f32 %v5084_v31, %v4280_v25  ;;  %v5004_v34 = vpop.f32.mrb[22].mxu0  ;;  %v5086_v35 = vpop.f32.mrb[22].mxu1  ;;  %v12282_v24 = vld [vmem:[#allocation11 + $0xb20] ss:$16 sps:$4 sm:$0xff]   ;;  %v12285_v25 = vld [vmem:[#allocation11 + $0xb28] ss:$16 sps:$4 sm:$0xff]  }
 0x6f9   :  { %v5089_v36 = vmax.f32 %v11059_v28, 0.0  ;;  %v5005_v37 = vpop.f32.mrb[23].mxu0  ;;  %v5087_v10 = vpop.f32.mrb[23].mxu1  ;;  %v12293_v28 = vld [vmem:[#allocation11 + $0xb4c] ss:$16 sps:$4 sm:$0xff]  }
 0x6fa   :  { %v5090_v39 = vmax.f32 %v11060_v60, 0.0  ;;  %v5092_v40 = vmax.f32 %v11062_v33, 0.0  ;;  %v12288_v30 = vld [vmem:[#allocation11 + $0xb40] ss:$16 sps:$4 sm:$0xff]   ;;  %v12291_v31 = vld [vmem:[#allocation11 + $0xb48] ss:$16 sps:$4 sm:$0xff]  }
 0x6fb   :  { %v5093_v44 = vpack.c.bf16 %v5089_v36, %v5089_v36  ;;  %v12296_v60 = vld [vmem:[#allocation11 + $0xb64] ss:$16 sps:$4 sm:$0xff]   ;;  %v12299_v33 = vld [vmem:[#allocation11 + $0xb6c] ss:$16 sps:$4 sm:$0xff]   ;;  %v12294_v34 = vld [vmem:[#allocation11 + $0xb60] ss:$16 sps:$4 sm:$0xff]  }
 0x6fc   :  { %v5094_v41 = vpack.c.bf16 %v5090_v39, %v5090_v39  ;;  %v5096_v47 = vpack.c.bf16 %v5092_v40, %v5092_v40  ;;  %v12297_v35 = vld [vmem:[#allocation11 + $0xb68] ss:$16 sps:$4 sm:$0xff]   ;;  %v12302_v36 = vld [vmem:[#allocation11 + $0xb84] ss:$16 sps:$4 sm:$0xff]   ;;  %v12305_v37 = vld [vmem:[#allocation11 + $0xb8c] ss:$16 sps:$4 sm:$0xff]  }
 0x6fd   :  { %v12300_v10 = vld [vmem:[#allocation11 + $0xb80] ss:$16 sps:$4 sm:$0xff]   ;;  %v12303_v39 = vld [vmem:[#allocation11 + $0xb88] ss:$16 sps:$4 sm:$0xff]   ;;  %v12308_v40 = vld [vmem:[#allocation11 + $0xba4] ss:$16 sps:$4 sm:$0xff]  }
 0x6fe   :  { %5921 = vmatprep.mubr.bf16.mxu0 %v5094_v41  ;;  %6003 = vmatprep.mubr.bf16.mxu1 %v5094_v41  ;;  %v12311_v41 = vld [vmem:[#allocation11 + $0xbac] ss:$16 sps:$4 sm:$0xff]  }
 0x6ff   :  { %5922 = vmatmul.mubr.bf16.vlgmr.msra.gmra.mrb[24].mxu0 %v5093_v44  ;;  %6004 = vmatmul.mubr.bf16.vlgmr.msra.gmra.mrb[24].mxu1 %v5093_v44  ;;  %v4276_v44 = vrot.slane %v13452_v20, %v13379_v29  ;;  %v12324_v20 = vld [vmem:[%s13722_s7 + $0x40] sm:$0xff]  }
 0x700   :  { %5931 = vmatpush1.bf16.msra.mxu0 %v12228_v43  ;;  %6013 = vmatpush1.bf16.msra.mxu1 %v12231_v12  ;;  %v12306_v43 = vld [vmem:[#allocation11 + $0xba0] ss:$16 sps:$4 sm:$0xff]   ;;  %v12309_v12 = vld [vmem:[#allocation11 + $0xba8] ss:$16 sps:$4 sm:$0xff]  }
 0x701   :  { %5962 = vmatprep.mubr.bf16.mxu0 %v5096_v47  ;;  %6044 = vmatprep.mubr.bf16.mxu1 %v5096_v47  ;;  %v12312_v47 = vld [vmem:[#allocation11 + $0xbc0] ss:$16 sps:$4 sm:$0xff]  }
 0x702   :  { %5932 = vmatprep.subr.bf16.mxu0 %v12236_v45  ;;  %6014 = vmatprep.subr.bf16.mxu1 %v12239_v46  ;;  %v12314_v45 = vld [vmem:[#allocation11 + $0xbc4] ss:$16 sps:$4 sm:$0xff]   ;;  %v12317_v46 = vld [vmem:[#allocation11 + $0xbcc] ss:$16 sps:$4 sm:$0xff]  }
 0x704   :  { %5933 = vmatpush1.bf16.msra.mxu0 %v12234_v48  ;;  %6015 = vmatpush1.bf16.msra.mxu1 %v12237_v21  ;;  %v12315_v48 = vld [vmem:[#allocation11 + $0xbc8] ss:$16 sps:$4 sm:$0xff]   ;;  %v11061_v21 = vadd.f32 %v13460_v55, %v4276_v44 }
 0x705   :  { %5934 = vmatprep.subr.bf16.mxu0 %v12242_v49  ;;  %6016 = vmatprep.subr.bf16.mxu1 %v12245_v50  ;;  %v12320_v49 = vld [vmem:[#allocation11 + $0xbe4] ss:$16 sps:$4 sm:$0xff]   ;;  %v12323_v50 = vld [vmem:[#allocation11 + $0xbec] ss:$16 sps:$4 sm:$0xff]  }
 0x706   :  { %v12326_v55 = vld [vmem:[%s13722_s7] sm:$0xff]  }
 0x708   :  { %5935 = vmatpush1.bf16.msra.mxu0 %v12240_v51  ;;  %6017 = vmatpush1.bf16.msra.mxu1 %v12243_v53  ;;  %v12318_v51 = vld [vmem:[#allocation11 + $0xbe0] ss:$16 sps:$4 sm:$0xff]   ;;  %v12321_v53 = vld [vmem:[#allocation11 + $0xbe8] ss:$16 sps:$4 sm:$0xff]  }
 0x709   :  { %5936 = vmatprep.subr.bf16.mxu0 %v12248_v27  ;;  %6018 = vmatprep.subr.bf16.mxu1 %v12251_v54  ;;  %v5091_v27 = vmax.f32 %v11061_v21, 0.0  ;;  %v12325_v54 = vld [vmem:[%s13722_s7 + $0xc0] sm:$0xff]  }
 0x70c   :  { %5937 = vmatpush1.bf16.msra.mxu0 %v12246_v56  ;;  %6019 = vmatpush1.bf16.msra.mxu1 %v12249_v57  ;;  %v12327_v56 = vld [vmem:[%s13722_s7 + $0x80] sm:$0xff]   ;;  %v5095_v57 = vpack.c.bf16 %v5091_v27, %v5091_v27 }
 0x70d   :  { %5938 = vmatprep.subr.bf16.mxu0 %v12254_v58  ;;  %6020 = vmatprep.subr.bf16.mxu1 %v12257_v59  ;;  %v12328_v58 = vld [vmem:[%s13722_s7 + $0x48] sm:$0xff]  }
 0x70e   :  { %v12329_v59 = vld [vmem:[%s13722_s7 + $0xc8] sm:$0xff]  }
 0x710   :  { %5939 = vmatpush1.bf16.msra.mxu0 %v12252_v61  ;;  %6021 = vmatpush1.bf16.msra.mxu1 %v12255_v62  ;;  %v12330_v61 = vld [vmem:[%s13722_s7 + $0x8] sm:$0xff]  }
 0x711   :  { %5940 = vmatprep.subr.bf16.mxu0 %v12260_v63  ;;  %6022 = vmatprep.subr.bf16.mxu1 %v12263_v0  ;;  %v12331_v62 = vld [vmem:[%s13722_s7 + $0x88] sm:$0xff]   ;;  %v12332_v63 = vld [vmem:[%s13722_s7 + $0x50] sm:$0xff]  }
 0x712   :  { %v12333_v0 = vld [vmem:[%s13722_s7 + $0xd0] sm:$0xff]  }
 0x714   :  { %5941 = vmatpush1.bf16.msra.mxu0 %v12258_v1  ;;  %6023 = vmatpush1.bf16.msra.mxu1 %v12261_v2  ;;  %v12334_v1 = vld [vmem:[%s13722_s7 + $0x10] sm:$0xff]  }
 0x715   :  { %5942 = vmatprep.subr.bf16.mxu0 %v12266_v3  ;;  %6024 = vmatprep.subr.bf16.mxu1 %v12269_v4  ;;  %v12335_v2 = vld [vmem:[%s13722_s7 + $0x90] sm:$0xff]   ;;  %v12336_v3 = vld [vmem:[%s13722_s7 + $0x58] sm:$0xff]  }
 0x716   :  { %v12337_v4 = vld [vmem:[%s13722_s7 + $0xd8] sm:$0xff]  }
 0x718   :  { %5943 = vmatpush1.bf16.msra.mxu0 %v12264_v38  ;;  %6025 = vmatpush1.bf16.msra.mxu1 %v12267_v5  ;;  %v12338_v38 = vld [vmem:[%s13722_s7 + $0x18] sm:$0xff]  }
 0x719   :  { %5944 = vmatprep.subr.bf16.mxu0 %v12272_v6  ;;  %6026 = vmatprep.subr.bf16.mxu1 %v12275_v7  ;;  %v12339_v5 = vld [vmem:[%s13722_s7 + $0x98] sm:$0xff]   ;;  %v12340_v6 = vld [vmem:[%s13722_s7 + $0x60] sm:$0xff]  }
 0x71a   :  { %v12341_v7 = vld [vmem:[%s13722_s7 + $0xe0] sm:$0xff]  }
 0x71c   :  { %5945 = vmatpush1.bf16.msra.mxu0 %v12270_v8  ;;  %6027 = vmatpush1.bf16.msra.mxu1 %v12273_v42  ;;  %v12342_v8 = vld [vmem:[%s13722_s7 + $0x20] sm:$0xff]  }
 0x71d   :  { %5946 = vmatprep.subr.bf16.mxu0 %v12278_v15  ;;  %6028 = vmatprep.subr.bf16.mxu1 %v12281_v23  ;;  %v12343_v42 = vld [vmem:[%s13722_s7 + $0xa0] sm:$0xff]   ;;  %v12344_v15 = vld [vmem:[%s13722_s7 + $0x68] sm:$0xff]  }
 0x71e   :  { %v12345_v23 = vld [vmem:[%s13722_s7 + $0xe8] sm:$0xff]  }
 0x720   :  { %5947 = vmatpush1.bf16.msra.mxu0 %v12276_v17  ;;  %6029 = vmatpush1.bf16.msra.mxu1 %v12279_v18  ;;  %v12346_v17 = vld [vmem:[%s13722_s7 + $0x28] sm:$0xff]  }
 0x721   :  { %5948 = vmatprep.subr.bf16.mxu0 %v12284_v52  ;;  %6030 = vmatprep.subr.bf16.mxu1 %v12287_v22  ;;  %v12347_v18 = vld [vmem:[%s13722_s7 + $0xa8] sm:$0xff]   ;;  %v12348_v52 = vld [vmem:[%s13722_s7 + $0x70] sm:$0xff]  }
 0x722   :  { %v12349_v22 = vld [vmem:[%s13722_s7 + $0xf0] sm:$0xff]  }
 0x724   :  { %5949 = vmatpush1.bf16.msra.mxu0 %v12282_v24  ;;  %6031 = vmatpush1.bf16.msra.mxu1 %v12285_v25  ;;  %v12350_v24 = vld [vmem:[%s13722_s7 + $0x30] sm:$0xff]  }
 0x725   :  { %5950 = vmatprep.subr.bf16.mxu0 %v12290_v26  ;;  %6032 = vmatprep.subr.bf16.mxu1 %v12293_v28  ;;  %v12351_v25 = vld [vmem:[%s13722_s7 + $0xb0] sm:$0xff]   ;;  %v12352_v26 = vld [vmem:[%s13722_s7 + $0x78] sm:$0xff]  }
 0x726   :  { %v12353_v28 = vld [vmem:[%s13722_s7 + $0xf8] sm:$0xff]  }
 0x728   :  { %5951 = vmatpush1.bf16.msra.mxu0 %v12288_v30  ;;  %6033 = vmatpush1.bf16.msra.mxu1 %v12291_v31  ;;  %v12354_v30 = vld [vmem:[%s13722_s7 + $0x38] sm:$0xff]  }
 0x729   :  { %5952 = vmatprep.subr.bf16.mxu0 %v12296_v60  ;;  %6034 = vmatprep.subr.bf16.mxu1 %v12299_v33  ;;  %v12355_v31 = vld [vmem:[%s13722_s7 + $0xb8] sm:$0xff]   ;;  %v12361_v33 = vld [vmem:[#allocation11 + $0xc0c] ss:$16 sps:$4 sm:$0xff]  }
 0x72a   :  { %v12358_v60 = vld [vmem:[#allocation11 + $0xc04] ss:$16 sps:$4 sm:$0xff]  }
 0x72c   :  { %5953 = vmatpush1.bf16.msra.mxu0 %v12294_v34  ;;  %6035 = vmatpush1.bf16.msra.mxu1 %v12297_v35  ;;  %v5227_v34 = vld [vmem:[#allocation13 + $0x8] sm:$0xf] }
 0x72d   :  { %5954 = vmatprep.subr.bf16.mxu0 %v12302_v36  ;;  %6036 = vmatprep.subr.bf16.mxu1 %v12305_v37  ;;  %v5232_v35 = vrot.slane %v5227_v34, %v13360_v11  ;;  %v5240_v36 = vrot.slane %v5227_v34, %v13379_v29  ;;  %v5236_v37 = vrot.slane %v5227_v34, %v13365_v13 }
 0x730   :  { %5955 = vmatpush1.bf16.msra.mxu0 %v12300_v10  ;;  %6037 = vmatpush1.bf16.msra.mxu1 %v12303_v39  ;;  %v5244_v10 = vrot.slane %v5227_v34, %v13368_v14  ;;  %v12404_v34 = vld [vmem:[#allocation11 + $0xd00] ss:$16 sps:$4 sm:$0xff]  }
 0x731   :  { %5956 = vmatprep.subr.bf16.mxu0 %v12308_v40  ;;  %6038 = vmatprep.subr.bf16.mxu1 %v12311_v41 }
 0x734   :  { %5957 = vmatpush1.bf16.msra.mxu0 %v12306_v43  ;;  %6039 = vmatpush1.bf16.msra.mxu1 %v12309_v12 }
 0x735   :  { %5958 = vmatprep.subr.bf16.mxu0 %v12314_v45  ;;  %6040 = vmatprep.subr.bf16.mxu1 %v12317_v46 }
 0x738   :  { %5959 = vmatpush1.bf16.msra.mxu0 %v12312_v47  ;;  %6041 = vmatpush1.bf16.msra.mxu1 %v12315_v48 }
 0x739   :  { %5960 = vmatprep.subr.bf16.mxu0 %v12320_v49  ;;  %6042 = vmatprep.subr.bf16.mxu1 %v12323_v50 }
 0x73c   :  { %5961 = vmatpush1.bf16.msra.mxu0 %v12318_v51  ;;  %6043 = vmatpush1.bf16.msra.mxu1 %v12321_v53 }
 0x73d   :  { %10955 = vmatprep.subr.bf16.mxu0 %v12324_v20  ;;  %10977 = vmatprep.subr.bf16.mxu1 %v12325_v54 }
 0x73f   :  { %5963 = vmatmul.mubr.bf16.vlgmr.msra.gmra.mrb[24].mxu0 %v5095_v57  ;;  %6045 = vmatmul.mubr.bf16.vlgmr.msra.gmra.mrb[24].mxu1 %v5095_v57 }
 0x740   :  { %10956 = vmatpush3.bf16.msra.mxu0 %v12326_v55  ;;  %10978 = vmatpush3.bf16.msra.mxu1 %v12327_v56  ;;  %v12356_v55 = vld [vmem:[#allocation11 + $0xc00] ss:$16 sps:$4 sm:$0xff]   ;;  %v12359_v56 = vld [vmem:[#allocation11 + $0xc08] ss:$16 sps:$4 sm:$0xff]  }
 0x741   :  { %10957 = vmatprep.subr.bf16.mxu0 %v12328_v58  ;;  %10979 = vmatprep.subr.bf16.mxu1 %v12329_v59  ;;  %v12364_v59 = vld [vmem:[#allocation11 + $0xc24] ss:$16 sps:$4 sm:$0xff]  }
 0x744   :  { %10958 = vmatpush3.bf16.msra.mxu0 %v12330_v61  ;;  %10980 = vmatpush3.bf16.msra.mxu1 %v12331_v62  ;;  %v12367_v61 = vld [vmem:[#allocation11 + $0xc2c] ss:$16 sps:$4 sm:$0xff]   ;;  %v12362_v62 = vld [vmem:[#allocation11 + $0xc20] ss:$16 sps:$4 sm:$0xff]  }
 0x745   :  { %10959 = vmatprep.subr.bf16.mxu0 %v12332_v63  ;;  %10981 = vmatprep.subr.bf16.mxu1 %v12333_v0  ;;  %v12365_v63 = vld [vmem:[#allocation11 + $0xc28] ss:$16 sps:$4 sm:$0xff]   ;;  %v12370_v0 = vld [vmem:[#allocation11 + $0xc44] ss:$16 sps:$4 sm:$0xff]  }
 0x748   :  { %10960 = vmatpush3.bf16.msra.mxu0 %v12334_v1  ;;  %10982 = vmatpush3.bf16.msra.mxu1 %v12335_v2  ;;  %v12373_v1 = vld [vmem:[#allocation11 + $0xc4c] ss:$16 sps:$4 sm:$0xff]   ;;  %v12368_v2 = vld [vmem:[#allocation11 + $0xc40] ss:$16 sps:$4 sm:$0xff]  }
 0x749   :  { %10961 = vmatprep.subr.bf16.mxu0 %v12336_v3  ;;  %10983 = vmatprep.subr.bf16.mxu1 %v12337_v4  ;;  %v12371_v3 = vld [vmem:[#allocation11 + $0xc48] ss:$16 sps:$4 sm:$0xff]   ;;  %v12376_v4 = vld [vmem:[#allocation11 + $0xc64] ss:$16 sps:$4 sm:$0xff]  }
 0x74c   :  { %10962 = vmatpush3.bf16.msra.mxu0 %v12338_v38  ;;  %10984 = vmatpush3.bf16.msra.mxu1 %v12339_v5  ;;  %v12379_v38 = vld [vmem:[#allocation11 + $0xc6c] ss:$16 sps:$4 sm:$0xff]   ;;  %v12374_v5 = vld [vmem:[#allocation11 + $0xc60] ss:$16 sps:$4 sm:$0xff]  }
 0x74d   :  { %10963 = vmatprep.subr.bf16.mxu0 %v12340_v6  ;;  %10985 = vmatprep.subr.bf16.mxu1 %v12341_v7  ;;  %v12377_v6 = vld [vmem:[#allocation11 + $0xc68] ss:$16 sps:$4 sm:$0xff]   ;;  %v12382_v7 = vld [vmem:[#allocation11 + $0xc84] ss:$16 sps:$4 sm:$0xff]  }
 0x750   :  { %10964 = vmatpush3.bf16.msra.mxu0 %v12342_v8  ;;  %10986 = vmatpush3.bf16.msra.mxu1 %v12343_v42  ;;  %v12380_v8 = vld [vmem:[#allocation11 + $0xc80] ss:$16 sps:$4 sm:$0xff]   ;;  %v12383_v42 = vld [vmem:[#allocation11 + $0xc88] ss:$16 sps:$4 sm:$0xff]  }
 0x751   :  { %10965 = vmatprep.subr.bf16.mxu0 %v12344_v15  ;;  %10987 = vmatprep.subr.bf16.mxu1 %v12345_v23  ;;  %v12388_v15 = vld [vmem:[#allocation11 + $0xca4] ss:$16 sps:$4 sm:$0xff]   ;;  %v12391_v23 = vld [vmem:[#allocation11 + $0xcac] ss:$16 sps:$4 sm:$0xff]  }
 0x754   :  { %10966 = vmatpush3.bf16.msra.mxu0 %v12346_v17  ;;  %10988 = vmatpush3.bf16.msra.mxu1 %v12347_v18  ;;  %v12386_v17 = vld [vmem:[#allocation11 + $0xca0] ss:$16 sps:$4 sm:$0xff]   ;;  %v12389_v18 = vld [vmem:[#allocation11 + $0xca8] ss:$16 sps:$4 sm:$0xff]  }
 0x755   :  { %10967 = vmatprep.subr.bf16.mxu0 %v12348_v52  ;;  %10989 = vmatprep.subr.bf16.mxu1 %v12349_v22  ;;  %v12394_v52 = vld [vmem:[#allocation11 + $0xcc4] ss:$16 sps:$4 sm:$0xff]   ;;  %v12397_v22 = vld [vmem:[#allocation11 + $0xccc] ss:$16 sps:$4 sm:$0xff]  }
 0x758   :  { %10968 = vmatpush3.bf16.msra.mxu0 %v12350_v24  ;;  %10990 = vmatpush3.bf16.msra.mxu1 %v12351_v25  ;;  %v12392_v24 = vld [vmem:[#allocation11 + $0xcc0] ss:$16 sps:$4 sm:$0xff]   ;;  %v12395_v25 = vld [vmem:[#allocation11 + $0xcc8] ss:$16 sps:$4 sm:$0xff]  }
 0x759   :  { %10969 = vmatprep.subr.bf16.mxu0 %v12352_v26  ;;  %10991 = vmatprep.subr.bf16.mxu1 %v12353_v28  ;;  %v12400_v26 = vld [vmem:[#allocation11 + $0xce4] ss:$16 sps:$4 sm:$0xff]   ;;  %v12403_v28 = vld [vmem:[#allocation11 + $0xcec] ss:$16 sps:$4 sm:$0xff]  }
 0x75c   :  { %10970 = vmatpush3.bf16.msra.mxu0 %v12354_v30  ;;  %10992 = vmatpush3.bf16.msra.mxu1 %v12355_v31  ;;  %v12398_v30 = vld [vmem:[#allocation11 + $0xce0] ss:$16 sps:$4 sm:$0xff]   ;;  %v12401_v31 = vld [vmem:[#allocation11 + $0xce8] ss:$16 sps:$4 sm:$0xff]  }
 0x75d   :  { %7196 = vmatprep.subr.bf16.mxu0 %v12358_v60  ;;  %7278 = vmatprep.subr.bf16.mxu1 %v12361_v33  ;;  %v12406_v60 = vld [vmem:[#allocation11 + $0xd04] ss:$16 sps:$4 sm:$0xff]   ;;  %v12409_v33 = vld [vmem:[#allocation11 + $0xd0c] ss:$16 sps:$4 sm:$0xff]  }
 0x812   :  { %v5964_v39 = vpop.f32.mrb[24].mxu0  ;;  %v6046_v40 = vpop.f32.mrb[24].mxu1 }
 0x813   :  { %v11063_v41 = vadd.f32 %v5964_v39, %v5232_v35  ;;  %v11065_v43 = vadd.f32 %v6046_v40, %v5240_v36  ;;  %v5966_v12 = vpop.f32.mrb[25].mxu0  ;;  %v6048_v44 = vpop.f32.mrb[25].mxu1  ;;  %v12407_v35 = vld [vmem:[#allocation11 + $0xd08] ss:$16 sps:$4 sm:$0xff]   ;;  %v12412_v36 = vld [vmem:[#allocation11 + $0xd24] ss:$16 sps:$4 sm:$0xff]  }
 0x814   :  { %v11064_v45 = vadd.f32 %v5966_v12, %v5236_v37  ;;  %v11066_v46 = vadd.f32 %v6048_v44, %v5244_v10  ;;  %v5968_v47 = vpop.f32.mrb[26].mxu0  ;;  %v6050_v48 = vpop.f32.mrb[26].mxu1  ;;  %v12415_v37 = vld [vmem:[#allocation11 + $0xd2c] ss:$16 sps:$4 sm:$0xff]   ;;  %v12410_v10 = vld [vmem:[#allocation11 + $0xd20] ss:$16 sps:$4 sm:$0xff]  }
 0x815   :  { %v6053_v21 = vmax.f32 %v11063_v41, 0.0  ;;  %v6055_v49 = vmax.f32 %v11065_v43, 0.0  ;;  %v5969_v50 = vpop.f32.mrb[27].mxu0  ;;  %v6051_v51 = vpop.f32.mrb[27].mxu1  ;;  %v12413_v39 = vld [vmem:[#allocation11 + $0xd28] ss:$16 sps:$4 sm:$0xff]  }
 0x816   :  { %v6054_v53 = vmax.f32 %v11064_v45, 0.0  ;;  %v6056_v27 = vmax.f32 %v11066_v46, 0.0  ;;  %v12418_v40 = vld [vmem:[#allocation11 + $0xd44] ss:$16 sps:$4 sm:$0xff]   ;;  %v12421_v41 = vld [vmem:[#allocation11 + $0xd4c] ss:$16 sps:$4 sm:$0xff]  }
 0x817   :  { %v6057_v57 = vpack.c.bf16 %v6053_v21, %v6053_v21  ;;  %v6059_v58 = vpack.c.bf16 %v6055_v49, %v6055_v49  ;;  %v12416_v43 = vld [vmem:[#allocation11 + $0xd40] ss:$16 sps:$4 sm:$0xff]   ;;  %v12419_v12 = vld [vmem:[#allocation11 + $0xd48] ss:$16 sps:$4 sm:$0xff]   ;;  %v12424_v44 = vld [vmem:[#allocation11 + $0xd64] ss:$16 sps:$4 sm:$0xff]  }
 0x818   :  { %v6058_v20 = vpack.c.bf16 %v6054_v53, %v6054_v53  ;;  %v6060_v54 = vpack.c.bf16 %v6056_v27, %v6056_v27  ;;  %v12427_v45 = vld [vmem:[#allocation11 + $0xd6c] ss:$16 sps:$4 sm:$0xff]   ;;  %v12422_v46 = vld [vmem:[#allocation11 + $0xd60] ss:$16 sps:$4 sm:$0xff]   ;;  %v12425_v47 = vld [vmem:[#allocation11 + $0xd68] ss:$16 sps:$4 sm:$0xff]  }
 0x819   :  { %v12430_v48 = vld [vmem:[#allocation11 + $0xd84] ss:$16 sps:$4 sm:$0xff]   ;;  %v12433_v21 = vld [vmem:[#allocation11 + $0xd8c] ss:$16 sps:$4 sm:$0xff]   ;;  %v12428_v49 = vld [vmem:[#allocation11 + $0xd80] ss:$16 sps:$4 sm:$0xff]  }
 0x81a   :  { %6356 = vmatprep.mubr.bf16.mxu0 %v6058_v20  ;;  %6396 = vmatprep.mubr.bf16.mxu1 %v6060_v54  ;;  %v12431_v50 = vld [vmem:[#allocation11 + $0xd88] ss:$16 sps:$4 sm:$0xff]   ;;  %v12436_v51 = vld [vmem:[#allocation11 + $0xda4] ss:$16 sps:$4 sm:$0xff]   ;;  %v12439_v53 = vld [vmem:[#allocation11 + $0xdac] ss:$16 sps:$4 sm:$0xff]  }
 0x81b   :  { %6357 = vmatmul.mubr.bf16.vlgmr.msra.gmra.mrb[28].mxu0 %v6057_v57  ;;  %6397 = vmatmul.mubr.bf16.vlgmr.msra.gmra.mrb[28].mxu1 %v6059_v58  ;;  %v12434_v27 = vld [vmem:[#allocation11 + $0xda0] ss:$16 sps:$4 sm:$0xff]   ;;  %v12437_v20 = vld [vmem:[#allocation11 + $0xda8] ss:$16 sps:$4 sm:$0xff]   ;;  %v12442_v54 = vld [vmem:[#allocation11 + $0xdc4] ss:$16 sps:$4 sm:$0xff]  }
 0x81c   :  { %7197 = vmatpush1.bf16.msra.mxu0 %v12356_v55  ;;  %7279 = vmatpush1.bf16.msra.mxu1 %v12359_v56  ;;  %v12445_v55 = vld [vmem:[#allocation11 + $0xdcc] ss:$16 sps:$4 sm:$0xff]   ;;  %v12440_v56 = vld [vmem:[#allocation11 + $0xdc0] ss:$16 sps:$4 sm:$0xff]   ;;  %v12443_v57 = vld [vmem:[#allocation11 + $0xdc8] ss:$16 sps:$4 sm:$0xff]  }
 0x81d   :  { %7228 = vmatprep.mubr.bf16.mxu0 %v13420_v9  ;;  %7310 = vmatprep.mubr.bf16.mxu1 %v13420_v9  ;;  %v12385_v9 = vld [vmem:[#allocation11 + $0xc8c] ss:$16 sps:$4 sm:$0xff]   ;;  %v12448_v58 = vld [vmem:[#allocation11 + $0xde4] ss:$16 sps:$4 sm:$0xff]  }
 0x81e   :  { %7198 = vmatprep.subr.bf16.mxu0 %v12364_v59  ;;  %7280 = vmatprep.subr.bf16.mxu1 %v12367_v61  ;;  %v12451_v59 = vld [vmem:[#allocation11 + $0xdec] ss:$16 sps:$4 sm:$0xff]   ;;  %v12446_v61 = vld [vmem:[#allocation11 + $0xde0] ss:$16 sps:$4 sm:$0xff]  }
 0x820   :  { %7199 = vmatpush1.bf16.msra.mxu0 %v12362_v62  ;;  %7281 = vmatpush1.bf16.msra.mxu1 %v12365_v63  ;;  %v12449_v62 = vld [vmem:[#allocation11 + $0xde8] ss:$16 sps:$4 sm:$0xff]   ;;  %v12454_v63 = vld [vmem:[#allocation11 + $0xe04] ss:$16 sps:$4 sm:$0xff]  }
 0x821   :  { %7200 = vmatprep.subr.bf16.mxu0 %v12370_v0  ;;  %7282 = vmatprep.subr.bf16.mxu1 %v12373_v1  ;;  %v12457_v0 = vld [vmem:[#allocation11 + $0xe0c] ss:$16 sps:$4 sm:$0xff]   ;;  %v12452_v1 = vld [vmem:[#allocation11 + $0xe00] ss:$16 sps:$4 sm:$0xff]  }
 0x824   :  { %7201 = vmatpush1.bf16.msra.mxu0 %v12368_v2  ;;  %7283 = vmatpush1.bf16.msra.mxu1 %v12371_v3  ;;  %v12455_v2 = vld [vmem:[#allocation11 + $0xe08] ss:$16 sps:$4 sm:$0xff]   ;;  %v12460_v3 = vld [vmem:[#allocation11 + $0xe24] ss:$16 sps:$4 sm:$0xff]  }
 0x825   :  { %7202 = vmatprep.subr.bf16.mxu0 %v12376_v4  ;;  %7284 = vmatprep.subr.bf16.mxu1 %v12379_v38  ;;  %v12463_v4 = vld [vmem:[#allocation11 + $0xe2c] ss:$16 sps:$4 sm:$0xff]   ;;  %v12458_v38 = vld [vmem:[#allocation11 + $0xe20] ss:$16 sps:$4 sm:$0xff]  }
 0x828   :  { %7203 = vmatpush1.bf16.msra.mxu0 %v12374_v5  ;;  %7285 = vmatpush1.bf16.msra.mxu1 %v12377_v6  ;;  %v12461_v5 = vld [vmem:[#allocation11 + $0xe28] ss:$16 sps:$4 sm:$0xff]   ;;  %v12466_v6 = vld [vmem:[#allocation11 + $0xe44] ss:$16 sps:$4 sm:$0xff]  }
 0x829   :  { %7204 = vmatprep.subr.bf16.mxu0 %v12382_v7  ;;  %7286 = vmatprep.subr.bf16.mxu1 %v12385_v9  ;;  %v12469_v7 = vld [vmem:[#allocation11 + $0xe4c] ss:$16 sps:$4 sm:$0xff]   ;;  %v12464_v9 = vld [vmem:[#allocation11 + $0xe40] ss:$16 sps:$4 sm:$0xff]  }
 0x82c   :  { %7205 = vmatpush1.bf16.msra.mxu0 %v12380_v8  ;;  %7287 = vmatpush1.bf16.msra.mxu1 %v12383_v42  ;;  %v12467_v8 = vld [vmem:[#allocation11 + $0xe48] ss:$16 sps:$4 sm:$0xff]   ;;  %v12472_v42 = vld [vmem:[#allocation11 + $0xe64] ss:$16 sps:$4 sm:$0xff]  }
 0x82d   :  { %7206 = vmatprep.subr.bf16.mxu0 %v12388_v15  ;;  %7288 = vmatprep.subr.bf16.mxu1 %v12391_v23  ;;  %v12470_v15 = vld [vmem:[#allocation11 + $0xe60] ss:$16 sps:$4 sm:$0xff]   ;;  %v12473_v23 = vld [vmem:[#allocation11 + $0xe68] ss:$16 sps:$4 sm:$0xff]  }
 0x830   :  { %7207 = vmatpush1.bf16.msra.mxu0 %v12386_v17  ;;  %7289 = vmatpush1.bf16.msra.mxu1 %v12389_v18  ;;  %v12478_v17 = vld [vmem:[#allocation11 + $0xe84] ss:$16 sps:$4 sm:$0xff]   ;;  %v12476_v18 = vld [vmem:[#allocation11 + $0xe80] ss:$16 sps:$4 sm:$0xff]  }
 0x831   :  { %7208 = vmatprep.subr.bf16.mxu0 %v12394_v52  ;;  %7290 = vmatprep.subr.bf16.mxu1 %v12397_v22  ;;  %v12479_v52 = vld [vmem:[#allocation11 + $0xe88] ss:$16 sps:$4 sm:$0xff]   ;;  %v12484_v22 = vld [vmem:[#allocation11 + $0xea4] ss:$16 sps:$4 sm:$0xff]  }
 0x834   :  { %7209 = vmatpush1.bf16.msra.mxu0 %v12392_v24  ;;  %7291 = vmatpush1.bf16.msra.mxu1 %v12395_v25  ;;  %v12487_v24 = vld [vmem:[#allocation11 + $0xeac] ss:$16 sps:$4 sm:$0xff]   ;;  %v12482_v25 = vld [vmem:[#allocation11 + $0xea0] ss:$16 sps:$4 sm:$0xff]  }
 0x835   :  { %7210 = vmatprep.subr.bf16.mxu0 %v12400_v26  ;;  %7292 = vmatprep.subr.bf16.mxu1 %v12403_v28  ;;  %v12485_v26 = vld [vmem:[#allocation11 + $0xea8] ss:$16 sps:$4 sm:$0xff]   ;;  %v12490_v28 = vld [vmem:[#allocation11 + $0xec4] ss:$16 sps:$4 sm:$0xff]  }
 0x838   :  { %7211 = vmatpush1.bf16.msra.mxu0 %v12398_v30  ;;  %7293 = vmatpush1.bf16.msra.mxu1 %v12401_v31  ;;  %v12493_v30 = vld [vmem:[#allocation11 + $0xecc] ss:$16 sps:$4 sm:$0xff]   ;;  %v12488_v31 = vld [vmem:[#allocation11 + $0xec0] ss:$16 sps:$4 sm:$0xff]  }
 0x839   :  { %7212 = vmatprep.subr.bf16.mxu0 %v12406_v60  ;;  %7294 = vmatprep.subr.bf16.mxu1 %v12409_v33  ;;  %v12491_v60 = vld [vmem:[#allocation11 + $0xec8] ss:$16 sps:$4 sm:$0xff]   ;;  %v12496_v33 = vld [vmem:[#allocation11 + $0xee4] ss:$16 sps:$4 sm:$0xff]  }
 0x83c   :  { %7213 = vmatpush1.bf16.msra.mxu0 %v12404_v34  ;;  %7295 = vmatpush1.bf16.msra.mxu1 %v12407_v35  ;;  %v12499_v34 = vld [vmem:[#allocation11 + $0xeec] ss:$16 sps:$4 sm:$0xff]   ;;  %v12494_v35 = vld [vmem:[#allocation11 + $0xee0] ss:$16 sps:$4 sm:$0xff]  }
 0x83d   :  { %7214 = vmatprep.subr.bf16.mxu0 %v12412_v36  ;;  %7296 = vmatprep.subr.bf16.mxu1 %v12415_v37  ;;  %v12497_v36 = vld [vmem:[#allocation11 + $0xee8] ss:$16 sps:$4 sm:$0xff]   ;;  %v12502_v37 = vld [vmem:[#allocation11 + $0xf04] ss:$16 sps:$4 sm:$0xff]  }
 0x840   :  { %7215 = vmatpush1.bf16.msra.mxu0 %v12410_v10  ;;  %7297 = vmatpush1.bf16.msra.mxu1 %v12413_v39  ;;  %v12505_v10 = vld [vmem:[#allocation11 + $0xf0c] ss:$16 sps:$4 sm:$0xff]   ;;  %v12500_v39 = vld [vmem:[#allocation11 + $0xf00] ss:$16 sps:$4 sm:$0xff]  }
 0x841   :  { %7216 = vmatprep.subr.bf16.mxu0 %v12418_v40  ;;  %7298 = vmatprep.subr.bf16.mxu1 %v12421_v41  ;;  %v12503_v40 = vld [vmem:[#allocation11 + $0xf08] ss:$16 sps:$4 sm:$0xff]   ;;  %v12508_v41 = vld [vmem:[#allocation11 + $0xf24] ss:$16 sps:$4 sm:$0xff]  }
 0x844   :  { %7217 = vmatpush1.bf16.msra.mxu0 %v12416_v43  ;;  %7299 = vmatpush1.bf16.msra.mxu1 %v12419_v12  ;;  %v12511_v43 = vld [vmem:[#allocation11 + $0xf2c] ss:$16 sps:$4 sm:$0xff]   ;;  %v12506_v12 = vld [vmem:[#allocation11 + $0xf20] ss:$16 sps:$4 sm:$0xff]  }
 0x845   :  { %7218 = vmatprep.subr.bf16.mxu0 %v12424_v44  ;;  %7300 = vmatprep.subr.bf16.mxu1 %v12427_v45  ;;  %v12509_v44 = vld [vmem:[#allocation11 + $0xf28] ss:$16 sps:$4 sm:$0xff]   ;;  %v12514_v45 = vld [vmem:[#allocation11 + $0xf44] ss:$16 sps:$4 sm:$0xff]  }
 0x848   :  { %7219 = vmatpush1.bf16.msra.mxu0 %v12422_v46  ;;  %7301 = vmatpush1.bf16.msra.mxu1 %v12425_v47  ;;  %v12517_v46 = vld [vmem:[#allocation11 + $0xf4c] ss:$16 sps:$4 sm:$0xff]   ;;  %v12512_v47 = vld [vmem:[#allocation11 + $0xf40] ss:$16 sps:$4 sm:$0xff]  }
 0x849   :  { %7220 = vmatprep.subr.bf16.mxu0 %v12430_v48  ;;  %7302 = vmatprep.subr.bf16.mxu1 %v12433_v21  ;;  %v12515_v48 = vld [vmem:[#allocation11 + $0xf48] ss:$16 sps:$4 sm:$0xff]   ;;  %v12520_v21 = vld [vmem:[#allocation11 + $0xf64] ss:$16 sps:$4 sm:$0xff]  }
 0x84c   :  { %7221 = vmatpush1.bf16.msra.mxu0 %v12428_v49  ;;  %7303 = vmatpush1.bf16.msra.mxu1 %v12431_v50  ;;  %v12523_v49 = vld [vmem:[#allocation11 + $0xf6c] ss:$16 sps:$4 sm:$0xff]   ;;  %v12518_v50 = vld [vmem:[#allocation11 + $0xf60] ss:$16 sps:$4 sm:$0xff]  }
 0x84d   :  { %7222 = vmatprep.subr.bf16.mxu0 %v12436_v51  ;;  %7304 = vmatprep.subr.bf16.mxu1 %v12439_v53  ;;  %v12521_v51 = vld [vmem:[#allocation11 + $0xf68] ss:$16 sps:$4 sm:$0xff]   ;;  %v12526_v53 = vld [vmem:[#allocation11 + $0xf84] ss:$16 sps:$4 sm:$0xff]  }
 0x850   :  { %7223 = vmatpush1.bf16.msra.mxu0 %v12434_v27  ;;  %7305 = vmatpush1.bf16.msra.mxu1 %v12437_v20  ;;  %v12529_v27 = vld [vmem:[#allocation11 + $0xf8c] ss:$16 sps:$4 sm:$0xff]   ;;  %v12524_v20 = vld [vmem:[#allocation11 + $0xf80] ss:$16 sps:$4 sm:$0xff]  }
 0x851   :  { %7224 = vmatprep.subr.bf16.mxu0 %v12442_v54  ;;  %7306 = vmatprep.subr.bf16.mxu1 %v12445_v55  ;;  %v12527_v54 = vld [vmem:[#allocation11 + $0xf88] ss:$16 sps:$4 sm:$0xff]   ;;  %v12532_v55 = vld [vmem:[#allocation11 + $0xfa4] ss:$16 sps:$4 sm:$0xff]  }
 0x854   :  { %7225 = vmatpush1.bf16.msra.mxu0 %v12440_v56  ;;  %7307 = vmatpush1.bf16.msra.mxu1 %v12443_v57  ;;  %v12535_v56 = vld [vmem:[#allocation11 + $0xfac] ss:$16 sps:$4 sm:$0xff]   ;;  %v12530_v57 = vld [vmem:[#allocation11 + $0xfa0] ss:$16 sps:$4 sm:$0xff]  }
 0x855   :  { %7226 = vmatprep.subr.bf16.mxu0 %v12448_v58  ;;  %7308 = vmatprep.subr.bf16.mxu1 %v12451_v59  ;;  %v12533_v58 = vld [vmem:[#allocation11 + $0xfa8] ss:$16 sps:$4 sm:$0xff]   ;;  %v12538_v59 = vld [vmem:[#allocation11 + $0xfc4] ss:$16 sps:$4 sm:$0xff]  }
 0x858   :  { %7227 = vmatpush1.bf16.msra.mxu0 %v12446_v61  ;;  %7309 = vmatpush1.bf16.msra.mxu1 %v12449_v62  ;;  %v12541_v61 = vld [vmem:[#allocation11 + $0xfcc] ss:$16 sps:$4 sm:$0xff]   ;;  %v12536_v62 = vld [vmem:[#allocation11 + $0xfc0] ss:$16 sps:$4 sm:$0xff]  }
 0x859   :  { %7237 = vmatprep.subr.bf16.mxu0 %v12454_v63  ;;  %7319 = vmatprep.subr.bf16.mxu1 %v12457_v0  ;;  %v12539_v63 = vld [vmem:[#allocation11 + $0xfc8] ss:$16 sps:$4 sm:$0xff]   ;;  %v12544_v0 = vld [vmem:[#allocation11 + $0xfe4] ss:$16 sps:$4 sm:$0xff]  }
 0x85b   :  { %7229 = vmatmul.mubr.bf16.vlgmr.msra.gmra.mrb[32].mxu0 %v13422_v16  ;;  %7311 = vmatmul.mubr.bf16.vlgmr.msra.gmra.mrb[32].mxu1 %v13422_v16  ;;  %v12475_v16 = vld [vmem:[#allocation11 + $0xe6c] ss:$16 sps:$4 sm:$0xff]  }
 0x85c   :  { %7238 = vmatpush1.bf16.msra.mxu0 %v12452_v1  ;;  %7269 = vmatprep.mubr.bf16.mxu0 %v13426_v19  ;;  %v12547_v1 = vld [vmem:[#allocation11 + $0xfec] ss:$16 sps:$4 sm:$0xff]  }
 0x85d   :  { %7320 = vmatpush1.bf16.msra.mxu1 %v12455_v2  ;;  %7351 = vmatprep.mubr.bf16.mxu1 %v13426_v19  ;;  %v12481_v19 = vld [vmem:[#allocation11 + $0xe8c] ss:$16 sps:$4 sm:$0xff]   ;;  %v12542_v2 = vld [vmem:[#allocation11 + $0xfe0] ss:$16 sps:$4 sm:$0xff]  }
 0x85e   :  { %7239 = vmatprep.subr.bf16.mxu0 %v12460_v3  ;;  %7321 = vmatprep.subr.bf16.mxu1 %v12463_v4  ;;  %v12545_v3 = vld [vmem:[#allocation11 + $0xfe8] ss:$16 sps:$4 sm:$0xff]   ;;  %v12550_v4 = vld [vmem:[#allocation11 + $0x1004] ss:$16 sps:$4 sm:$0xff]  }
 0x860   :  { %7240 = vmatpush1.bf16.msra.mxu0 %v12458_v38  ;;  %v12553_v38 = vld [vmem:[#allocation11 + $0x100c] ss:$16 sps:$4 sm:$0xff]  }
 0x861   :  { %7322 = vmatpush1.bf16.msra.mxu1 %v12461_v5  ;;  %7241 = vmatprep.subr.bf16.mxu0 %v12466_v6  ;;  %v12548_v5 = vld [vmem:[#allocation11 + $0x1000] ss:$16 sps:$4 sm:$0xff]   ;;  %v12551_v6 = vld [vmem:[#allocation11 + $0x1008] ss:$16 sps:$4 sm:$0xff]  }
 0x862   :  { %7323 = vmatprep.subr.bf16.mxu1 %v12469_v7  ;;  %v12556_v7 = vld [vmem:[#allocation11 + $0x1024] ss:$16 sps:$4 sm:$0xff]  }
 0x864   :  { %7242 = vmatpush1.bf16.msra.mxu0 %v12464_v9  ;;  %v12559_v9 = vld [vmem:[#allocation11 + $0x102c] ss:$16 sps:$4 sm:$0xff]  }
 0x865   :  { %7324 = vmatpush1.bf16.msra.mxu1 %v12467_v8  ;;  %7243 = vmatprep.subr.bf16.mxu0 %v12472_v42  ;;  %v12554_v8 = vld [vmem:[#allocation11 + $0x1020] ss:$16 sps:$4 sm:$0xff]   ;;  %v12557_v42 = vld [vmem:[#allocation11 + $0x1028] ss:$16 sps:$4 sm:$0xff]  }
 0x866   :  { %7325 = vmatprep.subr.bf16.mxu1 %v12475_v16  ;;  %v12562_v16 = vld [vmem:[#allocation11 + $0x1044] ss:$16 sps:$4 sm:$0xff]  }
 0x868   :  { %7244 = vmatpush1.bf16.msra.mxu0 %v12470_v15  ;;  %v12565_v15 = vld [vmem:[#allocation11 + $0x104c] ss:$16 sps:$4 sm:$0xff]  }
 0x869   :  { %7326 = vmatpush1.bf16.msra.mxu1 %v12473_v23  ;;  %7245 = vmatprep.subr.bf16.mxu0 %v12478_v17  ;;  %v12560_v23 = vld [vmem:[#allocation11 + $0x1040] ss:$16 sps:$4 sm:$0xff]   ;;  %v12563_v17 = vld [vmem:[#allocation11 + $0x1048] ss:$16 sps:$4 sm:$0xff]  }
 0x86a   :  { %7327 = vmatprep.subr.bf16.mxu1 %v12481_v19  ;;  %v12568_v19 = vld [vmem:[#allocation11 + $0x1064] ss:$16 sps:$4 sm:$0xff]  }
 0x86c   :  { %7246 = vmatpush1.bf16.msra.mxu0 %v12476_v18  ;;  %v12571_v18 = vld [vmem:[#allocation11 + $0x106c] ss:$16 sps:$4 sm:$0xff]  }
 0x86d   :  { %7328 = vmatpush1.bf16.msra.mxu1 %v12479_v52  ;;  %7247 = vmatprep.subr.bf16.mxu0 %v12484_v22  ;;  %v12566_v52 = vld [vmem:[#allocation11 + $0x1060] ss:$16 sps:$4 sm:$0xff]   ;;  %v12574_v22 = vld [vmem:[#allocation11 + $0x1084] ss:$16 sps:$4 sm:$0xff]  }
 0x86e   :  { %7329 = vmatprep.subr.bf16.mxu1 %v12487_v24  ;;  %v12577_v24 = vld [vmem:[#allocation11 + $0x108c] ss:$16 sps:$4 sm:$0xff]  }
 0x870   :  { %7248 = vmatpush1.bf16.msra.mxu0 %v12482_v25  ;;  %v12572_v25 = vld [vmem:[#allocation11 + $0x1080] ss:$16 sps:$4 sm:$0xff]  }
 0x871   :  { %7330 = vmatpush1.bf16.msra.mxu1 %v12485_v26  ;;  %7249 = vmatprep.subr.bf16.mxu0 %v12490_v28  ;;  %v12575_v26 = vld [vmem:[#allocation11 + $0x1088] ss:$16 sps:$4 sm:$0xff]   ;;  %v12580_v28 = vld [vmem:[#allocation11 + $0x10a4] ss:$16 sps:$4 sm:$0xff]  }
 0x872   :  { %7331 = vmatprep.subr.bf16.mxu1 %v12493_v30  ;;  %v12583_v30 = vld [vmem:[#allocation11 + $0x10ac] ss:$16 sps:$4 sm:$0xff]  }
 0x874   :  { %7250 = vmatpush1.bf16.msra.mxu0 %v12488_v31  ;;  %v12578_v31 = vld [vmem:[#allocation11 + $0x10a0] ss:$16 sps:$4 sm:$0xff]  }
 0x875   :  { %7332 = vmatpush1.bf16.msra.mxu1 %v12491_v60  ;;  %7251 = vmatprep.subr.bf16.mxu0 %v12496_v33  ;;  %v12581_v60 = vld [vmem:[#allocation11 + $0x10a8] ss:$16 sps:$4 sm:$0xff]   ;;  %v12586_v33 = vld [vmem:[#allocation11 + $0x10c4] ss:$16 sps:$4 sm:$0xff]  }
 0x876   :  { %7333 = vmatprep.subr.bf16.mxu1 %v12499_v34  ;;  %v12589_v34 = vld [vmem:[#allocation11 + $0x10cc] ss:$16 sps:$4 sm:$0xff]  }
 0x878   :  { %7252 = vmatpush1.bf16.msra.mxu0 %v12494_v35  ;;  %v12584_v35 = vld [vmem:[#allocation11 + $0x10c0] ss:$16 sps:$4 sm:$0xff]  }
 0x879   :  { %7334 = vmatpush1.bf16.msra.mxu1 %v12497_v36  ;;  %7253 = vmatprep.subr.bf16.mxu0 %v12502_v37  ;;  %v12587_v36 = vld [vmem:[#allocation11 + $0x10c8] ss:$16 sps:$4 sm:$0xff]   ;;  %v12592_v37 = vld [vmem:[#allocation11 + $0x10e4] ss:$16 sps:$4 sm:$0xff]  }
 0x87a   :  { %7335 = vmatprep.subr.bf16.mxu1 %v12505_v10  ;;  %v12595_v10 = vld [vmem:[#allocation11 + $0x10ec] ss:$16 sps:$4 sm:$0xff]  }
 0x87c   :  { %7254 = vmatpush1.bf16.msra.mxu0 %v12500_v39  ;;  %v12590_v39 = vld [vmem:[#allocation11 + $0x10e0] ss:$16 sps:$4 sm:$0xff]  }
 0x87d   :  { %7336 = vmatpush1.bf16.msra.mxu1 %v12503_v40  ;;  %7255 = vmatprep.subr.bf16.mxu0 %v12508_v41  ;;  %v12593_v40 = vld [vmem:[#allocation11 + $0x10e8] ss:$16 sps:$4 sm:$0xff]   ;;  %v12598_v41 = vld [vmem:[#allocation11 + $0x1104] ss:$16 sps:$4 sm:$0xff]  }
 0x87e   :  { %7337 = vmatprep.subr.bf16.mxu1 %v12511_v43  ;;  %v12601_v43 = vld [vmem:[#allocation11 + $0x110c] ss:$16 sps:$4 sm:$0xff]  }
 0x880   :  { %7256 = vmatpush1.bf16.msra.mxu0 %v12506_v12  ;;  %v12596_v12 = vld [vmem:[#allocation11 + $0x1100] ss:$16 sps:$4 sm:$0xff]  }
 0x881   :  { %7338 = vmatpush1.bf16.msra.mxu1 %v12509_v44  ;;  %7257 = vmatprep.subr.bf16.mxu0 %v12514_v45  ;;  %v12599_v44 = vld [vmem:[#allocation11 + $0x1108] ss:$16 sps:$4 sm:$0xff]   ;;  %v12604_v45 = vld [vmem:[#allocation11 + $0x1124] ss:$16 sps:$4 sm:$0xff]  }
 0x882   :  { %7339 = vmatprep.subr.bf16.mxu1 %v12517_v46  ;;  %v12607_v46 = vld [vmem:[#allocation11 + $0x112c] ss:$16 sps:$4 sm:$0xff]  }
 0x884   :  { %7258 = vmatpush1.bf16.msra.mxu0 %v12512_v47  ;;  %v12602_v47 = vld [vmem:[#allocation11 + $0x1120] ss:$16 sps:$4 sm:$0xff]  }
 0x885   :  { %7340 = vmatpush1.bf16.msra.mxu1 %v12515_v48  ;;  %7259 = vmatprep.subr.bf16.mxu0 %v12520_v21  ;;  %v12605_v48 = vld [vmem:[#allocation11 + $0x1128] ss:$16 sps:$4 sm:$0xff]   ;;  %v12610_v21 = vld [vmem:[#allocation11 + $0x1144] ss:$16 sps:$4 sm:$0xff]  }
 0x886   :  { %7341 = vmatprep.subr.bf16.mxu1 %v12523_v49  ;;  %v12613_v49 = vld [vmem:[#allocation11 + $0x114c] ss:$16 sps:$4 sm:$0xff]  }
 0x888   :  { %7260 = vmatpush1.bf16.msra.mxu0 %v12518_v50  ;;  %v12608_v50 = vld [vmem:[#allocation11 + $0x1140] ss:$16 sps:$4 sm:$0xff]  }
 0x889   :  { %7342 = vmatpush1.bf16.msra.mxu1 %v12521_v51  ;;  %7261 = vmatprep.subr.bf16.mxu0 %v12526_v53  ;;  %v12611_v51 = vld [vmem:[#allocation11 + $0x1148] ss:$16 sps:$4 sm:$0xff]   ;;  %v12616_v53 = vld [vmem:[#allocation11 + $0x1164] ss:$16 sps:$4 sm:$0xff]  }
 0x88a   :  { %7343 = vmatprep.subr.bf16.mxu1 %v12529_v27  ;;  %v12619_v27 = vld [vmem:[#allocation11 + $0x116c] ss:$16 sps:$4 sm:$0xff]  }
 0x88c   :  { %7262 = vmatpush1.bf16.msra.mxu0 %v12524_v20  ;;  %v12614_v20 = vld [vmem:[#allocation11 + $0x1160] ss:$16 sps:$4 sm:$0xff]  }
 0x88d   :  { %7344 = vmatpush1.bf16.msra.mxu1 %v12527_v54  ;;  %7263 = vmatprep.subr.bf16.mxu0 %v12532_v55  ;;  %v12617_v54 = vld [vmem:[#allocation11 + $0x1168] ss:$16 sps:$4 sm:$0xff]   ;;  %v12622_v55 = vld [vmem:[#allocation11 + $0x1184] ss:$16 sps:$4 sm:$0xff]  }
 0x88e   :  { %7345 = vmatprep.subr.bf16.mxu1 %v12535_v56  ;;  %v12625_v56 = vld [vmem:[#allocation11 + $0x118c] ss:$16 sps:$4 sm:$0xff]  }
 0x890   :  { %7264 = vmatpush1.bf16.msra.mxu0 %v12530_v57  ;;  %v12620_v57 = vld [vmem:[#allocation11 + $0x1180] ss:$16 sps:$4 sm:$0xff]  }
 0x891   :  { %7346 = vmatpush1.bf16.msra.mxu1 %v12533_v58  ;;  %7265 = vmatprep.subr.bf16.mxu0 %v12538_v59  ;;  %v12623_v58 = vld [vmem:[#allocation11 + $0x1188] ss:$16 sps:$4 sm:$0xff]   ;;  %v12628_v59 = vld [vmem:[#allocation11 + $0x11a4] ss:$16 sps:$4 sm:$0xff]  }
 0x892   :  { %7347 = vmatprep.subr.bf16.mxu1 %v12541_v61  ;;  %v12631_v61 = vld [vmem:[#allocation11 + $0x11ac] ss:$16 sps:$4 sm:$0xff]  }
 0x894   :  { %7266 = vmatpush1.bf16.msra.mxu0 %v12536_v62  ;;  %v12626_v62 = vld [vmem:[#allocation11 + $0x11a0] ss:$16 sps:$4 sm:$0xff]  }
 0x895   :  { %7348 = vmatpush1.bf16.msra.mxu1 %v12539_v63  ;;  %7267 = vmatprep.subr.bf16.mxu0 %v12544_v0  ;;  %v12629_v63 = vld [vmem:[#allocation11 + $0x11a8] ss:$16 sps:$4 sm:$0xff]   ;;  %v12634_v0 = vld [vmem:[#allocation11 + $0x11c4] ss:$16 sps:$4 sm:$0xff]  }
 0x896   :  { %7349 = vmatprep.subr.bf16.mxu1 %v12547_v1  ;;  %v12637_v1 = vld [vmem:[#allocation11 + $0x11cc] ss:$16 sps:$4 sm:$0xff]  }
 0x898   :  { %7268 = vmatpush1.bf16.msra.mxu0 %v12542_v2 }
 0x899   :  { %7350 = vmatpush1.bf16.msra.mxu1 %v12545_v3  ;;  %8160 = vmatprep.subr.bf16.mxu0 %v12550_v4  ;;  %v12632_v4 = vld [vmem:[#allocation11 + $0x11c0] ss:$16 sps:$4 sm:$0xff]  }
 0x89a   :  { %8242 = vmatprep.subr.bf16.mxu1 %v12553_v38  ;;  %v12635_v38 = vld [vmem:[#allocation11 + $0x11c8] ss:$16 sps:$4 sm:$0xff]  }
 0x89b   :  { %7270 = vmatmul.mubr.bf16.vlgmr.msra.gmra.mrb[32].mxu0 %v13435_v32 }
 0x89c   :  { %7352 = vmatmul.mubr.bf16.vlgmr.msra.gmra.mrb[32].mxu1 %v13435_v32  ;;  %8161 = vmatpush1.bf16.msra.mxu0 %v12548_v5  ;;  %v12569_v32 = vld [vmem:[#allocation11 + $0x1068] ss:$16 sps:$4 sm:$0xff]  }
 0x89d   :  { %8243 = vmatpush1.bf16.msra.mxu1 %v12551_v6  ;;  %8162 = vmatprep.subr.bf16.mxu0 %v12556_v7  ;;  %v10441_v5 = vld [vmem:[#allocation14] ss:$0 sm:$0xff] }
 0x89e   :  { %8244 = vmatprep.subr.bf16.mxu1 %v12559_v9 }
 0x8a0   :  { %8163 = vmatpush1.bf16.msra.mxu0 %v12554_v8 }
 0x8a1   :  { %8245 = vmatpush1.bf16.msra.mxu1 %v12557_v42  ;;  %8164 = vmatprep.subr.bf16.mxu0 %v12562_v16 }
 0x8a2   :  { %8246 = vmatprep.subr.bf16.mxu1 %v12565_v15 }
 0x8a4   :  { %8165 = vmatpush1.bf16.msra.mxu0 %v12560_v23 }
 0x8a5   :  { %8247 = vmatpush1.bf16.msra.mxu1 %v12563_v17  ;;  %8166 = vmatprep.subr.bf16.mxu0 %v12568_v19  ;;  %v12640_v17 = vld [vmem:[#allocation11 + $0x11e4] ss:$16 sps:$4 sm:$0xff]   ;;  %v12643_v19 = vld [vmem:[#allocation11 + $0x11ec] ss:$16 sps:$4 sm:$0xff]  }
 0x8a6   :  { %8248 = vmatprep.subr.bf16.mxu1 %v12571_v18 }
 0x8a8   :  { %8167 = vmatpush1.bf16.msra.mxu0 %v12566_v52  ;;  %v12638_v52 = vld [vmem:[#allocation11 + $0x11e0] ss:$16 sps:$4 sm:$0xff]  }
 0x8a9   :  { %8249 = vmatpush1.bf16.msra.mxu1 %v12569_v32  ;;  %8168 = vmatprep.subr.bf16.mxu0 %v12574_v22  ;;  %v12641_v32 = vld [vmem:[#allocation11 + $0x11e8] ss:$16 sps:$4 sm:$0xff]  }
 0x8aa   :  { %8250 = vmatprep.subr.bf16.mxu1 %v12577_v24  ;;  %v12646_v24 = vld [vmem:[#allocation11 + $0x1204] ss:$16 sps:$4 sm:$0xff]  }
 0x8ac   :  { %8169 = vmatpush1.bf16.msra.mxu0 %v12572_v25  ;;  %v12649_v25 = vld [vmem:[#allocation11 + $0x120c] ss:$16 sps:$4 sm:$0xff]  }
 0x8ad   :  { %8251 = vmatpush1.bf16.msra.mxu1 %v12575_v26  ;;  %8170 = vmatprep.subr.bf16.mxu0 %v12580_v28  ;;  %v13575_v26 = vld [vmem:[#allocation13 + $0xc] sm:$0xf] }
 0x8ae   :  { %8252 = vmatprep.subr.bf16.mxu1 %v12583_v30  ;;  %v6539_v28 = vrot.slane %v13575_v26, %v13360_v11  ;;  %v6543_v30 = vrot.slane %v13575_v26, %v13365_v13 }
 0x8b0   :  { %8171 = vmatpush1.bf16.msra.mxu0 %v12578_v31  ;;  %v6551_v31 = vrot.slane %v13575_v26, %v13368_v14 }
 0x8b1   :  { %8253 = vmatpush1.bf16.msra.mxu1 %v12581_v60  ;;  %8172 = vmatprep.subr.bf16.mxu0 %v12586_v33 }
 0x8b2   :  { %8254 = vmatprep.subr.bf16.mxu1 %v12589_v34 }
 0x8b4   :  { %8173 = vmatpush1.bf16.msra.mxu0 %v12584_v35 }
 0x8b5   :  { %8255 = vmatpush1.bf16.msra.mxu1 %v12587_v36  ;;  %8174 = vmatprep.subr.bf16.mxu0 %v12592_v37 }
 0x8b6   :  { %8256 = vmatprep.subr.bf16.mxu1 %v12595_v10 }
 0x8b8   :  { %8175 = vmatpush1.bf16.msra.mxu0 %v12590_v39 }
 0x8b9   :  { %8257 = vmatpush1.bf16.msra.mxu1 %v12593_v40  ;;  %8176 = vmatprep.subr.bf16.mxu0 %v12598_v41 }
 0x8ba   :  { %8258 = vmatprep.subr.bf16.mxu1 %v12601_v43 }
 0x8bc   :  { %8177 = vmatpush1.bf16.msra.mxu0 %v12596_v12 }
 0x8bd   :  { %8259 = vmatpush1.bf16.msra.mxu1 %v12599_v44  ;;  %8178 = vmatprep.subr.bf16.mxu0 %v12604_v45 }
 0x8be   :  { %8260 = vmatprep.subr.bf16.mxu1 %v12607_v46 }
 0x8c0   :  { %8179 = vmatpush1.bf16.msra.mxu0 %v12602_v47  ;;  %v12644_v47 = vld [vmem:[#allocation11 + $0x1200] ss:$16 sps:$4 sm:$0xff]  }
 0x8c1   :  { %8261 = vmatpush1.bf16.msra.mxu1 %v12605_v48  ;;  %8180 = vmatprep.subr.bf16.mxu0 %v12610_v21  ;;  %v12647_v48 = vld [vmem:[#allocation11 + $0x1208] ss:$16 sps:$4 sm:$0xff]  }
 0x8c2   :  { %8262 = vmatprep.subr.bf16.mxu1 %v12613_v49  ;;  %v12652_v49 = vld [vmem:[#allocation11 + $0x1224] ss:$16 sps:$4 sm:$0xff]  }
 0x8c4   :  { %8181 = vmatpush1.bf16.msra.mxu0 %v12608_v50  ;;  %v12655_v50 = vld [vmem:[#allocation11 + $0x122c] ss:$16 sps:$4 sm:$0xff]  }
 0x8c5   :  { %8263 = vmatpush1.bf16.msra.mxu1 %v12611_v51  ;;  %8182 = vmatprep.subr.bf16.mxu0 %v12616_v53  ;;  %v12650_v53 = vld [vmem:[#allocation11 + $0x1220] ss:$16 sps:$4 sm:$0xff]  }
 0x8c6   :  { %8264 = vmatprep.subr.bf16.mxu1 %v12619_v27  ;;  %v12653_v27 = vld [vmem:[#allocation11 + $0x1228] ss:$16 sps:$4 sm:$0xff]  }
 0x8c8   :  { %8183 = vmatpush1.bf16.msra.mxu0 %v12614_v20  ;;  %v12658_v20 = vld [vmem:[#allocation11 + $0x1244] ss:$16 sps:$4 sm:$0xff]  }
 0x8c9   :  { %8265 = vmatpush1.bf16.msra.mxu1 %v12617_v54  ;;  %8184 = vmatprep.subr.bf16.mxu0 %v12622_v55  ;;  %v12661_v54 = vld [vmem:[#allocation11 + $0x124c] ss:$16 sps:$4 sm:$0xff]   ;;  %v12656_v55 = vld [vmem:[#allocation11 + $0x1240] ss:$16 sps:$4 sm:$0xff]  }
 0x8ca   :  { %8266 = vmatprep.subr.bf16.mxu1 %v12625_v56  ;;  %v12659_v56 = vld [vmem:[#allocation11 + $0x1248] ss:$16 sps:$4 sm:$0xff]  }
 0x8cc   :  { %8185 = vmatpush1.bf16.msra.mxu0 %v12620_v57  ;;  %v12664_v57 = vld [vmem:[#allocation11 + $0x1264] ss:$16 sps:$4 sm:$0xff]  }
 0x8cd   :  { %8267 = vmatpush1.bf16.msra.mxu1 %v12623_v58  ;;  %8186 = vmatprep.subr.bf16.mxu0 %v12628_v59  ;;  %v12667_v58 = vld [vmem:[#allocation11 + $0x126c] ss:$16 sps:$4 sm:$0xff]   ;;  %v12662_v59 = vld [vmem:[#allocation11 + $0x1260] ss:$16 sps:$4 sm:$0xff]  }
 0x8ce   :  { %8268 = vmatprep.subr.bf16.mxu1 %v12631_v61  ;;  %v12665_v61 = vld [vmem:[#allocation11 + $0x1268] ss:$16 sps:$4 sm:$0xff]  }
 0x8d0   :  { %8187 = vmatpush1.bf16.msra.mxu0 %v12626_v62  ;;  %v12670_v62 = vld [vmem:[#allocation11 + $0x1284] ss:$16 sps:$4 sm:$0xff]  }
 0x8d1   :  { %8269 = vmatpush1.bf16.msra.mxu1 %v12629_v63  ;;  %8188 = vmatprep.subr.bf16.mxu0 %v12634_v0  ;;  %v12673_v63 = vld [vmem:[#allocation11 + $0x128c] ss:$16 sps:$4 sm:$0xff]   ;;  %v12668_v0 = vld [vmem:[#allocation11 + $0x1280] ss:$16 sps:$4 sm:$0xff]  }
 0x8d2   :  { %8270 = vmatprep.subr.bf16.mxu1 %v12637_v1  ;;  %v12671_v1 = vld [vmem:[#allocation11 + $0x1288] ss:$16 sps:$4 sm:$0xff]  }
 0x8d4   :  { %8189 = vmatpush1.bf16.msra.mxu0 %v12632_v4  ;;  %v12674_v4 = vld [vmem:[#allocation11 + $0x12a0] ss:$16 sps:$4 sm:$0xff]  }
 0x8d5   :  { %8271 = vmatpush1.bf16.msra.mxu1 %v12635_v38  ;;  %8190 = vmatprep.subr.bf16.mxu0 %v12640_v17  ;;  %v12677_v38 = vld [vmem:[#allocation11 + $0x12a8] ss:$16 sps:$4 sm:$0xff]   ;;  %v12697_v17 = vld [vmem:[#allocation11 + $0x130c] ss:$16 sps:$4 sm:$0xff]  }
 0x8d6   :  { %8272 = vmatprep.subr.bf16.mxu1 %v12643_v19  ;;  %v12692_v19 = vld [vmem:[#allocation11 + $0x1300] ss:$16 sps:$4 sm:$0xff]  }
 0x8d8   :  { %8191 = vmatpush1.bf16.msra.mxu0 %v12638_v52  ;;  %v12700_v52 = vld [vmem:[#allocation11 + $0x1324] ss:$16 sps:$4 sm:$0xff]  }
 0x8d9   :  { %8273 = vmatpush1.bf16.msra.mxu1 %v12641_v32  ;;  %8201 = vmatprep.subr.bf16.mxu0 %v12646_v24  ;;  %v12703_v32 = vld [vmem:[#allocation11 + $0x132c] ss:$16 sps:$4 sm:$0xff]   ;;  %v12698_v24 = vld [vmem:[#allocation11 + $0x1320] ss:$16 sps:$4 sm:$0xff]  }
 0x8da   :  { %8283 = vmatprep.subr.bf16.mxu1 %v12649_v25  ;;  %v12701_v25 = vld [vmem:[#allocation11 + $0x1328] ss:$16 sps:$4 sm:$0xff]  }
 0x8ee   :  { %v10971_v2 = vpop.f32.mrb[28].mxu0  ;;  %v10993_v3 = vpop.f32.mrb[28].mxu1 }
 0x8ef   :  { %v10972_v6 = vpop.f32.mrb[29].mxu0  ;;  %v10994_v7 = vpop.f32.mrb[29].mxu1 }
 0x8f0   :  { %v10973_v9 = vadd.f32 %v10972_v6, %v10971_v2  ;;  %v10995_v8 = vadd.f32 %v10994_v7, %v10993_v3  ;;  %v10974_v42 = vpop.f32.mrb[30].mxu0  ;;  %v10996_v16 = vpop.f32.mrb[30].mxu1  ;;  %v12676_v2 = vld [vmem:[#allocation11 + $0x12a4] ss:$16 sps:$4 sm:$0xff]   ;;  %v12679_v3 = vld [vmem:[#allocation11 + $0x12ac] ss:$16 sps:$4 sm:$0xff]  }
 0x8f1   :  { %v10975_v15 = vpop.f32.mrb[31].mxu0  ;;  %v10997_v23 = vpop.f32.mrb[31].mxu1  ;;  %v12685_v6 = vld [vmem:[#allocation11 + $0x12cc] ss:$16 sps:$4 sm:$0xff]   ;;  %v12680_v7 = vld [vmem:[#allocation11 + $0x12c0] ss:$16 sps:$4 sm:$0xff]  }
 0x8f2   :  { %v6359_v18 = vadd.f32 %v10973_v9, %v10441_v5  ;;  %v12682_v5 = vld [vmem:[#allocation11 + $0x12c4] ss:$16 sps:$4 sm:$0xff]   ;;  %v12683_v9 = vld [vmem:[#allocation11 + $0x12c8] ss:$16 sps:$4 sm:$0xff]   ;;  %v12691_v42 = vld [vmem:[#allocation11 + $0x12ec] ss:$16 sps:$4 sm:$0xff]  }
 0x8f3   :  { %v12686_v16 = vld [vmem:[#allocation11 + $0x12e0] ss:$16 sps:$4 sm:$0xff]   ;;  %v12689_v15 = vld [vmem:[#allocation11 + $0x12e8] ss:$16 sps:$4 sm:$0xff]   ;;  %v12694_v23 = vld [vmem:[#allocation11 + $0x1304] ss:$16 sps:$4 sm:$0xff]  }
 0x8f4   :  { %v13573_v22 = vadd.f32 %v10995_v8, %v6359_v18  ;;  %v12688_v8 = vld [vmem:[#allocation11 + $0x12e4] ss:$16 sps:$4 sm:$0xff]   ;;  %v12695_v18 = vld [vmem:[#allocation11 + $0x1308] ss:$16 sps:$4 sm:$0xff]  }
 0x96e   :  { %v7271_v60 = vpop.f32.mrb[32].mxu0 }
 0x96f   :  { %v11067_v33 = vadd.f32 %v7271_v60, %v6539_v28  ;;  %v13583_v34 = vpop.f32.mrb[32].mxu1  ;;  %v7273_v35 = vpop.f32.mrb[33].mxu0  ;;  %v12706_v28 = vld [vmem:[#allocation11 + $0x1344] ss:$16 sps:$4 sm:$0xff]   ;;  %v12707_v60 = vld [vmem:[#allocation11 + $0x1348] ss:$16 sps:$4 sm:$0xff]  }
 0x970   :  { %v11068_v36 = vadd.f32 %v7273_v35, %v6543_v30  ;;  %v7355_v37 = vpop.f32.mrb[33].mxu1  ;;  %v7275_v10 = vpop.f32.mrb[34].mxu0  ;;  %v12709_v30 = vld [vmem:[#allocation11 + $0x134c] ss:$16 sps:$4 sm:$0xff]  }
 0x971   :  { %v7360_v39 = vmax.f32 %v11067_v33, 0.0  ;;  %v11070_v40 = vadd.f32 %v7355_v37, %v6551_v31  ;;  %v7357_v41 = vpop.f32.mrb[34].mxu1  ;;  %v7276_v43 = vpop.f32.mrb[35].mxu0  ;;  %v12704_v31 = vld [vmem:[#allocation11 + $0x1340] ss:$16 sps:$4 sm:$0xff]  }
 0x972   :  { %v7361_v12 = vmax.f32 %v11068_v36, 0.0  ;;  %v7358_v44 = vpop.f32.mrb[35].mxu1  ;;  %v12712_v33 = vld [vmem:[#allocation11 + $0x1364] ss:$16 sps:$4 sm:$0xff]   ;;  %v12715_v35 = vld [vmem:[#allocation11 + $0x136c] ss:$16 sps:$4 sm:$0xff]  }
 0x973   :  { %v7363_v45 = vmax.f32 %v11070_v40, 0.0  ;;  %v7364_v21 = vpack.c.bf16 %v7360_v39, %v7360_v39  ;;  %v12710_v36 = vld [vmem:[#allocation11 + $0x1360] ss:$16 sps:$4 sm:$0xff]   ;;  %v12713_v37 = vld [vmem:[#allocation11 + $0x1368] ss:$16 sps:$4 sm:$0xff]  }
 0x974   :  { %v7365_v46 = vpack.c.bf16 %v7361_v12, %v7361_v12  ;;  %v12718_v10 = vld [vmem:[#allocation11 + $0x1384] ss:$16 sps:$4 sm:$0xff]   ;;  %v12721_v39 = vld [vmem:[#allocation11 + $0x138c] ss:$16 sps:$4 sm:$0xff]   ;;  %v12716_v40 = vld [vmem:[#allocation11 + $0x1380] ss:$16 sps:$4 sm:$0xff]  }
 0x975   :  { %v7367_v51 = vpack.c.bf16 %v7363_v45, %v7363_v45  ;;  %v12719_v41 = vld [vmem:[#allocation11 + $0x1388] ss:$16 sps:$4 sm:$0xff]   ;;  %v12724_v43 = vld [vmem:[#allocation11 + $0x13a4] ss:$16 sps:$4 sm:$0xff]   ;;  %v12727_v12 = vld [vmem:[#allocation11 + $0x13ac] ss:$16 sps:$4 sm:$0xff]  }
 0x976   :  { %8192 = vmatprep.mubr.bf16.mxu0 %v7365_v46  ;;  %8274 = vmatprep.mubr.bf16.mxu1 %v7365_v46  ;;  %v12722_v44 = vld [vmem:[#allocation11 + $0x13a0] ss:$16 sps:$4 sm:$0xff]   ;;  %v12725_v45 = vld [vmem:[#allocation11 + $0x13a8] ss:$16 sps:$4 sm:$0xff]   ;;  %v6547_v46 = vrot.slane %v13575_v26, %v13379_v29  ;;  %v12742_v26 = vld [vmem:[#allocation11 + $0x1404] ss:$16 sps:$4 sm:$0xff]  }
 0x977   :  { %8193 = vmatmul.mubr.bf16.vlgmr.msra.gmra.mrb[36].mxu0 %v7364_v21  ;;  %8275 = vmatmul.mubr.bf16.vlgmr.msra.gmra.mrb[36].mxu1 %v7364_v21  ;;  %v12728_v21 = vld [vmem:[#allocation11 + $0x13c0] ss:$16 sps:$4 sm:$0xff]  }
 0x978   :  { %8202 = vmatpush1.bf16.msra.mxu0 %v12644_v47  ;;  %8284 = vmatpush1.bf16.msra.mxu1 %v12647_v48  ;;  %v12730_v47 = vld [vmem:[#allocation11 + $0x13c4] ss:$16 sps:$4 sm:$0xff]   ;;  %v12733_v48 = vld [vmem:[#allocation11 + $0x13cc] ss:$16 sps:$4 sm:$0xff]  }
 0x979   :  { %8233 = vmatprep.mubr.bf16.mxu0 %v7367_v51  ;;  %8315 = vmatprep.mubr.bf16.mxu1 %v7367_v51  ;;  %v12736_v51 = vld [vmem:[#allocation11 + $0x13e4] ss:$16 sps:$4 sm:$0xff]  }
 0x97a   :  { %8203 = vmatprep.subr.bf16.mxu0 %v12652_v49  ;;  %8285 = vmatprep.subr.bf16.mxu1 %v12655_v50  ;;  %v12731_v49 = vld [vmem:[#allocation11 + $0x13c8] ss:$16 sps:$4 sm:$0xff]   ;;  %v11069_v50 = vadd.f32 %v13583_v34, %v6547_v46  ;;  %v12748_v34 = vld [vmem:[#allocation11 + $0x1424] ss:$16 sps:$4 sm:$0xff]  }
 0x97b   :  { %v12809_v46 = vld [vmem:[#allocation11 + $0x1568] ss:$16 sps:$4 sm:$0xff]  }
 0x97c   :  { %8204 = vmatpush1.bf16.msra.mxu0 %v12650_v53  ;;  %8286 = vmatpush1.bf16.msra.mxu1 %v12653_v27  ;;  %v12739_v53 = vld [vmem:[#allocation11 + $0x13ec] ss:$16 sps:$4 sm:$0xff]   ;;  %v12734_v27 = vld [vmem:[#allocation11 + $0x13e0] ss:$16 sps:$4 sm:$0xff]  }
 0x97d   :  { %8205 = vmatprep.subr.bf16.mxu0 %v12658_v20  ;;  %8287 = vmatprep.subr.bf16.mxu1 %v12661_v54  ;;  %v12737_v20 = vld [vmem:[#allocation11 + $0x13e8] ss:$16 sps:$4 sm:$0xff]   ;;  %v7362_v54 = vmax.f32 %v11069_v50, 0.0  ;;  %v12820_v50 = vld [vmem:[#allocation11 + $0x15a4] ss:$16 sps:$4 sm:$0xff]  }
 0x980   :  { %8206 = vmatpush1.bf16.msra.mxu0 %v12656_v55  ;;  %8288 = vmatpush1.bf16.msra.mxu1 %v12659_v56  ;;  %v12745_v55 = vld [vmem:[#allocation11 + $0x140c] ss:$16 sps:$4 sm:$0xff]   ;;  %v12740_v56 = vld [vmem:[#allocation11 + $0x1400] ss:$16 sps:$4 sm:$0xff]  }
 0x981   :  { %8207 = vmatprep.subr.bf16.mxu0 %v12664_v57  ;;  %8289 = vmatprep.subr.bf16.mxu1 %v12667_v58  ;;  %v12743_v57 = vld [vmem:[#allocation11 + $0x1408] ss:$16 sps:$4 sm:$0xff]   ;;  %v7366_v58 = vpack.c.bf16 %v7362_v54, %v7362_v54  ;;  %v12829_v54 = vld [vmem:[#allocation11 + $0x15cc] ss:$16 sps:$4 sm:$0xff]  }
 0x984   :  { %8208 = vmatpush1.bf16.msra.mxu0 %v12662_v59  ;;  %8290 = vmatpush1.bf16.msra.mxu1 %v12665_v61  ;;  %v12751_v59 = vld [vmem:[#allocation11 + $0x142c] ss:$16 sps:$4 sm:$0xff]   ;;  %v12746_v61 = vld [vmem:[#allocation11 + $0x1420] ss:$16 sps:$4 sm:$0xff]  }
 0x985   :  { %8209 = vmatprep.subr.bf16.mxu0 %v12670_v62  ;;  %8291 = vmatprep.subr.bf16.mxu1 %v12673_v63  ;;  %v12749_v62 = vld [vmem:[#allocation11 + $0x1428] ss:$16 sps:$4 sm:$0xff]   ;;  %v12754_v63 = vld [vmem:[#allocation11 + $0x1444] ss:$16 sps:$4 sm:$0xff]  }
 0x988   :  { %8210 = vmatpush1.bf16.msra.mxu0 %v12668_v0  ;;  %8292 = vmatpush1.bf16.msra.mxu1 %v12671_v1  ;;  %v12757_v0 = vld [vmem:[#allocation11 + $0x144c] ss:$16 sps:$4 sm:$0xff]   ;;  %v12752_v1 = vld [vmem:[#allocation11 + $0x1440] ss:$16 sps:$4 sm:$0xff]  }
 0x989   :  { %8211 = vmatprep.subr.bf16.mxu0 %v12676_v2  ;;  %8293 = vmatprep.subr.bf16.mxu1 %v12679_v3  ;;  %v12755_v2 = vld [vmem:[#allocation11 + $0x1448] ss:$16 sps:$4 sm:$0xff]   ;;  %v12760_v3 = vld [vmem:[#allocation11 + $0x1464] ss:$16 sps:$4 sm:$0xff]  }
 0x98c   :  { %8212 = vmatpush1.bf16.msra.mxu0 %v12674_v4  ;;  %8294 = vmatpush1.bf16.msra.mxu1 %v12677_v38  ;;  %v12763_v4 = vld [vmem:[#allocation11 + $0x146c] ss:$16 sps:$4 sm:$0xff]   ;;  %v12758_v38 = vld [vmem:[#allocation11 + $0x1460] ss:$16 sps:$4 sm:$0xff]  }
 0x98d   :  { %8213 = vmatprep.subr.bf16.mxu0 %v12682_v5  ;;  %8295 = vmatprep.subr.bf16.mxu1 %v12685_v6  ;;  %v12761_v5 = vld [vmem:[#allocation11 + $0x1468] ss:$16 sps:$4 sm:$0xff]   ;;  %v12766_v6 = vld [vmem:[#allocation11 + $0x1484] ss:$16 sps:$4 sm:$0xff]  }
 0x990   :  { %8214 = vmatpush1.bf16.msra.mxu0 %v12680_v7  ;;  %8296 = vmatpush1.bf16.msra.mxu1 %v12683_v9  ;;  %v12769_v7 = vld [vmem:[#allocation11 + $0x148c] ss:$16 sps:$4 sm:$0xff]   ;;  %v12764_v9 = vld [vmem:[#allocation11 + $0x1480] ss:$16 sps:$4 sm:$0xff]  }
 0x991   :  { %8215 = vmatprep.subr.bf16.mxu0 %v12688_v8  ;;  %8297 = vmatprep.subr.bf16.mxu1 %v12691_v42  ;;  %v12767_v8 = vld [vmem:[#allocation11 + $0x1488] ss:$16 sps:$4 sm:$0xff]   ;;  %v12772_v42 = vld [vmem:[#allocation11 + $0x14a4] ss:$16 sps:$4 sm:$0xff]  }
 0x994   :  { %8216 = vmatpush1.bf16.msra.mxu0 %v12686_v16  ;;  %8298 = vmatpush1.bf16.msra.mxu1 %v12689_v15  ;;  %v12775_v16 = vld [vmem:[#allocation11 + $0x14ac] ss:$16 sps:$4 sm:$0xff]   ;;  %v12770_v15 = vld [vmem:[#allocation11 + $0x14a0] ss:$16 sps:$4 sm:$0xff]  }
 0x995   :  { %8217 = vmatprep.subr.bf16.mxu0 %v12694_v23  ;;  %8299 = vmatprep.subr.bf16.mxu1 %v12697_v17  ;;  %v12773_v23 = vld [vmem:[#allocation11 + $0x14a8] ss:$16 sps:$4 sm:$0xff]   ;;  %v12778_v17 = vld [vmem:[#allocation11 + $0x14c4] ss:$16 sps:$4 sm:$0xff]  }
 0x998   :  { %8218 = vmatpush1.bf16.msra.mxu0 %v12692_v19  ;;  %8300 = vmatpush1.bf16.msra.mxu1 %v12695_v18  ;;  %v12781_v19 = vld [vmem:[#allocation11 + $0x14cc] ss:$16 sps:$4 sm:$0xff]   ;;  %v12776_v18 = vld [vmem:[#allocation11 + $0x14c0] ss:$16 sps:$4 sm:$0xff]  }
 0x999   :  { %8219 = vmatprep.subr.bf16.mxu0 %v12700_v52  ;;  %8301 = vmatprep.subr.bf16.mxu1 %v12703_v32  ;;  %v12779_v52 = vld [vmem:[#allocation11 + $0x14c8] ss:$16 sps:$4 sm:$0xff]   ;;  %v12784_v32 = vld [vmem:[#allocation11 + $0x14e4] ss:$16 sps:$4 sm:$0xff]  }
 0x99c   :  { %8220 = vmatpush1.bf16.msra.mxu0 %v12698_v24  ;;  %8302 = vmatpush1.bf16.msra.mxu1 %v12701_v25  ;;  %v12787_v24 = vld [vmem:[#allocation11 + $0x14ec] ss:$16 sps:$4 sm:$0xff]   ;;  %v12782_v25 = vld [vmem:[#allocation11 + $0x14e0] ss:$16 sps:$4 sm:$0xff]  }
 0x99d   :  { %8221 = vmatprep.subr.bf16.mxu0 %v12706_v28  ;;  %8303 = vmatprep.subr.bf16.mxu1 %v12709_v30  ;;  %v12785_v28 = vld [vmem:[#allocation11 + $0x14e8] ss:$16 sps:$4 sm:$0xff]   ;;  %v12790_v30 = vld [vmem:[#allocation11 + $0x1504] ss:$16 sps:$4 sm:$0xff]  }
 0x9a0   :  { %8222 = vmatpush1.bf16.msra.mxu0 %v12704_v31  ;;  %8304 = vmatpush1.bf16.msra.mxu1 %v12707_v60  ;;  %v12793_v31 = vld [vmem:[#allocation11 + $0x150c] ss:$16 sps:$4 sm:$0xff]   ;;  %v12788_v60 = vld [vmem:[#allocation11 + $0x1500] ss:$16 sps:$4 sm:$0xff]  }
 0x9a1   :  { %8223 = vmatprep.subr.bf16.mxu0 %v12712_v33  ;;  %8305 = vmatprep.subr.bf16.mxu1 %v12715_v35  ;;  %v12791_v33 = vld [vmem:[#allocation11 + $0x1508] ss:$16 sps:$4 sm:$0xff]   ;;  %v12796_v35 = vld [vmem:[#allocation11 + $0x1524] ss:$16 sps:$4 sm:$0xff]  }
 0x9a4   :  { %8224 = vmatpush1.bf16.msra.mxu0 %v12710_v36  ;;  %8306 = vmatpush1.bf16.msra.mxu1 %v12713_v37  ;;  %v12799_v36 = vld [vmem:[#allocation11 + $0x152c] ss:$16 sps:$4 sm:$0xff]   ;;  %v12794_v37 = vld [vmem:[#allocation11 + $0x1520] ss:$16 sps:$4 sm:$0xff]  }
 0x9a5   :  { %8225 = vmatprep.subr.bf16.mxu0 %v12718_v10  ;;  %8307 = vmatprep.subr.bf16.mxu1 %v12721_v39  ;;  %v12797_v10 = vld [vmem:[#allocation11 + $0x1528] ss:$16 sps:$4 sm:$0xff]   ;;  %v12802_v39 = vld [vmem:[#allocation11 + $0x1544] ss:$16 sps:$4 sm:$0xff]  }
 0x9a8   :  { %8226 = vmatpush1.bf16.msra.mxu0 %v12716_v40  ;;  %8308 = vmatpush1.bf16.msra.mxu1 %v12719_v41  ;;  %v12805_v40 = vld [vmem:[#allocation11 + $0x154c] ss:$16 sps:$4 sm:$0xff]   ;;  %v12800_v41 = vld [vmem:[#allocation11 + $0x1540] ss:$16 sps:$4 sm:$0xff]  }
 0x9a9   :  { %8227 = vmatprep.subr.bf16.mxu0 %v12724_v43  ;;  %8309 = vmatprep.subr.bf16.mxu1 %v12727_v12  ;;  %v12803_v43 = vld [vmem:[#allocation11 + $0x1548] ss:$16 sps:$4 sm:$0xff]   ;;  %v12808_v12 = vld [vmem:[#allocation11 + $0x1564] ss:$16 sps:$4 sm:$0xff]  }
 0x9ac   :  { %8228 = vmatpush1.bf16.msra.mxu0 %v12722_v44  ;;  %8310 = vmatpush1.bf16.msra.mxu1 %v12725_v45  ;;  %v12811_v44 = vld [vmem:[#allocation11 + $0x156c] ss:$16 sps:$4 sm:$0xff]   ;;  %v12806_v45 = vld [vmem:[#allocation11 + $0x1560] ss:$16 sps:$4 sm:$0xff]  }
 0x9ad   :  { %8229 = vmatprep.subr.bf16.mxu0 %v12730_v47  ;;  %8311 = vmatprep.subr.bf16.mxu1 %v12733_v48  ;;  %v12814_v47 = vld [vmem:[#allocation11 + $0x1584] ss:$16 sps:$4 sm:$0xff]   ;;  %v12817_v48 = vld [vmem:[#allocation11 + $0x158c] ss:$16 sps:$4 sm:$0xff]  }
 0x9b0   :  { %8230 = vmatpush1.bf16.msra.mxu0 %v12728_v21  ;;  %8312 = vmatpush1.bf16.msra.mxu1 %v12731_v49  ;;  %v12812_v21 = vld [vmem:[#allocation11 + $0x1580] ss:$16 sps:$4 sm:$0xff]   ;;  %v12815_v49 = vld [vmem:[#allocation11 + $0x1588] ss:$16 sps:$4 sm:$0xff]  }
 0x9b1   :  { %8231 = vmatprep.subr.bf16.mxu0 %v12736_v51  ;;  %8313 = vmatprep.subr.bf16.mxu1 %v12739_v53  ;;  %v12823_v51 = vld [vmem:[#allocation11 + $0x15ac] ss:$16 sps:$4 sm:$0xff]   ;;  %v12818_v53 = vld [vmem:[#allocation11 + $0x15a0] ss:$16 sps:$4 sm:$0xff]  }
 0x9b4   :  { %8232 = vmatpush1.bf16.msra.mxu0 %v12734_v27  ;;  %8314 = vmatpush1.bf16.msra.mxu1 %v12737_v20  ;;  %v12821_v27 = vld [vmem:[#allocation11 + $0x15a8] ss:$16 sps:$4 sm:$0xff]   ;;  %v12826_v20 = vld [vmem:[#allocation11 + $0x15c4] ss:$16 sps:$4 sm:$0xff]  }
 0x9b5   :  { %9124 = vmatprep.subr.bf16.mxu0 %v12742_v26  ;;  %9206 = vmatprep.subr.bf16.mxu1 %v12745_v55  ;;  %v12824_v26 = vld [vmem:[#allocation11 + $0x15c0] ss:$16 sps:$4 sm:$0xff]   ;;  %v12827_v55 = vld [vmem:[#allocation11 + $0x15c8] ss:$16 sps:$4 sm:$0xff]  }
 0x9b7   :  { %8234 = vmatmul.mubr.bf16.vlgmr.msra.gmra.mrb[36].mxu0 %v7366_v58  ;;  %8316 = vmatmul.mubr.bf16.vlgmr.msra.gmra.mrb[36].mxu1 %v7366_v58  ;;  %v12830_v58 = vld [vmem:[#allocation11 + $0x15e0] ss:$16 sps:$4 sm:$0xff]  }
 0x9b8   :  { %9125 = vmatpush1.bf16.msra.mxu0 %v12740_v56  ;;  %9207 = vmatpush1.bf16.msra.mxu1 %v12743_v57  ;;  %v12832_v56 = vld [vmem:[#allocation11 + $0x15e4] ss:$16 sps:$4 sm:$0xff]   ;;  %v12835_v57 = vld [vmem:[#allocation11 + $0x15ec] ss:$16 sps:$4 sm:$0xff]  }
 0x9b9   :  { %9126 = vmatprep.subr.bf16.mxu0 %v12748_v34  ;;  %9208 = vmatprep.subr.bf16.mxu1 %v12751_v59  ;;  %v12833_v34 = vld [vmem:[#allocation11 + $0x15e8] ss:$16 sps:$4 sm:$0xff]   ;;  %v12838_v59 = vld [vmem:[#allocation11 + $0x1604] ss:$16 sps:$4 sm:$0xff]  }
 0x9bc   :  { %9127 = vmatpush1.bf16.msra.mxu0 %v12746_v61  ;;  %9209 = vmatpush1.bf16.msra.mxu1 %v12749_v62  ;;  %v12841_v61 = vld [vmem:[#allocation11 + $0x160c] ss:$16 sps:$4 sm:$0xff]   ;;  %v13588_v62 = vld [vmem:[#allocation13 + $0x10] sm:$0xf] }
 0x9bd   :  { %9128 = vmatprep.subr.bf16.mxu0 %v12754_v63  ;;  %9210 = vmatprep.subr.bf16.mxu1 %v12757_v0  ;;  %v7503_v63 = vrot.slane %v13588_v62, %v13360_v11  ;;  %v7507_v0 = vrot.slane %v13588_v62, %v13365_v13 }
 0x9c0   :  { %9129 = vmatpush1.bf16.msra.mxu0 %v12752_v1  ;;  %9211 = vmatpush1.bf16.msra.mxu1 %v12755_v2  ;;  %v7515_v1 = vrot.slane %v13588_v62, %v13368_v14 }
 0x9c1   :  { %9130 = vmatprep.subr.bf16.mxu0 %v12760_v3  ;;  %9212 = vmatprep.subr.bf16.mxu1 %v12763_v4 }
 0x9c4   :  { %9131 = vmatpush1.bf16.msra.mxu0 %v12758_v38  ;;  %9213 = vmatpush1.bf16.msra.mxu1 %v12761_v5 }
 0x9c5   :  { %9132 = vmatprep.subr.bf16.mxu0 %v12766_v6  ;;  %9214 = vmatprep.subr.bf16.mxu1 %v12769_v7 }
 0x9c8   :  { %9133 = vmatpush1.bf16.msra.mxu0 %v12764_v9  ;;  %9215 = vmatpush1.bf16.msra.mxu1 %v12767_v8 }
 0x9c9   :  { %9134 = vmatprep.subr.bf16.mxu0 %v12772_v42  ;;  %9216 = vmatprep.subr.bf16.mxu1 %v12775_v16 }
 0x9cc   :  { %9135 = vmatpush1.bf16.msra.mxu0 %v12770_v15  ;;  %9217 = vmatpush1.bf16.msra.mxu1 %v12773_v23 }
 0x9cd   :  { %9136 = vmatprep.subr.bf16.mxu0 %v12778_v17  ;;  %9218 = vmatprep.subr.bf16.mxu1 %v12781_v19 }
 0x9d0   :  { %9137 = vmatpush1.bf16.msra.mxu0 %v12776_v18  ;;  %9219 = vmatpush1.bf16.msra.mxu1 %v12779_v52  ;;  %v12836_v18 = vld [vmem:[#allocation11 + $0x1600] ss:$16 sps:$4 sm:$0xff]   ;;  %v12839_v52 = vld [vmem:[#allocation11 + $0x1608] ss:$16 sps:$4 sm:$0xff]  }
 0x9d1   :  { %9138 = vmatprep.subr.bf16.mxu0 %v12784_v32  ;;  %9220 = vmatprep.subr.bf16.mxu1 %v12787_v24  ;;  %v12844_v24 = vld [vmem:[#allocation11 + $0x1624] ss:$16 sps:$4 sm:$0xff]  }
 0x9d4   :  { %9139 = vmatpush1.bf16.msra.mxu0 %v12782_v25  ;;  %9221 = vmatpush1.bf16.msra.mxu1 %v12785_v28  ;;  %v12847_v25 = vld [vmem:[#allocation11 + $0x162c] ss:$16 sps:$4 sm:$0xff]  }
 0x9d5   :  { %9140 = vmatprep.subr.bf16.mxu0 %v12790_v30  ;;  %9222 = vmatprep.subr.bf16.mxu1 %v12793_v31  ;;  %v12842_v30 = vld [vmem:[#allocation11 + $0x1620] ss:$16 sps:$4 sm:$0xff]   ;;  %v12845_v31 = vld [vmem:[#allocation11 + $0x1628] ss:$16 sps:$4 sm:$0xff]  }
 0x9d8   :  { %9141 = vmatpush1.bf16.msra.mxu0 %v12788_v60  ;;  %9223 = vmatpush1.bf16.msra.mxu1 %v12791_v33  ;;  %v12850_v60 = vld [vmem:[#allocation11 + $0x1644] ss:$16 sps:$4 sm:$0xff]   ;;  %v12853_v33 = vld [vmem:[#allocation11 + $0x164c] ss:$16 sps:$4 sm:$0xff]  }
 0x9d9   :  { %9142 = vmatprep.subr.bf16.mxu0 %v12796_v35  ;;  %9224 = vmatprep.subr.bf16.mxu1 %v12799_v36  ;;  %v12848_v35 = vld [vmem:[#allocation11 + $0x1640] ss:$16 sps:$4 sm:$0xff]   ;;  %v12851_v36 = vld [vmem:[#allocation11 + $0x1648] ss:$16 sps:$4 sm:$0xff]  }
 0x9dc   :  { %9143 = vmatpush1.bf16.msra.mxu0 %v12794_v37  ;;  %9225 = vmatpush1.bf16.msra.mxu1 %v12797_v10  ;;  %v12856_v37 = vld [vmem:[#allocation11 + $0x1664] ss:$16 sps:$4 sm:$0xff]   ;;  %v12859_v10 = vld [vmem:[#allocation11 + $0x166c] ss:$16 sps:$4 sm:$0xff]  }
 0x9dd   :  { %9144 = vmatprep.subr.bf16.mxu0 %v12802_v39  ;;  %9226 = vmatprep.subr.bf16.mxu1 %v12805_v40  ;;  %v12854_v39 = vld [vmem:[#allocation11 + $0x1660] ss:$16 sps:$4 sm:$0xff]   ;;  %v12857_v40 = vld [vmem:[#allocation11 + $0x1668] ss:$16 sps:$4 sm:$0xff]  }
 0x9e0   :  { %9145 = vmatpush1.bf16.msra.mxu0 %v12800_v41  ;;  %9227 = vmatpush1.bf16.msra.mxu1 %v12803_v43  ;;  %v12862_v41 = vld [vmem:[#allocation11 + $0x1684] ss:$16 sps:$4 sm:$0xff]   ;;  %v12865_v43 = vld [vmem:[#allocation11 + $0x168c] ss:$16 sps:$4 sm:$0xff]  }
 0x9e1   :  { %9146 = vmatprep.subr.bf16.mxu0 %v12808_v12  ;;  %9228 = vmatprep.subr.bf16.mxu1 %v12811_v44  ;;  %v12860_v12 = vld [vmem:[#allocation11 + $0x1680] ss:$16 sps:$4 sm:$0xff]   ;;  %v12863_v44 = vld [vmem:[#allocation11 + $0x1688] ss:$16 sps:$4 sm:$0xff]  }
 0x9e4   :  { %9147 = vmatpush1.bf16.msra.mxu0 %v12806_v45  ;;  %9229 = vmatpush1.bf16.msra.mxu1 %v12809_v46  ;;  %v12868_v45 = vld [vmem:[#allocation11 + $0x16a4] ss:$16 sps:$4 sm:$0xff]   ;;  %v12871_v46 = vld [vmem:[#allocation11 + $0x16ac] ss:$16 sps:$4 sm:$0xff]  }
 0x9e5   :  { %9148 = vmatprep.subr.bf16.mxu0 %v12814_v47  ;;  %9230 = vmatprep.subr.bf16.mxu1 %v12817_v48  ;;  %v12866_v47 = vld [vmem:[#allocation11 + $0x16a0] ss:$16 sps:$4 sm:$0xff]   ;;  %v12869_v48 = vld [vmem:[#allocation11 + $0x16a8] ss:$16 sps:$4 sm:$0xff]  }
 0x9e8   :  { %9149 = vmatpush1.bf16.msra.mxu0 %v12812_v21  ;;  %9231 = vmatpush1.bf16.msra.mxu1 %v12815_v49  ;;  %v12874_v21 = vld [vmem:[#allocation11 + $0x16c4] ss:$16 sps:$4 sm:$0xff]   ;;  %v12877_v49 = vld [vmem:[#allocation11 + $0x16cc] ss:$16 sps:$4 sm:$0xff]  }
 0x9e9   :  { %9150 = vmatprep.subr.bf16.mxu0 %v12820_v50  ;;  %9232 = vmatprep.subr.bf16.mxu1 %v12823_v51  ;;  %v12872_v50 = vld [vmem:[#allocation11 + $0x16c0] ss:$16 sps:$4 sm:$0xff]   ;;  %v12875_v51 = vld [vmem:[#allocation11 + $0x16c8] ss:$16 sps:$4 sm:$0xff]  }
 0x9ec   :  { %9151 = vmatpush1.bf16.msra.mxu0 %v12818_v53  ;;  %9233 = vmatpush1.bf16.msra.mxu1 %v12821_v27  ;;  %v12880_v53 = vld [vmem:[#allocation11 + $0x16e4] ss:$16 sps:$4 sm:$0xff]   ;;  %v12883_v27 = vld [vmem:[#allocation11 + $0x16ec] ss:$16 sps:$4 sm:$0xff]  }
 0x9ed   :  { %9152 = vmatprep.subr.bf16.mxu0 %v12826_v20  ;;  %9234 = vmatprep.subr.bf16.mxu1 %v12829_v54  ;;  %v12878_v20 = vld [vmem:[#allocation11 + $0x16e0] ss:$16 sps:$4 sm:$0xff]   ;;  %v12881_v54 = vld [vmem:[#allocation11 + $0x16e8] ss:$16 sps:$4 sm:$0xff]  }
 0x9f0   :  { %9153 = vmatpush1.bf16.msra.mxu0 %v12824_v26  ;;  %9235 = vmatpush1.bf16.msra.mxu1 %v12827_v55  ;;  %v12886_v26 = vld [vmem:[#allocation11 + $0x1704] ss:$16 sps:$4 sm:$0xff]   ;;  %v12889_v55 = vld [vmem:[#allocation11 + $0x170c] ss:$16 sps:$4 sm:$0xff]  }
 0x9f1   :  { %9154 = vmatprep.subr.bf16.mxu0 %v12832_v56  ;;  %9236 = vmatprep.subr.bf16.mxu1 %v12835_v57  ;;  %v12884_v56 = vld [vmem:[#allocation11 + $0x1700] ss:$16 sps:$4 sm:$0xff]   ;;  %v12887_v57 = vld [vmem:[#allocation11 + $0x1708] ss:$16 sps:$4 sm:$0xff]  }
 0x9f4   :  { %9155 = vmatpush1.bf16.msra.mxu0 %v12830_v58  ;;  %9237 = vmatpush1.bf16.msra.mxu1 %v12833_v34  ;;  %v12892_v58 = vld [vmem:[#allocation11 + $0x1724] ss:$16 sps:$4 sm:$0xff]   ;;  %v12895_v34 = vld [vmem:[#allocation11 + $0x172c] ss:$16 sps:$4 sm:$0xff]  }
 0x9f5   :  { %9165 = vmatprep.subr.bf16.mxu0 %v12838_v59  ;;  %9247 = vmatprep.subr.bf16.mxu1 %v12841_v61  ;;  %v12890_v59 = vld [vmem:[#allocation11 + $0x1720] ss:$16 sps:$4 sm:$0xff]   ;;  %v12893_v61 = vld [vmem:[#allocation11 + $0x1728] ss:$16 sps:$4 sm:$0xff]  }
 0xa8a   :  { %v8235_v2 = vpop.f32.mrb[36].mxu0  ;;  %v13596_v3 = vpop.f32.mrb[36].mxu1 }
 0xa8b   :  { %v11071_v4 = vadd.f32 %v8235_v2, %v7503_v63  ;;  %v8237_v38 = vpop.f32.mrb[37].mxu0  ;;  %v8319_v5 = vpop.f32.mrb[37].mxu1  ;;  %v12898_v63 = vld [vmem:[#allocation11 + $0x1744] ss:$16 sps:$4 sm:$0xff]   ;;  %v12899_v2 = vld [vmem:[#allocation11 + $0x1748] ss:$16 sps:$4 sm:$0xff]  }
 0xa8c   :  { %v11072_v6 = vadd.f32 %v8237_v38, %v7507_v0  ;;  %v11074_v7 = vadd.f32 %v8319_v5, %v7515_v1  ;;  %v8239_v9 = vpop.f32.mrb[38].mxu0  ;;  %v8321_v8 = vpop.f32.mrb[38].mxu1  ;;  %v12901_v0 = vld [vmem:[#allocation11 + $0x174c] ss:$16 sps:$4 sm:$0xff]   ;;  %v12896_v1 = vld [vmem:[#allocation11 + $0x1740] ss:$16 sps:$4 sm:$0xff]  }
 0xa8d   :  { %v8324_v42 = vmax.f32 %v11071_v4, 0.0  ;;  %v8240_v16 = vpop.f32.mrb[39].mxu0  ;;  %v8322_v15 = vpop.f32.mrb[39].mxu1  ;;  %v12904_v4 = vld [vmem:[#allocation11 + $0x1764] ss:$16 sps:$4 sm:$0xff]  }
 0xa8e   :  { %v8325_v23 = vmax.f32 %v11072_v6, 0.0  ;;  %v8327_v17 = vmax.f32 %v11074_v7, 0.0  ;;  %v12907_v38 = vld [vmem:[#allocation11 + $0x176c] ss:$16 sps:$4 sm:$0xff]   ;;  %v12902_v5 = vld [vmem:[#allocation11 + $0x1760] ss:$16 sps:$4 sm:$0xff]  }
 0xa8f   :  { %v8328_v32 = vpack.c.bf16 %v8324_v42, %v8324_v42  ;;  %v12905_v6 = vld [vmem:[#allocation11 + $0x1768] ss:$16 sps:$4 sm:$0xff]   ;;  %v12910_v7 = vld [vmem:[#allocation11 + $0x1784] ss:$16 sps:$4 sm:$0xff]   ;;  %v12913_v9 = vld [vmem:[#allocation11 + $0x178c] ss:$16 sps:$4 sm:$0xff]  }
 0xa90   :  { %v8329_v19 = vpack.c.bf16 %v8325_v23, %v8325_v23  ;;  %v8331_v28 = vpack.c.bf16 %v8327_v17, %v8327_v17  ;;  %v12908_v8 = vld [vmem:[#allocation11 + $0x1780] ss:$16 sps:$4 sm:$0xff]   ;;  %v12911_v42 = vld [vmem:[#allocation11 + $0x1788] ss:$16 sps:$4 sm:$0xff]   ;;  %v12916_v16 = vld [vmem:[#allocation11 + $0x17a4] ss:$16 sps:$4 sm:$0xff]  }
 0xa91   :  { %v12919_v15 = vld [vmem:[#allocation11 + $0x17ac] ss:$16 sps:$4 sm:$0xff]   ;;  %v12914_v23 = vld [vmem:[#allocation11 + $0x17a0] ss:$16 sps:$4 sm:$0xff]   ;;  %v12917_v17 = vld [vmem:[#allocation11 + $0x17a8] ss:$16 sps:$4 sm:$0xff]  }
 0xa92   :  { %9156 = vmatprep.mubr.bf16.mxu0 %v8329_v19  ;;  %9238 = vmatprep.mubr.bf16.mxu1 %v8329_v19  ;;  %v7511_v19 = vrot.slane %v13588_v62, %v13379_v29  ;;  %v12932_v62 = vld [vmem:[%s13722_s7 + $0x140] sm:$0xff]  }
 0xa93   :  { %9157 = vmatmul.mubr.bf16.vlgmr.msra.gmra.mrb[40].mxu0 %v8328_v32  ;;  %9239 = vmatmul.mubr.bf16.vlgmr.msra.gmra.mrb[40].mxu1 %v8328_v32  ;;  %v12920_v32 = vld [vmem:[#allocation11 + $0x17c0] ss:$16 sps:$4 sm:$0xff]  }
 0xa94   :  { %9166 = vmatpush1.bf16.msra.mxu0 %v12836_v18  ;;  %9248 = vmatpush1.bf16.msra.mxu1 %v12839_v52  ;;  %v12922_v18 = vld [vmem:[#allocation11 + $0x17c4] ss:$16 sps:$4 sm:$0xff]   ;;  %v12925_v52 = vld [vmem:[#allocation11 + $0x17cc] ss:$16 sps:$4 sm:$0xff]  }
 0xa95   :  { %9197 = vmatprep.mubr.bf16.mxu0 %v8331_v28  ;;  %9279 = vmatprep.mubr.bf16.mxu1 %v8331_v28  ;;  %v12928_v28 = vld [vmem:[#allocation11 + $0x17e4] ss:$16 sps:$4 sm:$0xff]  }
 0xa96   :  { %9167 = vmatprep.subr.bf16.mxu0 %v12844_v24  ;;  %9249 = vmatprep.subr.bf16.mxu1 %v12847_v25  ;;  %v12923_v24 = vld [vmem:[#allocation11 + $0x17c8] ss:$16 sps:$4 sm:$0xff]   ;;  %v11073_v25 = vadd.f32 %v13596_v3, %v7511_v19 }
 0xa97   :  { %v12934_v3 = vld [vmem:[%s13722_s7 + $0x100] sm:$0xff]  }
 0xa98   :  { %9168 = vmatpush1.bf16.msra.mxu0 %v12842_v30  ;;  %9250 = vmatpush1.bf16.msra.mxu1 %v12845_v31  ;;  %v12931_v30 = vld [vmem:[#allocation11 + $0x17ec] ss:$16 sps:$4 sm:$0xff]   ;;  %v12926_v31 = vld [vmem:[#allocation11 + $0x17e0] ss:$16 sps:$4 sm:$0xff]  }
 0xa99   :  { %9169 = vmatprep.subr.bf16.mxu0 %v12850_v60  ;;  %9251 = vmatprep.subr.bf16.mxu1 %v12853_v33  ;;  %v12929_v60 = vld [vmem:[#allocation11 + $0x17e8] ss:$16 sps:$4 sm:$0xff]   ;;  %v8326_v33 = vmax.f32 %v11073_v25, 0.0 }
 0xa9c   :  { %9170 = vmatpush1.bf16.msra.mxu0 %v12848_v35  ;;  %9252 = vmatpush1.bf16.msra.mxu1 %v12851_v36  ;;  %v12933_v35 = vld [vmem:[%s13722_s7 + $0x1c0] sm:$0xff]  }
 0xa9d   :  { %9171 = vmatprep.subr.bf16.mxu0 %v12856_v37  ;;  %9253 = vmatprep.subr.bf16.mxu1 %v12859_v10  ;;  %v12935_v36 = vld [vmem:[%s13722_s7 + $0x180] sm:$0xff]   ;;  %v8330_v37 = vpack.c.bf16 %v8326_v33, %v8326_v33  ;;  %v12936_v10 = vld [vmem:[%s13722_s7 + $0x148] sm:$0xff]   ;;  %v10922_v33 = vld [vmem:[#allocation14 + $0x1] ss:$0 sm:$0xff] }
 0xaa0   :  { %9172 = vmatpush1.bf16.msra.mxu0 %v12854_v39  ;;  %9254 = vmatpush1.bf16.msra.mxu1 %v12857_v40  ;;  %v12937_v39 = vld [vmem:[%s13722_s7 + $0x1c8] sm:$0xff]  }
 0xaa1   :  { %9173 = vmatprep.subr.bf16.mxu0 %v12862_v41  ;;  %9255 = vmatprep.subr.bf16.mxu1 %v12865_v43  ;;  %v12938_v40 = vld [vmem:[%s13722_s7 + $0x108] sm:$0xff]   ;;  %v12940_v43 = vld [vmem:[%s13722_s7 + $0x150] sm:$0xff]  }
 0xaa2   :  { %v12939_v41 = vld [vmem:[%s13722_s7 + $0x188] sm:$0xff]  }
 0xaa4   :  { %9174 = vmatpush1.bf16.msra.mxu0 %v12860_v12  ;;  %9256 = vmatpush1.bf16.msra.mxu1 %v12863_v44  ;;  %v12941_v12 = vld [vmem:[%s13722_s7 + $0x1d0] sm:$0xff]  }
 0xaa5   :  { %9175 = vmatprep.subr.bf16.mxu0 %v12868_v45  ;;  %9257 = vmatprep.subr.bf16.mxu1 %v12871_v46  ;;  %v12942_v44 = vld [vmem:[%s13722_s7 + $0x110] sm:$0xff]   ;;  %v12944_v46 = vld [vmem:[%s13722_s7 + $0x158] sm:$0xff]  }
 0xaa6   :  { %v12943_v45 = vld [vmem:[%s13722_s7 + $0x190] sm:$0xff]  }
 0xaa8   :  { %9176 = vmatpush1.bf16.msra.mxu0 %v12866_v47  ;;  %9258 = vmatpush1.bf16.msra.mxu1 %v12869_v48  ;;  %v12945_v47 = vld [vmem:[%s13722_s7 + $0x1d8] sm:$0xff]  }
 0xaa9   :  { %9177 = vmatprep.subr.bf16.mxu0 %v12874_v21  ;;  %9259 = vmatprep.subr.bf16.mxu1 %v12877_v49  ;;  %v12946_v48 = vld [vmem:[%s13722_s7 + $0x118] sm:$0xff]   ;;  %v12948_v49 = vld [vmem:[%s13722_s7 + $0x160] sm:$0xff]  }
 0xaaa   :  { %v12947_v21 = vld [vmem:[%s13722_s7 + $0x198] sm:$0xff]  }
 0xaac   :  { %9178 = vmatpush1.bf16.msra.mxu0 %v12872_v50  ;;  %9260 = vmatpush1.bf16.msra.mxu1 %v12875_v51  ;;  %v12949_v50 = vld [vmem:[%s13722_s7 + $0x1e0] sm:$0xff]  }
 0xaad   :  { %9179 = vmatprep.subr.bf16.mxu0 %v12880_v53  ;;  %9261 = vmatprep.subr.bf16.mxu1 %v12883_v27  ;;  %v12950_v51 = vld [vmem:[%s13722_s7 + $0x120] sm:$0xff]   ;;  %v12952_v27 = vld [vmem:[%s13722_s7 + $0x168] sm:$0xff]  }
 0xaae   :  { %v12951_v53 = vld [vmem:[%s13722_s7 + $0x1a0] sm:$0xff]  }
 0xab0   :  { %9180 = vmatpush1.bf16.msra.mxu0 %v12878_v20  ;;  %9262 = vmatpush1.bf16.msra.mxu1 %v12881_v54  ;;  %v12953_v20 = vld [vmem:[%s13722_s7 + $0x1e8] sm:$0xff]  }
 0xab1   :  { %9181 = vmatprep.subr.bf16.mxu0 %v12886_v26  ;;  %9263 = vmatprep.subr.bf16.mxu1 %v12889_v55  ;;  %v12954_v54 = vld [vmem:[%s13722_s7 + $0x128] sm:$0xff]   ;;  %v12956_v55 = vld [vmem:[%s13722_s7 + $0x170] sm:$0xff]  }
 0xab2   :  { %v12955_v26 = vld [vmem:[%s13722_s7 + $0x1a8] sm:$0xff]  }
 0xab4   :  { %9182 = vmatpush1.bf16.msra.mxu0 %v12884_v56  ;;  %9264 = vmatpush1.bf16.msra.mxu1 %v12887_v57  ;;  %v12957_v56 = vld [vmem:[%s13722_s7 + $0x1f0] sm:$0xff]  }
 0xab5   :  { %9183 = vmatprep.subr.bf16.mxu0 %v12892_v58  ;;  %9265 = vmatprep.subr.bf16.mxu1 %v12895_v34  ;;  %v12958_v57 = vld [vmem:[%s13722_s7 + $0x130] sm:$0xff]   ;;  %v12960_v34 = vld [vmem:[%s13722_s7 + $0x178] sm:$0xff]  }
 0xab6   :  { %v12959_v58 = vld [vmem:[%s13722_s7 + $0x1b0] sm:$0xff]  }
 0xab8   :  { %9184 = vmatpush1.bf16.msra.mxu0 %v12890_v59  ;;  %9266 = vmatpush1.bf16.msra.mxu1 %v12893_v61  ;;  %v12961_v59 = vld [vmem:[%s13722_s7 + $0x1f8] sm:$0xff]  }
 0xab9   :  { %9185 = vmatprep.subr.bf16.mxu0 %v12898_v63  ;;  %9267 = vmatprep.subr.bf16.mxu1 %v12901_v0  ;;  %v12962_v61 = vld [vmem:[%s13722_s7 + $0x138] sm:$0xff]   ;;  %v8462_v0 = vld [vmem:[#allocation13 + $0x14] sm:$0xf] }
 0xaba   :  { %v12963_v63 = vld [vmem:[%s13722_s7 + $0x1b8] sm:$0xff]   ;;  %s13188_s7 = smov [#allocation16]  }
 0xabb   :  { %s9654_s28 = sshll.u32 %s13188_s7, 4  ;;  %s9655_s28 = int_to_ptr.vmem [resolvable:$true] %s9654_s28 }
 0xabc   :  { %9186 = vmatpush1.bf16.msra.mxu0 %v12896_v1  ;;  %9268 = vmatpush1.bf16.msra.mxu1 %v12899_v2  ;;  %v8467_v1 = vrot.slane %v8462_v0, %v13360_v11  ;;  %v8475_v2 = vrot.slane %v8462_v0, %v13379_v29  ;;  %s13140_s29 = scalar_lea.vmem %s9655_s28, 128  ;;  %p13145_p9 = scmp.lt.s32.totalorder %s9655_s28, %s9655_s28 }
 0xabd   :  { %9187 = vmatprep.subr.bf16.mxu0 %v12904_v4  ;;  %9269 = vmatprep.subr.bf16.mxu1 %v12907_v38  ;;  %v8471_v4 = vrot.slane %v8462_v0, %v13365_v13  ;;  %v8479_v38 = vrot.slane %v8462_v0, %v13368_v14  ;;  %p13141_p8 = scmp.ne.s32.totalorder %s9655_s28, %s13140_s29  ;;  %p13146_p10 = scmp.lt.s32.totalorder %s13140_s29, %s13140_s29 }
 0xabf   :  { %p13147_p11 = por %p13146_p10, %p13145_p9 }
 0xac0   :  { %9188 = vmatpush1.bf16.msra.mxu0 %v12902_v5  ;;  %9270 = vmatpush1.bf16.msra.mxu1 %v12905_v6 }
 0xac1   :  { %9189 = vmatprep.subr.bf16.mxu0 %v12910_v7  ;;  %9271 = vmatprep.subr.bf16.mxu1 %v12913_v9  ;;  %p13148_p12 = pnand %p13147_p11, %p13141_p8 }
 0xac4   :  { %9190 = vmatpush1.bf16.msra.mxu0 %v12908_v8  ;;  %9272 = vmatpush1.bf16.msra.mxu1 %v12911_v42 }
 0xac5   :  { %9191 = vmatprep.subr.bf16.mxu0 %v12916_v16  ;;  %9273 = vmatprep.subr.bf16.mxu1 %v12919_v15 }
 0xac8   :  { %9192 = vmatpush1.bf16.msra.mxu0 %v12914_v23  ;;  %9274 = vmatpush1.bf16.msra.mxu1 %v12917_v17 }
 0xac9   :  { %9193 = vmatprep.subr.bf16.mxu0 %v12922_v18  ;;  %9275 = vmatprep.subr.bf16.mxu1 %v12925_v52 }
 0xacc   :  { %9194 = vmatpush1.bf16.msra.mxu0 %v12920_v32  ;;  %9276 = vmatpush1.bf16.msra.mxu1 %v12923_v24 }
 0xacd   :  { %9195 = vmatprep.subr.bf16.mxu0 %v12928_v28  ;;  %9277 = vmatprep.subr.bf16.mxu1 %v12931_v30 }
 0xad0   :  { %9196 = vmatpush1.bf16.msra.mxu0 %v12926_v31  ;;  %9278 = vmatpush1.bf16.msra.mxu1 %v12929_v60 }
 0xad1   :  { %10999 = vmatprep.subr.bf16.mxu0 %v12932_v62  ;;  %11021 = vmatprep.subr.bf16.mxu1 %v12933_v35 }
 0xad3   :  { %9198 = vmatmul.mubr.bf16.vlgmr.msra.gmra.mrb[40].mxu0 %v8330_v37  ;;  %9280 = vmatmul.mubr.bf16.vlgmr.msra.gmra.mrb[40].mxu1 %v8330_v37 }
 0xad4   :  { %11000 = vmatpush3.bf16.msra.mxu0 %v12934_v3  ;;  %11022 = vmatpush3.bf16.msra.mxu1 %v12935_v36 }
 0xad5   :  { %11001 = vmatprep.subr.bf16.mxu0 %v12936_v10  ;;  %11023 = vmatprep.subr.bf16.mxu1 %v12937_v39 }
 0xad8   :  { %11002 = vmatpush3.bf16.msra.mxu0 %v12938_v40  ;;  %11024 = vmatpush3.bf16.msra.mxu1 %v12939_v41 }
 0xad9   :  { %11003 = vmatprep.subr.bf16.mxu0 %v12940_v43  ;;  %11025 = vmatprep.subr.bf16.mxu1 %v12941_v12 }
 0xadc   :  { %11004 = vmatpush3.bf16.msra.mxu0 %v12942_v44  ;;  %11026 = vmatpush3.bf16.msra.mxu1 %v12943_v45 }
 0xadd   :  { %11005 = vmatprep.subr.bf16.mxu0 %v12944_v46  ;;  %11027 = vmatprep.subr.bf16.mxu1 %v12945_v47 }
 0xae0   :  { %11006 = vmatpush3.bf16.msra.mxu0 %v12946_v48  ;;  %11028 = vmatpush3.bf16.msra.mxu1 %v12947_v21 }
 0xae1   :  { %11007 = vmatprep.subr.bf16.mxu0 %v12948_v49  ;;  %11029 = vmatprep.subr.bf16.mxu1 %v12949_v50 }
 0xae4   :  { %11008 = vmatpush3.bf16.msra.mxu0 %v12950_v51  ;;  %11030 = vmatpush3.bf16.msra.mxu1 %v12951_v53 }
 0xae5   :  { %11009 = vmatprep.subr.bf16.mxu0 %v12952_v27  ;;  %11031 = vmatprep.subr.bf16.mxu1 %v12953_v20 }
 0xae8   :  { %11010 = vmatpush3.bf16.msra.mxu0 %v12954_v54  ;;  %11032 = vmatpush3.bf16.msra.mxu1 %v12955_v26 }
 0xae9   :  { %11011 = vmatprep.subr.bf16.mxu0 %v12956_v55  ;;  %11033 = vmatprep.subr.bf16.mxu1 %v12957_v56 }
 0xaec   :  { %11012 = vmatpush3.bf16.msra.mxu0 %v12958_v57  ;;  %11034 = vmatpush3.bf16.msra.mxu1 %v12959_v58 }
 0xaed   :  { %11013 = vmatprep.subr.bf16.mxu0 %v12960_v34  ;;  %11035 = vmatprep.subr.bf16.mxu1 %v12961_v59 }
 0xaf0   :  { %11014 = vmatpush3.bf16.msra.mxu0 %v12962_v61  ;;  %11036 = vmatpush3.bf16.msra.mxu1 %v12963_v63 }
 0xba6   :  { %v9199_v5 = vpop.f32.mrb[40].mxu0  ;;  %v9281_v6 = vpop.f32.mrb[40].mxu1 }
 0xba7   :  { %v11075_v7 = vadd.f32 %v9199_v5, %v8467_v1  ;;  %v11077_v9 = vadd.f32 %v9281_v6, %v8475_v2  ;;  %v9201_v8 = vpop.f32.mrb[41].mxu0  ;;  %v9283_v42 = vpop.f32.mrb[41].mxu1 }
 0xba8   :  { %v11076_v16 = vadd.f32 %v9201_v8, %v8471_v4  ;;  %v11078_v15 = vadd.f32 %v9283_v42, %v8479_v38  ;;  %v9203_v23 = vpop.f32.mrb[42].mxu0  ;;  %v9285_v17 = vpop.f32.mrb[42].mxu1 }
 0xba9   :  { %v9288_v19 = vmax.f32 %v11075_v7, 0.0  ;;  %v9290_v18 = vmax.f32 %v11077_v9, 0.0  ;;  %v9204_v52 = vpop.f32.mrb[43].mxu0  ;;  %v9286_v11 = vpop.f32.mrb[43].mxu1 }
 0xbaa   :  { %v9289_v32 = vmax.f32 %v11076_v16, 0.0  ;;  %v9291_v29 = vmax.f32 %v11078_v15, 0.0 }
 0xbab   :  { %v9292_v25 = vpack.c.bf16 %v9288_v19, %v9288_v19  ;;  %v9294_v14 = vpack.c.bf16 %v9290_v18, %v9290_v18 }
 0xbac   :  { %v9293_v24 = vpack.c.bf16 %v9289_v32, %v9289_v32  ;;  %v9295_v13 = vpack.c.bf16 %v9291_v29, %v9291_v29 }
 0xbae   :  { %9593 = vmatprep.mubr.bf16.mxu0 %v9293_v24  ;;  %9633 = vmatprep.mubr.bf16.mxu1 %v9295_v13 }
 0xbaf   :  { %9594 = vmatmul.mubr.bf16.vlgmr.msra.gmra.mrb[44].mxu0 %v9292_v25  ;;  %9634 = vmatmul.mubr.bf16.vlgmr.msra.gmra.mrb[44].mxu1 %v9294_v14 }
 0xc82   :  { %v11015_v28 = vpop.f32.mrb[44].mxu0  ;;  %v11037_v30 = vpop.f32.mrb[44].mxu1 }
 0xc83   :  { %v11016_v31 = vpop.f32.mrb[45].mxu0  ;;  %v11038_v60 = vpop.f32.mrb[45].mxu1 }
 0xc84   :  { %v11017_v62 = vadd.f32 %v11016_v31, %v11015_v28  ;;  %v11039_v35 = vadd.f32 %v11038_v60, %v11037_v30  ;;  %v11018_v3 = vpop.f32.mrb[46].mxu0  ;;  %v11040_v36 = vpop.f32.mrb[46].mxu1 }
 0xc85   :  { %v11019_v37 = vpop.f32.mrb[47].mxu0  ;;  %v11041_v10 = vpop.f32.mrb[47].mxu1 }
 0xc86   :  { %v9596_v39 = vadd.f32 %v11017_v62, %v10922_v33 }
 0xc88   :  { %v9636_v40 = vadd.f32 %v11039_v35, %v9596_v39 }
 0xc8a   :  { %9642 = vrot.lane.b32.xlu0 %v9636_v40, %s13182_s2 }
 0xcfc   :  { %v9643_v41 = vpop.permute.xlu0 %9642 }
 0xcfd   :  { %v9646_v43 = vsel %vm9645_vm1, %v13573_v22, %v9643_v41 }
 0xcfe   :  { %9647 = vst [vmem:[#allocation16] sm:$0xff] %v9646_v43 }
 0xcff   :  { %13151 = shalt.err (!%p13148_p12)
}
 0xd00   :  { %s13152_s13 = scalar_lea.hbm %s13724_s9, 128 }
 0xd01   :  { %p13153_p13 = scmp.ne.s32.totalorder %s13724_s9, %s13152_s13  ;;  %p13156_p0 = scmp.lt.u32.totalorder %s13152_s13, %s13724_s9 }
 0xd03   :  { %p13158_p1 = pnand %p13156_p0, %p13153_p13 }
 0xd05   :  { %13161 = shalt.err (!%p13158_p1)
}
 0xd06   :  { %9657 = dma.vmem_to_hbm [thread:$0]  %s9655_s28, 128, %s13724_s9, [#allocation4]  }
 0xd07   :  { %13172 = dma.done.wait [#allocation4], 128  }
 0xd08   :  { %13173 = vsyncadd [#allocation4], 4294967168 }
 0xd09   :  { %9661 = vsyncpa [#allocation3], 1 }
 0xd0a   :  { %9662 = vsyncpa [#allocation6], 1 }
 0xd0b   :  { %9663 = vsyncpa [#allocation9], 1 }
 0xd0c   :  { %9664 = vsyncpa [#allocation12], 1 }
 0xd0d   :  { %9665 = vsyncpa [#allocation15], 1 }
 0xd0e   :  { %9666 = vsyncpa [#allocation4], 1 }

</bundles_post_ra>
